<compile_context>
chip_gen: v7x
topology: tpu7x:2x2x1
jax: 0.10.0
libtpu: 0.0.40
codegen_flags: <defaults>
</compile_context>

<pallas_src>
import math
from functools import partial

import numpy as np
import jax
import jax.numpy as jnp
from jax.experimental import pallas as pl
from jax.experimental.pallas import tpu as pltpu

# ----------------------------- configuration (small) -----------------------------
IMG = 16          # image size
PATCH = 4         # patch size
IN_CH = 1
EMBED = 32        # encoder embed dim
DEPTH = 2         # encoder depth
HEADS = 4
DEC_EMBED = 32
DEC_DEPTH = 1
DEC_HEADS = 4
MLP_RATIO = 4.0
N_CLASSES = 5
POS_ENCODE_W = 1.0
ENTROPY_THR = 0.4
PATCH_PERC_KEEP = 1.0
MASK_RATIO = 0.75
L = (IMG // PATCH) ** 2            # num patches = 16
CPP = IN_CH * PATCH * PATCH        # conv patch vector length = 16
PP = PATCH * PATCH                 # pixels per patch = 16
PRED_DIM = PP * N_CLASSES          # 80
PAD = 128                          # lane-dense output width


def _select_matmul_dtype():
    # bf16 matmul inputs on v6e / v7x (MXU-native, halves weight DMA); keep f32 on
    # older generations (v5e has no bf16 VPU/EUP). Accumulation is always f32.
    try:
        kind = jax.devices()[0].device_kind.lower()
    except Exception:
        return jnp.float32
    if ('v6' in kind) or ('v7' in kind) or ('7x' in kind):
        return jnp.bfloat16
    return jnp.float32


MATMUL_DTYPE = _select_matmul_dtype()


# ----------------------------- sincos positional embeddings ----------------------
def get_1d_sincos_pos_embed_from_grid(embed_dim, pos):
    assert embed_dim % 2 == 0
    omega = np.arange(embed_dim // 2, dtype=float)
    omega /= embed_dim / 2.0
    omega = 1.0 / 10000 ** omega
    pos = pos.reshape(-1)
    out = np.einsum('m,d->md', pos, omega)
    emb_sin = np.sin(out)
    emb_cos = np.cos(out)
    return np.concatenate([emb_sin, emb_cos], axis=1)


def get_2d_sincos_pos_embed_from_grid(embed_dim, grid):
    assert embed_dim % 2 == 0
    emb_h = get_1d_sincos_pos_embed_from_grid(embed_dim // 2, grid[0])
    emb_w = get_1d_sincos_pos_embed_from_grid(embed_dim // 2, grid[1])
    return np.concatenate([emb_h, emb_w], axis=1)


def get_2d_sincos_pos_embed(embed_dim, grid_size, cls_token=False):
    grid_h = np.arange(grid_size, dtype=np.float32)
    grid_w = np.arange(grid_size, dtype=np.float32)
    grid = np.meshgrid(grid_w, grid_h)
    grid = np.stack(grid, axis=0)
    grid = grid.reshape([2, 1, grid_size, grid_size])
    pos_embed = get_2d_sincos_pos_embed_from_grid(embed_dim, grid)
    if cls_token:
        pos_embed = np.concatenate([np.zeros([1, embed_dim]), pos_embed], axis=0)
    return pos_embed


# ----------------------------- in-kernel building blocks --------------------------
def _mm(a, w):
    """Matmul with f32 accumulation; activations cast to the weight dtype
    (bf16 on v6e/v7x, f32 on v5e)."""
    return jnp.dot(a.astype(w.dtype), w, preferred_element_type=jnp.float32)


def _layernorm(x, g, b, eps=1e-5):
    # One-pass stats: mean(x) and mean(x*x) are independent -> XLU reduces overlap.
    m1 = jnp.mean(x, axis=-1, keepdims=True)
    m2 = jnp.mean(x * x, axis=-1, keepdims=True)
    var = m2 - m1 * m1
    return (x - m1) * jax.lax.rsqrt(var + eps) * g + b


def _gelu(y):
    # TODO(synk): PyTorch nn.GELU defaults to the exact erf form; erf has no
    # guaranteed Mosaic lowering, so the tanh approximation is used here.
    c = 0.7978845608028654  # sqrt(2/pi)
    return 0.5 * y * (1.0 + jnp.tanh(c * (y + 0.044715 * y * y * y)))


def _block(x, n1g, n1b, qkvw, qkvb, pw, pb, n2g, n2b, f1w, f1b, f2w, f2b, heads):
    """Pre-norm transformer block on an (S, D) tile, fully in-register/VMEM.
    Per-head outputs are folded into the output projection (no lane concat)."""
    S, D = x.shape
    dh = D // heads
    scale = dh ** -0.5
    h = _layernorm(x, n1g, n1b)
    qkv = _mm(h, qkvw) + qkvb                                               # (S, 3D) f32
    att = jnp.zeros((S, D), jnp.float32)
    for hd in range(heads):
        q = qkv[:, hd * dh:(hd + 1) * dh]
        k = qkv[:, D + hd * dh:D + (hd + 1) * dh]
        v = qkv[:, 2 * D + hd * dh:2 * D + (hd + 1) * dh]
        s = jax.lax.dot_general(q, k, (((1,), (1,)), ((), ())),
                                preferred_element_type=jnp.float32) * scale  # (S, S)
        s = s - jnp.max(s, axis=-1, keepdims=True)
        p = jnp.exp(s)
        p = p * pl.reciprocal(jnp.sum(p, axis=-1, keepdims=True), approx=True)
        o_h = jnp.dot(p, v, preferred_element_type=jnp.float32)             # (S, dh)
        att = att + _mm(o_h, pw[hd * dh:(hd + 1) * dh, :])                   # (S, D)
    x = x + att + pb
    h2 = _layernorm(x, n2g, n2b)
    h2 = _gelu(_mm(h2, f1w) + f1b)
    h2 = _mm(h2, f2w) + f2b
    return x + h2


# ----------------------------- fused MAE kernel ------------------------------------
def _mae_kernel(*refs, len_keep, depth, dec_depth, heads, dec_heads):
    # ---- unpack refs (inputs ... , pred_ref, num_ref, den_ref) ----
    patches_ref, idsk_ref, idsr_ref, tgt_ref = refs[:4]
    rest = list(refs[4:-3])
    pe_w, pe_b, pos, cls = rest[0:4]
    e_blk = rest[4:16]
    enorm_g, enorm_b = rest[16:18]
    dew, deb, mtok, dpos = rest[18:22]
    d_blk = rest[22:34]
    dnorm_g, dnorm_b, prw, prb, wc, bc = rest[34:40]
    pred_ref, num_ref, den_ref = refs[-3:]

    # ---------------- encoder ----------------
    pos_v = pos[...]                                                        # (L+1, D)
    patches = patches_ref[0]                                                # (L, CPP)
    emb = _mm(patches, pe_w[...]) + pe_b[...] + pos_v[1:, :] * POS_ENCODE_W  # (L, D)

    # random-masking gather: one-hot (BlockSpec already selected this sample's ids)
    idsk = idsk_ref[0]                                                      # (len_keep, 1) int32
    selk = (idsk == jax.lax.broadcasted_iota(jnp.int32, (len_keep, L), 1)
            ).astype(jnp.float32)                                           # (len_keep, L)
    x_keep = jnp.dot(selk, emb, preferred_element_type=jnp.float32)         # (len_keep, D)

    cls_row = cls[...] + pos_v[0:1, :]                                      # (1, D)
    x = jnp.concatenate([cls_row, x_keep], axis=0)                          # (S_enc, D)

    for d in range(depth):
        x = _block(x, *(r[d] for r in e_blk), heads)
    lat = _layernorm(x, enorm_g[...], enorm_b[...])                         # (S_enc, D)

    # ---------------- decoder (latent never leaves VMEM) ----------------
    y = _mm(lat, dew[...]) + deb[...]                                        # (S_enc, Dd)
    kept = y[1:, :]                                                          # (len_keep, Dd)
    mt = jnp.broadcast_to(mtok[...], (L - len_keep, DEC_EMBED))
    x_all = jnp.concatenate([kept, mt], axis=0)                              # (L, Dd)

    idsr = idsr_ref[0]                                                       # (L, 1) int32
    selr = (idsr == jax.lax.broadcasted_iota(jnp.int32, (L, L), 1)
            ).astype(jnp.float32)                                            # (L, L)
    x_rest = jnp.dot(selr, x_all, preferred_element_type=jnp.float32)        # (L, Dd)

    xd = jnp.concatenate([y[0:1, :], x_rest], axis=0) + dpos[...]            # (L+1, Dd)
    for d in range(dec_depth):
        xd = _block(xd, *(r[d] for r in d_blk), dec_heads)
    xd = _layernorm(xd, dnorm_g[...], dnorm_b[...])
    xp = xd[1:, :]                                                            # (L, Dd) patch tokens

    # prediction head: lane-dense (L, 128) slab (columns 80..127 zero-padded)
    pred_ref[0] = _mm(xp, prw[...]) + prb[...]

    # ---------------- fused masked cross-entropy partial sums ----------------
    # Per-class (L, p*p) logit slabs keep the class reduction entirely elementwise.
    tgt = tgt_ref[0]                                                          # (L, p*p) int32, -1 = ignore
    logits = []
    for c in range(N_CLASSES):
        logits.append(_mm(xp, wc[c]) + bc[c])                                 # (L, p*p)
    mmax = logits[0]
    for c in range(1, N_CLASSES):
        mmax = jnp.maximum(mmax, logits[c])
    ssum = jnp.zeros_like(mmax)
    picked = jnp.zeros_like(mmax)
    for c in range(N_CLASSES):
        ssum = ssum + jnp.exp(logits[c] - mmax)
        picked = picked + jnp.where(tgt == c, logits[c], 0.0)
    lse = mmax + jnp.log(ssum)
    valid = (tgt >= 0).astype(jnp.float32)
    num = jnp.sum(jnp.sum((lse - picked) * valid, axis=1, keepdims=True),
                  axis=0, keepdims=True)                                      # (1, 1)
    den = jnp.sum(jnp.sum(valid, axis=1, keepdims=True), axis=0, keepdims=True)
    num_ref[0] = num
    den_ref[0] = den


# ----------------------------- pallas_call wrapper ---------------------------------
def _const_spec(shape):
    nd = len(shape)

    def imap(b):
        return (0,) * nd

    return pl.BlockSpec(shape, imap)


_BLOCK_KEYS = ('n1_g', 'n1_b', 'qkv_w', 'qkv_b', 'proj_w', 'proj_b',
               'n2_g', 'n2_b', 'fc1_w', 'fc1_b', 'fc2_w', 'fc2_b')


def mae_fused_call(patches, ids_keep3, ids_restore3, targets, params, len_keep):
    B = patches.shape[0]
    eb, db = params['enc_blocks'], params['dec_blocks']
    inputs = ([patches, ids_keep3, ids_restore3, targets,
               params['pe_w'], params['pe_b'], params['pos_embed'], params['cls_token']]
              + [eb[k] for k in _BLOCK_KEYS]
              + [params['norm_g'], params['norm_b'],
                 params['dec_embed_w'], params['dec_embed_b'],
                 params['mask_token'], params['dec_pos_embed']]
              + [db[k] for k in _BLOCK_KEYS]
              + [params['dec_norm_g'], params['dec_norm_b'],
                 params['dec_pred_w'], params['dec_pred_b'],
                 params['cls_pred_w'], params['cls_pred_b']])
    in_specs = ([pl.BlockSpec((1, L, CPP), lambda b: (b, 0, 0)),
                 pl.BlockSpec((1, len_keep, 1), lambda b: (b, 0, 0)),
                 pl.BlockSpec((1, L, 1), lambda b: (b, 0, 0)),
                 pl.BlockSpec((1, L, PP), lambda b: (b, 0, 0))]
                + [_const_spec(a.shape) for a in inputs[4:]])
    out_specs = [pl.BlockSpec((1, L, PAD), lambda b: (b, 0, 0)),
                 pl.BlockSpec((1, 1, 1), lambda b: (b, 0, 0)),
                 pl.BlockSpec((1, 1, 1), lambda b: (b, 0, 0))]
    out_shape = [jax.ShapeDtypeStruct((B, L, PAD), jnp.float32),
                 jax.ShapeDtypeStruct((B, 1, 1), jnp.float32),
                 jax.ShapeDtypeStruct((B, 1, 1), jnp.float32)]
    return pl.pallas_call(
        partial(_mae_kernel, len_keep=len_keep, depth=DEPTH, dec_depth=DEC_DEPTH,
                heads=HEADS, dec_heads=DEC_HEADS),
        grid=(B,),
        in_specs=in_specs,
        out_specs=out_specs,
        out_shape=out_shape,
        compiler_params=pltpu.CompilerParams(dimension_semantics=("parallel",)),
    )(*inputs)


# ----------------------------- parameter init -------------------------------------
def _stack_blocks(blocks):
    out = {}
    for name in blocks[0]:
        arr = jnp.stack([blk[name] for blk in blocks], axis=0)
        if arr.ndim == 2:                        # biases / norm params -> (depth, 1, X)
            arr = arr[:, None, :]
        out[name] = arr
    return out


def init_params(key):
    keys = jax.random.split(key, 64)
    kit = iter(keys)
    mmt = MATMUL_DTYPE

    def xavier(k, fan_in, fan_out):
        lim = math.sqrt(6.0 / (fan_in + fan_out))
        return jax.random.uniform(k, (fan_in, fan_out), jnp.float32, -lim, lim)

    def make_block(dim, hidden):
        return {
            'n1_g': jnp.ones((dim,), jnp.float32), 'n1_b': jnp.zeros((dim,), jnp.float32),
            'qkv_w': xavier(next(kit), dim, 3 * dim).astype(mmt),
            'qkv_b': jnp.zeros((3 * dim,), jnp.float32),
            'proj_w': xavier(next(kit), dim, dim).astype(mmt),
            'proj_b': jnp.zeros((dim,), jnp.float32),
            'n2_g': jnp.ones((dim,), jnp.float32), 'n2_b': jnp.zeros((dim,), jnp.float32),
            'fc1_w': xavier(next(kit), dim, hidden).astype(mmt),
            'fc1_b': jnp.zeros((hidden,), jnp.float32),
            'fc2_w': xavier(next(kit), hidden, dim).astype(mmt),
            'fc2_b': jnp.zeros((dim,), jnp.float32),
        }

    p = {}
    # patch embed (Conv2d(kernel=stride=patch) as matmul weight (C*p*p, D))
    p['pe_w'] = xavier(next(kit), CPP, EMBED).astype(mmt)
    p['pe_b'] = jnp.zeros((1, EMBED), jnp.float32)
    p['cls_token'] = 0.02 * jax.random.normal(next(kit), (1, EMBED), jnp.float32)
    p['mask_token'] = 0.02 * jax.random.normal(next(kit), (1, DEC_EMBED), jnp.float32)
    p['pos_embed'] = jnp.asarray(
        get_2d_sincos_pos_embed(EMBED, IMG // PATCH, cls_token=True), jnp.float32)
    p['dec_pos_embed'] = jnp.asarray(
        get_2d_sincos_pos_embed(DEC_EMBED, IMG // PATCH, cls_token=True), jnp.float32)
    p['enc_blocks'] = _stack_blocks(
        [make_block(EMBED, int(EMBED * MLP_RATIO)) for _ in range(DEPTH)])
    p['norm_g'] = jnp.ones((1, EMBED), jnp.float32)
    p['norm_b'] = jnp.zeros((1, EMBED), jnp.float32)
    # decoder embed (unpadded: latent stays in-kernel at EMBED width)
    p['dec_embed_w'] = xavier(next(kit), EMBED, DEC_EMBED).astype(mmt)
    p['dec_embed_b'] = jnp.zeros((1, DEC_EMBED), jnp.float32)
    p['dec_blocks'] = _stack_blocks(
        [make_block(DEC_EMBED, int(DEC_EMBED * MLP_RATIO)) for _ in range(DEC_DEPTH)])
    p['dec_norm_g'] = jnp.ones((1, DEC_EMBED), jnp.float32)
    p['dec_norm_b'] = jnp.zeros((1, DEC_EMBED), jnp.float32)
    # prediction head: output feature f = pix * N_CLASSES + c  (PyTorch Rearrange order)
    prw = xavier(next(kit), DEC_EMBED, PRED_DIM)
    prb = jnp.zeros((PRED_DIM,), jnp.float32)
    p['dec_pred_w'] = jnp.concatenate(
        [prw, jnp.zeros((DEC_EMBED, PAD - PRED_DIM), jnp.float32)], axis=1).astype(mmt)
    p['dec_pred_b'] = jnp.concatenate(
        [prb, jnp.zeros((PAD - PRED_DIM,), jnp.float32)])[None, :]
    # per-class pred weight/bias slabs for the fused CE epilogue
    p['cls_pred_w'] = jnp.stack(
        [prw[:, c::N_CLASSES] for c in range(N_CLASSES)], axis=0).astype(mmt)   # (C, Dd, p*p)
    p['cls_pred_b'] = jnp.stack(
        [prb[c::N_CLASSES] for c in range(N_CLASSES)], axis=0)[:, None, :]       # (C, 1, p*p)
    return p


# ----------------------------- model glue (plain JAX) ------------------------------
def patchify(imgs, p):
    # imgs: (N, 1, H, W) -> (N, L, p*p*1), matching torch einsum 'nchpwq->nhwpqc'
    N, C, H, W = imgs.shape
    h = w = H // p
    x = imgs.reshape(N, C, h, p, w, p)
    x = jnp.transpose(x, (0, 2, 4, 3, 5, 1))   # n h w p q c
    return x.reshape(N, h * w, p * p * C)


def im2col(imgs, p):
    # Conv im2col with channel-major patch vectors matching Conv2d weight (D, C, p, p)
    N, C, H, W = imgs.shape
    h = w = H // p
    x = imgs.reshape(N, C, h, p, w, p)
    x = jnp.transpose(x, (0, 2, 4, 1, 3, 5))   # n h w c p q
    return x.reshape(N, h * w, C * p * p)


def mae_forward(imgs, entropy, params, noise, mask_ratio=MASK_RATIO):
    # dist=None path of MAE.forward
    B = imgs.shape[0]
    patches_conv = im2col(imgs, PATCH)                               # (B, L, C*p*p)

    # random masking bookkeeping (per-sample argsort of noise) stays in JAX
    len_keep = int(L * PATCH_PERC_KEEP * (1 - mask_ratio))
    ids_shuffle = jnp.argsort(noise, axis=1).astype(jnp.int32)
    ids_restore = jnp.argsort(ids_shuffle, axis=1).astype(jnp.int32)
    ids_keep = ids_shuffle[:, :len_keep]
    mask = jnp.ones((B, L), jnp.float32).at[:, :len_keep].set(0.0)
    mask = jnp.take_along_axis(mask, ids_restore, axis=1)

    # masked CE targets (ignore_index=-1 where entropy > threshold)
    target = patchify(imgs, PATCH)                                   # (B, L, p*p)
    ent = patchify(entropy, PATCH)
    tgt = jnp.where(ent > ENTROPY_THR, -1.0, target).astype(jnp.int32)

    pred_pad, ce_num, ce_den = mae_fused_call(
        patches_conv, ids_keep[..., None], ids_restore[..., None], tgt, params, len_keep)

    pred = pred_pad[:, :, :PRED_DIM].reshape(B, L, PP, N_CLASSES)
    num = jnp.sum(ce_num)
    den = jnp.sum(ce_den)
    loss = num / jnp.maximum(den, 1.0)        # exact divide (mean over valid pixels)
    return loss, pred, mask


# ----------------------------- main ------------------------------------------------
if __name__ == "__main__":
    key = jax.random.PRNGKey(0)
    k_img, k_ent, k_noise, k_params = jax.random.split(key, 4)
    # imgs hold integer class labels (0..N_CLASSES-1) stored as floats, like the
    # segmentation targets this MAE variant reconstructs.
    imgs = jax.random.randint(k_img, (2, IN_CH, IMG, IMG), 0, N_CLASSES).astype(jnp.float32)
    entropy = jax.random.uniform(k_ent, (2, IN_CH, IMG, IMG), jnp.float32)
    noise = jax.random.uniform(k_noise, (2, L), jnp.float32)
    params = init_params(k_params)

    fwd = jax.jit(partial(mae_forward, mask_ratio=MASK_RATIO))
    loss, pred, mask = fwd(imgs, entropy, params, noise)
    jax.block_until_ready((loss, pred, mask))
    assert pred.shape == (2, L, PP, N_CLASSES)
    assert mask.shape == (2, L)
    assert loss.shape == ()
    print("KERNEL_OK")
</pallas_src>

<mosaic_0001>
module attributes {stable_mosaic.version = 11 : i64} {
  func.func @_mae_kernel(%arg0: i32, %arg1: memref<1x16x16xf32, #tpu.memory_space<vmem>>, %arg2: memref<1x4x1xi32, #tpu.memory_space<vmem>>, %arg3: memref<1x16x1xi32, #tpu.memory_space<vmem>>, %arg4: memref<1x16x16xi32, #tpu.memory_space<vmem>>, %arg5: memref<16x32xf32, #tpu.memory_space<vmem>>, %arg6: memref<1x32xf32, #tpu.memory_space<vmem>>, %arg7: memref<17x32xf32, #tpu.memory_space<vmem>>, %arg8: memref<1x32xf32, #tpu.memory_space<vmem>>, %arg9: memref<2x1x32xf32, #tpu.memory_space<vmem>>, %arg10: memref<2x1x32xf32, #tpu.memory_space<vmem>>, %arg11: memref<2x32x96xf32, #tpu.memory_space<vmem>>, %arg12: memref<2x1x96xf32, #tpu.memory_space<vmem>>, %arg13: memref<2x32x32xf32, #tpu.memory_space<vmem>>, %arg14: memref<2x1x32xf32, #tpu.memory_space<vmem>>, %arg15: memref<2x1x32xf32, #tpu.memory_space<vmem>>, %arg16: memref<2x1x32xf32, #tpu.memory_space<vmem>>, %arg17: memref<2x32x128xf32, #tpu.memory_space<vmem>>, %arg18: memref<2x1x128xf32, #tpu.memory_space<vmem>>, %arg19: memref<2x128x32xf32, #tpu.memory_space<vmem>>, %arg20: memref<2x1x32xf32, #tpu.memory_space<vmem>>, %arg21: memref<1x32xf32, #tpu.memory_space<vmem>>, %arg22: memref<1x32xf32, #tpu.memory_space<vmem>>, %arg23: memref<32x32xf32, #tpu.memory_space<vmem>>, %arg24: memref<1x32xf32, #tpu.memory_space<vmem>>, %arg25: memref<1x32xf32, #tpu.memory_space<vmem>>, %arg26: memref<17x32xf32, #tpu.memory_space<vmem>>, %arg27: memref<1x1x32xf32, #tpu.memory_space<vmem>>, %arg28: memref<1x1x32xf32, #tpu.memory_space<vmem>>, %arg29: memref<1x32x96xf32, #tpu.memory_space<vmem>>, %arg30: memref<1x1x96xf32, #tpu.memory_space<vmem>>, %arg31: memref<1x32x32xf32, #tpu.memory_space<vmem>>, %arg32: memref<1x1x32xf32, #tpu.memory_space<vmem>>, %arg33: memref<1x1x32xf32, #tpu.memory_space<vmem>>, %arg34: memref<1x1x32xf32, #tpu.memory_space<vmem>>, %arg35: memref<1x32x128xf32, #tpu.memory_space<vmem>>, %arg36: memref<1x1x128xf32, #tpu.memory_space<vmem>>, %arg37: memref<1x128x32xf32, #tpu.memory_space<vmem>>, %arg38: memref<1x1x32xf32, #tpu.memory_space<vmem>>, %arg39: memref<1x32xf32, #tpu.memory_space<vmem>>, %arg40: memref<1x32xf32, #tpu.memory_space<vmem>>, %arg41: memref<32x128xf32, #tpu.memory_space<vmem>>, %arg42: memref<1x128xf32, #tpu.memory_space<vmem>>, %arg43: memref<5x32x16xf32, #tpu.memory_space<vmem>>, %arg44: memref<5x1x16xf32, #tpu.memory_space<vmem>>, %arg45: memref<1x16x128xf32, #tpu.memory_space<vmem>>, %arg46: memref<1x1x1xf32, #tpu.memory_space<vmem>>, %arg47: memref<1x1x1xf32, #tpu.memory_space<vmem>>) attributes {dimension_semantics = [#tpu.dimension_semantics<parallel>], iteration_bounds = array<i64: 2>, scalar_prefetch = 0 : i64, scratch_operands = 0 : i64, tpu.core_type = #tpu.core_type<tc>, window_params = [{transform_indices = @transform_0, window_bounds = array<i64: 1, 16, 16>}, {transform_indices = @transform_1, window_bounds = array<i64: 1, 4, 1>}, {transform_indices = @transform_2, window_bounds = array<i64: 1, 16, 1>}, {transform_indices = @transform_3, window_bounds = array<i64: 1, 16, 16>}, {pipeline_mode = #tpu.pipeline_mode<synchronous>, transform_indices = @transform_4, window_bounds = array<i64: 16, 32>}, {pipeline_mode = #tpu.pipeline_mode<synchronous>, transform_indices = @transform_5, window_bounds = array<i64: 1, 32>}, {pipeline_mode = #tpu.pipeline_mode<synchronous>, transform_indices = @transform_6, window_bounds = array<i64: 17, 32>}, {pipeline_mode = #tpu.pipeline_mode<synchronous>, transform_indices = @transform_7, window_bounds = array<i64: 1, 32>}, {pipeline_mode = #tpu.pipeline_mode<synchronous>, transform_indices = @transform_8, window_bounds = array<i64: 2, 1, 32>}, {pipeline_mode = #tpu.pipeline_mode<synchronous>, transform_indices = @transform_9, window_bounds = array<i64: 2, 1, 32>}, {pipeline_mode = #tpu.pipeline_mode<synchronous>, transform_indices = @transform_10, window_bounds = array<i64: 2, 32, 96>}, {pipeline_mode = #tpu.pipeline_mode<synchronous>, transform_indices = @transform_11, window_bounds = array<i64: 2, 1, 96>}, {pipeline_mode = #tpu.pipeline_mode<synchronous>, transform_indices = @transform_12, window_bounds = array<i64: 2, 32, 32>}, {pipeline_mode = #tpu.pipeline_mode<synchronous>, transform_indices = @transform_13, window_bounds = array<i64: 2, 1, 32>}, {pipeline_mode = #tpu.pipeline_mode<synchronous>, transform_indices = @transform_14, window_bounds = array<i64: 2, 1, 32>}, {pipeline_mode = #tpu.pipeline_mode<synchronous>, transform_indices = @transform_15, window_bounds = array<i64: 2, 1, 32>}, {pipeline_mode = #tpu.pipeline_mode<synchronous>, transform_indices = @transform_16, window_bounds = array<i64: 2, 32, 128>}, {pipeline_mode = #tpu.pipeline_mode<synchronous>, transform_indices = @transform_17, window_bounds = array<i64: 2, 1, 128>}, {pipeline_mode = #tpu.pipeline_mode<synchronous>, transform_indices = @transform_18, window_bounds = array<i64: 2, 128, 32>}, {pipeline_mode = #tpu.pipeline_mode<synchronous>, transform_indices = @transform_19, window_bounds = array<i64: 2, 1, 32>}, {pipeline_mode = #tpu.pipeline_mode<synchronous>, transform_indices = @transform_20, window_bounds = array<i64: 1, 32>}, {pipeline_mode = #tpu.pipeline_mode<synchronous>, transform_indices = @transform_21, window_bounds = array<i64: 1, 32>}, {pipeline_mode = #tpu.pipeline_mode<synchronous>, transform_indices = @transform_22, window_bounds = array<i64: 32, 32>}, {pipeline_mode = #tpu.pipeline_mode<synchronous>, transform_indices = @transform_23, window_bounds = array<i64: 1, 32>}, {pipeline_mode = #tpu.pipeline_mode<synchronous>, transform_indices = @transform_24, window_bounds = array<i64: 1, 32>}, {pipeline_mode = #tpu.pipeline_mode<synchronous>, transform_indices = @transform_25, window_bounds = array<i64: 17, 32>}, {pipeline_mode = #tpu.pipeline_mode<synchronous>, transform_indices = @transform_26, window_bounds = array<i64: 1, 1, 32>}, {pipeline_mode = #tpu.pipeline_mode<synchronous>, transform_indices = @transform_27, window_bounds = array<i64: 1, 1, 32>}, {pipeline_mode = #tpu.pipeline_mode<synchronous>, transform_indices = @transform_28, window_bounds = array<i64: 1, 32, 96>}, {pipeline_mode = #tpu.pipeline_mode<synchronous>, transform_indices = @transform_29, window_bounds = array<i64: 1, 1, 96>}, {pipeline_mode = #tpu.pipeline_mode<synchronous>, transform_indices = @transform_30, window_bounds = array<i64: 1, 32, 32>}, {pipeline_mode = #tpu.pipeline_mode<synchronous>, transform_indices = @transform_31, window_bounds = array<i64: 1, 1, 32>}, {pipeline_mode = #tpu.pipeline_mode<synchronous>, transform_indices = @transform_32, window_bounds = array<i64: 1, 1, 32>}, {pipeline_mode = #tpu.pipeline_mode<synchronous>, transform_indices = @transform_33, window_bounds = array<i64: 1, 1, 32>}, {pipeline_mode = #tpu.pipeline_mode<synchronous>, transform_indices = @transform_34, window_bounds = array<i64: 1, 32, 128>}, {pipeline_mode = #tpu.pipeline_mode<synchronous>, transform_indices = @transform_35, window_bounds = array<i64: 1, 1, 128>}, {pipeline_mode = #tpu.pipeline_mode<synchronous>, transform_indices = @transform_36, window_bounds = array<i64: 1, 128, 32>}, {pipeline_mode = #tpu.pipeline_mode<synchronous>, transform_indices = @transform_37, window_bounds = array<i64: 1, 1, 32>}, {pipeline_mode = #tpu.pipeline_mode<synchronous>, transform_indices = @transform_38, window_bounds = array<i64: 1, 32>}, {pipeline_mode = #tpu.pipeline_mode<synchronous>, transform_indices = @transform_39, window_bounds = array<i64: 1, 32>}, {pipeline_mode = #tpu.pipeline_mode<synchronous>, transform_indices = @transform_40, window_bounds = array<i64: 32, 128>}, {pipeline_mode = #tpu.pipeline_mode<synchronous>, transform_indices = @transform_41, window_bounds = array<i64: 1, 128>}, {pipeline_mode = #tpu.pipeline_mode<synchronous>, transform_indices = @transform_42, window_bounds = array<i64: 5, 32, 16>}, {pipeline_mode = #tpu.pipeline_mode<synchronous>, transform_indices = @transform_43, window_bounds = array<i64: 5, 1, 16>}, {transform_indices = @transform_44, window_bounds = array<i64: 1, 16, 128>}, {transform_indices = @transform_45, window_bounds = array<i64: 1, 1, 1>}, {transform_indices = @transform_46, window_bounds = array<i64: 1, 1, 1>}]} {
    %c0 = arith.constant 0 : index
    %c0_0 = arith.constant 0 : index
    %0 = vector.load %arg7[%c0, %c0_0] : memref<17x32xf32, #tpu.memory_space<vmem>>, vector<17x32xf32>
    %c0_1 = arith.constant 0 : index
    %c0_2 = arith.constant 0 : index
    %c0_3 = arith.constant 0 : index
    %1 = vector.load %arg1[%c0_1, %c0_2, %c0_3] : memref<1x16x16xf32, #tpu.memory_space<vmem>>, vector<1x16x16xf32>
    %2 = vector.shape_cast %1 : vector<1x16x16xf32> to vector<16x16xf32>
    %c0_4 = arith.constant 0 : index
    %c0_5 = arith.constant 0 : index
    %3 = vector.load %arg5[%c0_4, %c0_5] : memref<16x32xf32, #tpu.memory_space<vmem>>, vector<16x32xf32>
    %cst = arith.constant dense<0.000000e+00> : vector<16x32xf32>
    %4 = tpu.matmul %2, %3, %cst {dimension_numbers = #tpu.dot_dimension_numbers<[1], [0], [0], [1], [0, 0, 1, 1], [], []>} : vector<16x16xf32>, vector<16x32xf32>, vector<16x32xf32> -> vector<16x32xf32>
    %c0_6 = arith.constant 0 : index
    %c0_7 = arith.constant 0 : index
    %5 = vector.load %arg6[%c0_6, %c0_7] : memref<1x32xf32, #tpu.memory_space<vmem>>, vector<1x32xf32>
    %6 = vector.broadcast %5 : vector<1x32xf32> to vector<16x32xf32>
    %7 = arith.addf %4, %6 : vector<16x32xf32>
    %8 = vector.extract_strided_slice %0 {offsets = [1, 0], sizes = [16, 32], strides = [1, 1]} : vector<17x32xf32> to vector<16x32xf32>
    %cst_8 = arith.constant 1.000000e+00 : f32
    %9 = vector.broadcast %cst_8 : f32 to vector<16x32xf32>
    %10 = arith.mulf %8, %9 : vector<16x32xf32>
    %11 = arith.addf %7, %10 : vector<16x32xf32>
    %c0_9 = arith.constant 0 : index
    %c0_10 = arith.constant 0 : index
    %c0_11 = arith.constant 0 : index
    %12 = vector.load %arg2[%c0_9, %c0_10, %c0_11] : memref<1x4x1xi32, #tpu.memory_space<vmem>>, vector<1x4x1xi32>
    %13 = vector.shape_cast %12 : vector<1x4x1xi32> to vector<4x1xi32>
    %14 = tpu.iota {dimensions = array<i32: 1>} : vector<4x16xi32>
    %15 = vector.broadcast %13 : vector<4x1xi32> to vector<4x16xi32>
    %16 = arith.cmpi eq, %15, %14 : vector<4x16xi32>
    %17 = arith.extui %16 : vector<4x16xi1> to vector<4x16xi32>
    %18 = arith.sitofp %17 : vector<4x16xi32> to vector<4x16xf32>
    %cst_12 = arith.constant dense<0.000000e+00> : vector<4x32xf32>
    %19 = tpu.matmul %18, %11, %cst_12 {dimension_numbers = #tpu.dot_dimension_numbers<[1], [0], [0], [1], [0, 0, 1, 1], [], []>} : vector<4x16xf32>, vector<16x32xf32>, vector<4x32xf32> -> vector<4x32xf32>
    %c0_13 = arith.constant 0 : index
    %c0_14 = arith.constant 0 : index
    %20 = vector.load %arg8[%c0_13, %c0_14] : memref<1x32xf32, #tpu.memory_space<vmem>>, vector<1x32xf32>
    %21 = vector.extract_strided_slice %0 {offsets = [0, 0], sizes = [1, 32], strides = [1, 1]} : vector<17x32xf32> to vector<1x32xf32>
    %22 = arith.addf %20, %21 : vector<1x32xf32>
    %23 = tpu.concatenate %22, %19 in 0 : vector<1x32xf32>, vector<4x32xf32> -> vector<5x32xf32>
    %c0_15 = arith.constant 0 : index
    %c0_16 = arith.constant 0 : index
    %c0_17 = arith.constant 0 : index
    %24 = vector.load %arg9[%c0_15, %c0_16, %c0_17] : memref<2x1x32xf32, #tpu.memory_space<vmem>>, vector<1x1x32xf32>
    %25 = vector.shape_cast %24 : vector<1x1x32xf32> to vector<1x32xf32>
    %c0_18 = arith.constant 0 : index
    %c0_19 = arith.constant 0 : index
    %c0_20 = arith.constant 0 : index
    %26 = vector.load %arg10[%c0_18, %c0_19, %c0_20] : memref<2x1x32xf32, #tpu.memory_space<vmem>>, vector<1x1x32xf32>
    %27 = vector.shape_cast %26 : vector<1x1x32xf32> to vector<1x32xf32>
    %c0_21 = arith.constant 0 : index
    %c0_22 = arith.constant 0 : index
    %c0_23 = arith.constant 0 : index
    %28 = vector.load %arg11[%c0_21, %c0_22, %c0_23] : memref<2x32x96xf32, #tpu.memory_space<vmem>>, vector<1x32x96xf32>
    %29 = vector.shape_cast %28 : vector<1x32x96xf32> to vector<32x96xf32>
    %c0_24 = arith.constant 0 : index
    %c0_25 = arith.constant 0 : index
    %c0_26 = arith.constant 0 : index
    %30 = vector.load %arg12[%c0_24, %c0_25, %c0_26] : memref<2x1x96xf32, #tpu.memory_space<vmem>>, vector<1x1x96xf32>
    %31 = vector.shape_cast %30 : vector<1x1x96xf32> to vector<1x96xf32>
    %c0_27 = arith.constant 0 : index
    %c0_28 = arith.constant 0 : index
    %c0_29 = arith.constant 0 : index
    %32 = vector.load %arg13[%c0_27, %c0_28, %c0_29] : memref<2x32x32xf32, #tpu.memory_space<vmem>>, vector<1x32x32xf32>
    %33 = vector.shape_cast %32 : vector<1x32x32xf32> to vector<32x32xf32>
    %c0_30 = arith.constant 0 : index
    %c0_31 = arith.constant 0 : index
    %c0_32 = arith.constant 0 : index
    %34 = vector.load %arg14[%c0_30, %c0_31, %c0_32] : memref<2x1x32xf32, #tpu.memory_space<vmem>>, vector<1x1x32xf32>
    %35 = vector.shape_cast %34 : vector<1x1x32xf32> to vector<1x32xf32>
    %c0_33 = arith.constant 0 : index
    %c0_34 = arith.constant 0 : index
    %c0_35 = arith.constant 0 : index
    %36 = vector.load %arg15[%c0_33, %c0_34, %c0_35] : memref<2x1x32xf32, #tpu.memory_space<vmem>>, vector<1x1x32xf32>
    %37 = vector.shape_cast %36 : vector<1x1x32xf32> to vector<1x32xf32>
    %c0_36 = arith.constant 0 : index
    %c0_37 = arith.constant 0 : index
    %c0_38 = arith.constant 0 : index
    %38 = vector.load %arg16[%c0_36, %c0_37, %c0_38] : memref<2x1x32xf32, #tpu.memory_space<vmem>>, vector<1x1x32xf32>
    %39 = vector.shape_cast %38 : vector<1x1x32xf32> to vector<1x32xf32>
    %c0_39 = arith.constant 0 : index
    %c0_40 = arith.constant 0 : index
    %c0_41 = arith.constant 0 : index
    %40 = vector.load %arg17[%c0_39, %c0_40, %c0_41] : memref<2x32x128xf32, #tpu.memory_space<vmem>>, vector<1x32x128xf32>
    %41 = vector.shape_cast %40 : vector<1x32x128xf32> to vector<32x128xf32>
    %c0_42 = arith.constant 0 : index
    %c0_43 = arith.constant 0 : index
    %c0_44 = arith.constant 0 : index
    %42 = vector.load %arg18[%c0_42, %c0_43, %c0_44] : memref<2x1x128xf32, #tpu.memory_space<vmem>>, vector<1x1x128xf32>
    %43 = vector.shape_cast %42 : vector<1x1x128xf32> to vector<1x128xf32>
    %c0_45 = arith.constant 0 : index
    %c0_46 = arith.constant 0 : index
    %c0_47 = arith.constant 0 : index
    %44 = vector.load %arg19[%c0_45, %c0_46, %c0_47] : memref<2x128x32xf32, #tpu.memory_space<vmem>>, vector<1x128x32xf32>
    %45 = vector.shape_cast %44 : vector<1x128x32xf32> to vector<128x32xf32>
    %c0_48 = arith.constant 0 : index
    %c0_49 = arith.constant 0 : index
    %c0_50 = arith.constant 0 : index
    %46 = vector.load %arg20[%c0_48, %c0_49, %c0_50] : memref<2x1x32xf32, #tpu.memory_space<vmem>>, vector<1x1x32xf32>
    %47 = vector.shape_cast %46 : vector<1x1x32xf32> to vector<1x32xf32>
    %cst_51 = arith.constant dense<0.000000e+00> : vector<5xf32>
    %48 = vector.multi_reduction <add>, %23, %cst_51 [1] : vector<5x32xf32> to vector<5xf32>
    %49 = vector.shape_cast %48 : vector<5xf32> to vector<5x1xf32>
    %cst_52 = arith.constant 3.200000e+01 : f32
    %50 = vector.broadcast %cst_52 : f32 to vector<5x1xf32>
    %51 = arith.divf %49, %50 : vector<5x1xf32>
    %52 = arith.mulf %23, %23 : vector<5x32xf32>
    %cst_53 = arith.constant dense<0.000000e+00> : vector<5xf32>
    %53 = vector.multi_reduction <add>, %52, %cst_53 [1] : vector<5x32xf32> to vector<5xf32>
    %54 = vector.shape_cast %53 : vector<5xf32> to vector<5x1xf32>
    %cst_54 = arith.constant 3.200000e+01 : f32
    %55 = vector.broadcast %cst_54 : f32 to vector<5x1xf32>
    %56 = arith.divf %54, %55 : vector<5x1xf32>
    %57 = arith.mulf %51, %51 : vector<5x1xf32>
    %58 = arith.subf %56, %57 : vector<5x1xf32>
    %59 = vector.broadcast %51 : vector<5x1xf32> to vector<5x32xf32>
    %60 = arith.subf %23, %59 : vector<5x32xf32>
    %cst_55 = arith.constant 9.99999974E-6 : f32
    %61 = vector.broadcast %cst_55 : f32 to vector<5x1xf32>
    %62 = arith.addf %58, %61 : vector<5x1xf32>
    %63 = math.rsqrt %62 : vector<5x1xf32>
    %64 = vector.broadcast %63 : vector<5x1xf32> to vector<5x32xf32>
    %65 = arith.mulf %60, %64 : vector<5x32xf32>
    %66 = vector.broadcast %25 : vector<1x32xf32> to vector<5x32xf32>
    %67 = arith.mulf %65, %66 : vector<5x32xf32>
    %68 = vector.broadcast %27 : vector<1x32xf32> to vector<5x32xf32>
    %69 = arith.addf %67, %68 : vector<5x32xf32>
    %cst_56 = arith.constant dense<0.000000e+00> : vector<5x96xf32>
    %70 = tpu.matmul %69, %29, %cst_56 {dimension_numbers = #tpu.dot_dimension_numbers<[1], [0], [0], [1], [0, 0, 1, 1], [], []>} : vector<5x32xf32>, vector<32x96xf32>, vector<5x96xf32> -> vector<5x96xf32>
    %71 = vector.broadcast %31 : vector<1x96xf32> to vector<5x96xf32>
    %72 = arith.addf %70, %71 : vector<5x96xf32>
    %cst_57 = arith.constant 0.000000e+00 : f32
    %73 = vector.broadcast %cst_57 : f32 to vector<5x32xf32>
    %74 = vector.extract_strided_slice %72 {offsets = [0, 0], sizes = [5, 8], strides = [1, 1]} : vector<5x96xf32> to vector<5x8xf32>
    %75 = vector.extract_strided_slice %72 {offsets = [0, 32], sizes = [5, 8], strides = [1, 1]} : vector<5x96xf32> to vector<5x8xf32>
    %76 = vector.extract_strided_slice %72 {offsets = [0, 64], sizes = [5, 8], strides = [1, 1]} : vector<5x96xf32> to vector<5x8xf32>
    %cst_58 = arith.constant dense<0.000000e+00> : vector<5x5xf32>
    %77 = tpu.matmul %74, %75, %cst_58 {dimension_numbers = #tpu.dot_dimension_numbers<[1], [1], [0], [0], [0, 0, 1, 0], [], []>} : vector<5x8xf32>, vector<5x8xf32>, vector<5x5xf32> -> vector<5x5xf32>
    %cst_59 = arith.constant 0.353553385 : f32
    %78 = vector.broadcast %cst_59 : f32 to vector<5x5xf32>
    %79 = arith.mulf %77, %78 : vector<5x5xf32>
    %cst_60 = arith.constant dense<0xFF800000> : vector<5xf32>
    %80 = vector.multi_reduction <maximumf>, %79, %cst_60 [1] : vector<5x5xf32> to vector<5xf32>
    %81 = vector.shape_cast %80 : vector<5xf32> to vector<5x1xf32>
    %82 = vector.broadcast %81 : vector<5x1xf32> to vector<5x5xf32>
    %83 = arith.subf %79, %82 : vector<5x5xf32>
    %84 = math.exp %83 : vector<5x5xf32>
    %cst_61 = arith.constant dense<0.000000e+00> : vector<5xf32>
    %85 = vector.multi_reduction <add>, %84, %cst_61 [1] : vector<5x5xf32> to vector<5xf32>
    %86 = vector.shape_cast %85 : vector<5xf32> to vector<5x1xf32>
    %87 = tpu.reciprocal %86 {approx = true} : vector<5x1xf32> -> vector<5x1xf32>
    %88 = vector.broadcast %87 : vector<5x1xf32> to vector<5x5xf32>
    %89 = arith.mulf %84, %88 : vector<5x5xf32>
    %cst_62 = arith.constant dense<0.000000e+00> : vector<5x8xf32>
    %90 = tpu.matmul %89, %76, %cst_62 {dimension_numbers = #tpu.dot_dimension_numbers<[1], [0], [0], [1], [0, 0, 1, 1], [], []>} : vector<5x5xf32>, vector<5x8xf32>, vector<5x8xf32> -> vector<5x8xf32>
    %91 = vector.extract_strided_slice %33 {offsets = [0, 0], sizes = [8, 32], strides = [1, 1]} : vector<32x32xf32> to vector<8x32xf32>
    %cst_63 = arith.constant dense<0.000000e+00> : vector<5x32xf32>
    %92 = tpu.matmul %90, %91, %cst_63 {dimension_numbers = #tpu.dot_dimension_numbers<[1], [0], [0], [1], [0, 0, 1, 1], [], []>} : vector<5x8xf32>, vector<8x32xf32>, vector<5x32xf32> -> vector<5x32xf32>
    %93 = arith.addf %73, %92 : vector<5x32xf32>
    %94 = vector.extract_strided_slice %72 {offsets = [0, 8], sizes = [5, 8], strides = [1, 1]} : vector<5x96xf32> to vector<5x8xf32>
    %95 = vector.extract_strided_slice %72 {offsets = [0, 40], sizes = [5, 8], strides = [1, 1]} : vector<5x96xf32> to vector<5x8xf32>
    %96 = vector.extract_strided_slice %72 {offsets = [0, 72], sizes = [5, 8], strides = [1, 1]} : vector<5x96xf32> to vector<5x8xf32>
    %cst_64 = arith.constant dense<0.000000e+00> : vector<5x5xf32>
    %97 = tpu.matmul %94, %95, %cst_64 {dimension_numbers = #tpu.dot_dimension_numbers<[1], [1], [0], [0], [0, 0, 1, 0], [], []>} : vector<5x8xf32>, vector<5x8xf32>, vector<5x5xf32> -> vector<5x5xf32>
    %cst_65 = arith.constant 0.353553385 : f32
    %98 = vector.broadcast %cst_65 : f32 to vector<5x5xf32>
    %99 = arith.mulf %97, %98 : vector<5x5xf32>
    %cst_66 = arith.constant dense<0xFF800000> : vector<5xf32>
    %100 = vector.multi_reduction <maximumf>, %99, %cst_66 [1] : vector<5x5xf32> to vector<5xf32>
    %101 = vector.shape_cast %100 : vector<5xf32> to vector<5x1xf32>
    %102 = vector.broadcast %101 : vector<5x1xf32> to vector<5x5xf32>
    %103 = arith.subf %99, %102 : vector<5x5xf32>
    %104 = math.exp %103 : vector<5x5xf32>
    %cst_67 = arith.constant dense<0.000000e+00> : vector<5xf32>
    %105 = vector.multi_reduction <add>, %104, %cst_67 [1] : vector<5x5xf32> to vector<5xf32>
    %106 = vector.shape_cast %105 : vector<5xf32> to vector<5x1xf32>
    %107 = tpu.reciprocal %106 {approx = true} : vector<5x1xf32> -> vector<5x1xf32>
    %108 = vector.broadcast %107 : vector<5x1xf32> to vector<5x5xf32>
    %109 = arith.mulf %104, %108 : vector<5x5xf32>
    %cst_68 = arith.constant dense<0.000000e+00> : vector<5x8xf32>
    %110 = tpu.matmul %109, %96, %cst_68 {dimension_numbers = #tpu.dot_dimension_numbers<[1], [0], [0], [1], [0, 0, 1, 1], [], []>} : vector<5x5xf32>, vector<5x8xf32>, vector<5x8xf32> -> vector<5x8xf32>
    %111 = vector.extract_strided_slice %33 {offsets = [8, 0], sizes = [8, 32], strides = [1, 1]} : vector<32x32xf32> to vector<8x32xf32>
    %cst_69 = arith.constant dense<0.000000e+00> : vector<5x32xf32>
    %112 = tpu.matmul %110, %111, %cst_69 {dimension_numbers = #tpu.dot_dimension_numbers<[1], [0], [0], [1], [0, 0, 1, 1], [], []>} : vector<5x8xf32>, vector<8x32xf32>, vector<5x32xf32> -> vector<5x32xf32>
    %113 = arith.addf %93, %112 : vector<5x32xf32>
    %114 = vector.extract_strided_slice %72 {offsets = [0, 16], sizes = [5, 8], strides = [1, 1]} : vector<5x96xf32> to vector<5x8xf32>
    %115 = vector.extract_strided_slice %72 {offsets = [0, 48], sizes = [5, 8], strides = [1, 1]} : vector<5x96xf32> to vector<5x8xf32>
    %116 = vector.extract_strided_slice %72 {offsets = [0, 80], sizes = [5, 8], strides = [1, 1]} : vector<5x96xf32> to vector<5x8xf32>
    %cst_70 = arith.constant dense<0.000000e+00> : vector<5x5xf32>
    %117 = tpu.matmul %114, %115, %cst_70 {dimension_numbers = #tpu.dot_dimension_numbers<[1], [1], [0], [0], [0, 0, 1, 0], [], []>} : vector<5x8xf32>, vector<5x8xf32>, vector<5x5xf32> -> vector<5x5xf32>
    %cst_71 = arith.constant 0.353553385 : f32
    %118 = vector.broadcast %cst_71 : f32 to vector<5x5xf32>
    %119 = arith.mulf %117, %118 : vector<5x5xf32>
    %cst_72 = arith.constant dense<0xFF800000> : vector<5xf32>
    %120 = vector.multi_reduction <maximumf>, %119, %cst_72 [1] : vector<5x5xf32> to vector<5xf32>
    %121 = vector.shape_cast %120 : vector<5xf32> to vector<5x1xf32>
    %122 = vector.broadcast %121 : vector<5x1xf32> to vector<5x5xf32>
    %123 = arith.subf %119, %122 : vector<5x5xf32>
    %124 = math.exp %123 : vector<5x5xf32>
    %cst_73 = arith.constant dense<0.000000e+00> : vector<5xf32>
    %125 = vector.multi_reduction <add>, %124, %cst_73 [1] : vector<5x5xf32> to vector<5xf32>
    %126 = vector.shape_cast %125 : vector<5xf32> to vector<5x1xf32>
    %127 = tpu.reciprocal %126 {approx = true} : vector<5x1xf32> -> vector<5x1xf32>
    %128 = vector.broadcast %127 : vector<5x1xf32> to vector<5x5xf32>
    %129 = arith.mulf %124, %128 : vector<5x5xf32>
    %cst_74 = arith.constant dense<0.000000e+00> : vector<5x8xf32>
    %130 = tpu.matmul %129, %116, %cst_74 {dimension_numbers = #tpu.dot_dimension_numbers<[1], [0], [0], [1], [0, 0, 1, 1], [], []>} : vector<5x5xf32>, vector<5x8xf32>, vector<5x8xf32> -> vector<5x8xf32>
    %131 = vector.extract_strided_slice %33 {offsets = [16, 0], sizes = [8, 32], strides = [1, 1]} : vector<32x32xf32> to vector<8x32xf32>
    %cst_75 = arith.constant dense<0.000000e+00> : vector<5x32xf32>
    %132 = tpu.matmul %130, %131, %cst_75 {dimension_numbers = #tpu.dot_dimension_numbers<[1], [0], [0], [1], [0, 0, 1, 1], [], []>} : vector<5x8xf32>, vector<8x32xf32>, vector<5x32xf32> -> vector<5x32xf32>
    %133 = arith.addf %113, %132 : vector<5x32xf32>
    %134 = vector.extract_strided_slice %72 {offsets = [0, 24], sizes = [5, 8], strides = [1, 1]} : vector<5x96xf32> to vector<5x8xf32>
    %135 = vector.extract_strided_slice %72 {offsets = [0, 56], sizes = [5, 8], strides = [1, 1]} : vector<5x96xf32> to vector<5x8xf32>
    %136 = vector.extract_strided_slice %72 {offsets = [0, 88], sizes = [5, 8], strides = [1, 1]} : vector<5x96xf32> to vector<5x8xf32>
    %cst_76 = arith.constant dense<0.000000e+00> : vector<5x5xf32>
    %137 = tpu.matmul %134, %135, %cst_76 {dimension_numbers = #tpu.dot_dimension_numbers<[1], [1], [0], [0], [0, 0, 1, 0], [], []>} : vector<5x8xf32>, vector<5x8xf32>, vector<5x5xf32> -> vector<5x5xf32>
    %cst_77 = arith.constant 0.353553385 : f32
    %138 = vector.broadcast %cst_77 : f32 to vector<5x5xf32>
    %139 = arith.mulf %137, %138 : vector<5x5xf32>
    %cst_78 = arith.constant dense<0xFF800000> : vector<5xf32>
    %140 = vector.multi_reduction <maximumf>, %139, %cst_78 [1] : vector<5x5xf32> to vector<5xf32>
    %141 = vector.shape_cast %140 : vector<5xf32> to vector<5x1xf32>
    %142 = vector.broadcast %141 : vector<5x1xf32> to vector<5x5xf32>
    %143 = arith.subf %139, %142 : vector<5x5xf32>
    %144 = math.exp %143 : vector<5x5xf32>
    %cst_79 = arith.constant dense<0.000000e+00> : vector<5xf32>
    %145 = vector.multi_reduction <add>, %144, %cst_79 [1] : vector<5x5xf32> to vector<5xf32>
    %146 = vector.shape_cast %145 : vector<5xf32> to vector<5x1xf32>
    %147 = tpu.reciprocal %146 {approx = true} : vector<5x1xf32> -> vector<5x1xf32>
    %148 = vector.broadcast %147 : vector<5x1xf32> to vector<5x5xf32>
    %149 = arith.mulf %144, %148 : vector<5x5xf32>
    %cst_80 = arith.constant dense<0.000000e+00> : vector<5x8xf32>
    %150 = tpu.matmul %149, %136, %cst_80 {dimension_numbers = #tpu.dot_dimension_numbers<[1], [0], [0], [1], [0, 0, 1, 1], [], []>} : vector<5x5xf32>, vector<5x8xf32>, vector<5x8xf32> -> vector<5x8xf32>
    %151 = vector.extract_strided_slice %33 {offsets = [24, 0], sizes = [8, 32], strides = [1, 1]} : vector<32x32xf32> to vector<8x32xf32>
    %cst_81 = arith.constant dense<0.000000e+00> : vector<5x32xf32>
    %152 = tpu.matmul %150, %151, %cst_81 {dimension_numbers = #tpu.dot_dimension_numbers<[1], [0], [0], [1], [0, 0, 1, 1], [], []>} : vector<5x8xf32>, vector<8x32xf32>, vector<5x32xf32> -> vector<5x32xf32>
    %153 = arith.addf %133, %152 : vector<5x32xf32>
    %154 = arith.addf %23, %153 : vector<5x32xf32>
    %155 = vector.broadcast %35 : vector<1x32xf32> to vector<5x32xf32>
    %156 = arith.addf %154, %155 : vector<5x32xf32>
    %cst_82 = arith.constant dense<0.000000e+00> : vector<5xf32>
    %157 = vector.multi_reduction <add>, %156, %cst_82 [1] : vector<5x32xf32> to vector<5xf32>
    %158 = vector.shape_cast %157 : vector<5xf32> to vector<5x1xf32>
    %cst_83 = arith.constant 3.200000e+01 : f32
    %159 = vector.broadcast %cst_83 : f32 to vector<5x1xf32>
    %160 = arith.divf %158, %159 : vector<5x1xf32>
    %161 = arith.mulf %156, %156 : vector<5x32xf32>
    %cst_84 = arith.constant dense<0.000000e+00> : vector<5xf32>
    %162 = vector.multi_reduction <add>, %161, %cst_84 [1] : vector<5x32xf32> to vector<5xf32>
    %163 = vector.shape_cast %162 : vector<5xf32> to vector<5x1xf32>
    %cst_85 = arith.constant 3.200000e+01 : f32
    %164 = vector.broadcast %cst_85 : f32 to vector<5x1xf32>
    %165 = arith.divf %163, %164 : vector<5x1xf32>
    %166 = arith.mulf %160, %160 : vector<5x1xf32>
    %167 = arith.subf %165, %166 : vector<5x1xf32>
    %168 = vector.broadcast %160 : vector<5x1xf32> to vector<5x32xf32>
    %169 = arith.subf %156, %168 : vector<5x32xf32>
    %cst_86 = arith.constant 9.99999974E-6 : f32
    %170 = vector.broadcast %cst_86 : f32 to vector<5x1xf32>
    %171 = arith.addf %167, %170 : vector<5x1xf32>
    %172 = math.rsqrt %171 : vector<5x1xf32>
    %173 = vector.broadcast %172 : vector<5x1xf32> to vector<5x32xf32>
    %174 = arith.mulf %169, %173 : vector<5x32xf32>
    %175 = vector.broadcast %37 : vector<1x32xf32> to vector<5x32xf32>
    %176 = arith.mulf %174, %175 : vector<5x32xf32>
    %177 = vector.broadcast %39 : vector<1x32xf32> to vector<5x32xf32>
    %178 = arith.addf %176, %177 : vector<5x32xf32>
    %cst_87 = arith.constant dense<0.000000e+00> : vector<5x128xf32>
    %179 = tpu.matmul %178, %41, %cst_87 {dimension_numbers = #tpu.dot_dimension_numbers<[1], [0], [0], [1], [0, 0, 1, 1], [], []>} : vector<5x32xf32>, vector<32x128xf32>, vector<5x128xf32> -> vector<5x128xf32>
    %180 = vector.broadcast %43 : vector<1x128xf32> to vector<5x128xf32>
    %181 = arith.addf %179, %180 : vector<5x128xf32>
    %cst_88 = arith.constant 5.000000e-01 : f32
    %182 = vector.broadcast %cst_88 : f32 to vector<5x128xf32>
    %183 = arith.mulf %182, %181 : vector<5x128xf32>
    %cst_89 = arith.constant 4.471500e-02 : f32
    %184 = vector.broadcast %cst_89 : f32 to vector<5x128xf32>
    %185 = arith.mulf %184, %181 : vector<5x128xf32>
    %186 = arith.mulf %185, %181 : vector<5x128xf32>
    %187 = arith.mulf %186, %181 : vector<5x128xf32>
    %188 = arith.addf %181, %187 : vector<5x128xf32>
    %cst_90 = arith.constant 0.797884583 : f32
    %189 = vector.broadcast %cst_90 : f32 to vector<5x128xf32>
    %190 = arith.mulf %189, %188 : vector<5x128xf32>
    %191 = math.tanh %190 : vector<5x128xf32>
    %cst_91 = arith.constant 1.000000e+00 : f32
    %192 = vector.broadcast %cst_91 : f32 to vector<5x128xf32>
    %193 = arith.addf %192, %191 : vector<5x128xf32>
    %194 = arith.mulf %183, %193 : vector<5x128xf32>
    %cst_92 = arith.constant dense<0.000000e+00> : vector<5x32xf32>
    %195 = tpu.matmul %194, %45, %cst_92 {dimension_numbers = #tpu.dot_dimension_numbers<[1], [0], [0], [1], [0, 0, 1, 1], [], []>} : vector<5x128xf32>, vector<128x32xf32>, vector<5x32xf32> -> vector<5x32xf32>
    %196 = vector.broadcast %47 : vector<1x32xf32> to vector<5x32xf32>
    %197 = arith.addf %195, %196 : vector<5x32xf32>
    %198 = arith.addf %156, %197 : vector<5x32xf32>
    %c1 = arith.constant 1 : index
    %c0_93 = arith.constant 0 : index
    %c0_94 = arith.constant 0 : index
    %199 = vector.load %arg9[%c1, %c0_93, %c0_94] : memref<2x1x32xf32, #tpu.memory_space<vmem>>, vector<1x1x32xf32>
    %200 = vector.shape_cast %199 : vector<1x1x32xf32> to vector<1x32xf32>
    %c1_95 = arith.constant 1 : index
    %c0_96 = arith.constant 0 : index
    %c0_97 = arith.constant 0 : index
    %201 = vector.load %arg10[%c1_95, %c0_96, %c0_97] : memref<2x1x32xf32, #tpu.memory_space<vmem>>, vector<1x1x32xf32>
    %202 = vector.shape_cast %201 : vector<1x1x32xf32> to vector<1x32xf32>
    %c1_98 = arith.constant 1 : index
    %c0_99 = arith.constant 0 : index
    %c0_100 = arith.constant 0 : index
    %203 = vector.load %arg11[%c1_98, %c0_99, %c0_100] : memref<2x32x96xf32, #tpu.memory_space<vmem>>, vector<1x32x96xf32>
    %204 = vector.shape_cast %203 : vector<1x32x96xf32> to vector<32x96xf32>
    %c1_101 = arith.constant 1 : index
    %c0_102 = arith.constant 0 : index
    %c0_103 = arith.constant 0 : index
    %205 = vector.load %arg12[%c1_101, %c0_102, %c0_103] : memref<2x1x96xf32, #tpu.memory_space<vmem>>, vector<1x1x96xf32>
    %206 = vector.shape_cast %205 : vector<1x1x96xf32> to vector<1x96xf32>
    %c1_104 = arith.constant 1 : index
    %c0_105 = arith.constant 0 : index
    %c0_106 = arith.constant 0 : index
    %207 = vector.load %arg13[%c1_104, %c0_105, %c0_106] : memref<2x32x32xf32, #tpu.memory_space<vmem>>, vector<1x32x32xf32>
    %208 = vector.shape_cast %207 : vector<1x32x32xf32> to vector<32x32xf32>
    %c1_107 = arith.constant 1 : index
    %c0_108 = arith.constant 0 : index
    %c0_109 = arith.constant 0 : index
    %209 = vector.load %arg14[%c1_107, %c0_108, %c0_109] : memref<2x1x32xf32, #tpu.memory_space<vmem>>, vector<1x1x32xf32>
    %210 = vector.shape_cast %209 : vector<1x1x32xf32> to vector<1x32xf32>
    %c1_110 = arith.constant 1 : index
    %c0_111 = arith.constant 0 : index
    %c0_112 = arith.constant 0 : index
    %211 = vector.load %arg15[%c1_110, %c0_111, %c0_112] : memref<2x1x32xf32, #tpu.memory_space<vmem>>, vector<1x1x32xf32>
    %212 = vector.shape_cast %211 : vector<1x1x32xf32> to vector<1x32xf32>
    %c1_113 = arith.constant 1 : index
    %c0_114 = arith.constant 0 : index
    %c0_115 = arith.constant 0 : index
    %213 = vector.load %arg16[%c1_113, %c0_114, %c0_115] : memref<2x1x32xf32, #tpu.memory_space<vmem>>, vector<1x1x32xf32>
    %214 = vector.shape_cast %213 : vector<1x1x32xf32> to vector<1x32xf32>
    %c1_116 = arith.constant 1 : index
    %c0_117 = arith.constant 0 : index
    %c0_118 = arith.constant 0 : index
    %215 = vector.load %arg17[%c1_116, %c0_117, %c0_118] : memref<2x32x128xf32, #tpu.memory_space<vmem>>, vector<1x32x128xf32>
    %216 = vector.shape_cast %215 : vector<1x32x128xf32> to vector<32x128xf32>
    %c1_119 = arith.constant 1 : index
    %c0_120 = arith.constant 0 : index
    %c0_121 = arith.constant 0 : index
    %217 = vector.load %arg18[%c1_119, %c0_120, %c0_121] : memref<2x1x128xf32, #tpu.memory_space<vmem>>, vector<1x1x128xf32>
    %218 = vector.shape_cast %217 : vector<1x1x128xf32> to vector<1x128xf32>
    %c1_122 = arith.constant 1 : index
    %c0_123 = arith.constant 0 : index
    %c0_124 = arith.constant 0 : index
    %219 = vector.load %arg19[%c1_122, %c0_123, %c0_124] : memref<2x128x32xf32, #tpu.memory_space<vmem>>, vector<1x128x32xf32>
    %220 = vector.shape_cast %219 : vector<1x128x32xf32> to vector<128x32xf32>
    %c1_125 = arith.constant 1 : index
    %c0_126 = arith.constant 0 : index
    %c0_127 = arith.constant 0 : index
    %221 = vector.load %arg20[%c1_125, %c0_126, %c0_127] : memref<2x1x32xf32, #tpu.memory_space<vmem>>, vector<1x1x32xf32>
    %222 = vector.shape_cast %221 : vector<1x1x32xf32> to vector<1x32xf32>
    %cst_128 = arith.constant dense<0.000000e+00> : vector<5xf32>
    %223 = vector.multi_reduction <add>, %198, %cst_128 [1] : vector<5x32xf32> to vector<5xf32>
    %224 = vector.shape_cast %223 : vector<5xf32> to vector<5x1xf32>
    %cst_129 = arith.constant 3.200000e+01 : f32
    %225 = vector.broadcast %cst_129 : f32 to vector<5x1xf32>
    %226 = arith.divf %224, %225 : vector<5x1xf32>
    %227 = arith.mulf %198, %198 : vector<5x32xf32>
    %cst_130 = arith.constant dense<0.000000e+00> : vector<5xf32>
    %228 = vector.multi_reduction <add>, %227, %cst_130 [1] : vector<5x32xf32> to vector<5xf32>
    %229 = vector.shape_cast %228 : vector<5xf32> to vector<5x1xf32>
    %cst_131 = arith.constant 3.200000e+01 : f32
    %230 = vector.broadcast %cst_131 : f32 to vector<5x1xf32>
    %231 = arith.divf %229, %230 : vector<5x1xf32>
    %232 = arith.mulf %226, %226 : vector<5x1xf32>
    %233 = arith.subf %231, %232 : vector<5x1xf32>
    %234 = vector.broadcast %226 : vector<5x1xf32> to vector<5x32xf32>
    %235 = arith.subf %198, %234 : vector<5x32xf32>
    %cst_132 = arith.constant 9.99999974E-6 : f32
    %236 = vector.broadcast %cst_132 : f32 to vector<5x1xf32>
    %237 = arith.addf %233, %236 : vector<5x1xf32>
    %238 = math.rsqrt %237 : vector<5x1xf32>
    %239 = vector.broadcast %238 : vector<5x1xf32> to vector<5x32xf32>
    %240 = arith.mulf %235, %239 : vector<5x32xf32>
    %241 = vector.broadcast %200 : vector<1x32xf32> to vector<5x32xf32>
    %242 = arith.mulf %240, %241 : vector<5x32xf32>
    %243 = vector.broadcast %202 : vector<1x32xf32> to vector<5x32xf32>
    %244 = arith.addf %242, %243 : vector<5x32xf32>
    %cst_133 = arith.constant dense<0.000000e+00> : vector<5x96xf32>
    %245 = tpu.matmul %244, %204, %cst_133 {dimension_numbers = #tpu.dot_dimension_numbers<[1], [0], [0], [1], [0, 0, 1, 1], [], []>} : vector<5x32xf32>, vector<32x96xf32>, vector<5x96xf32> -> vector<5x96xf32>
    %246 = vector.broadcast %206 : vector<1x96xf32> to vector<5x96xf32>
    %247 = arith.addf %245, %246 : vector<5x96xf32>
    %cst_134 = arith.constant 0.000000e+00 : f32
    %248 = vector.broadcast %cst_134 : f32 to vector<5x32xf32>
    %249 = vector.extract_strided_slice %247 {offsets = [0, 0], sizes = [5, 8], strides = [1, 1]} : vector<5x96xf32> to vector<5x8xf32>
    %250 = vector.extract_strided_slice %247 {offsets = [0, 32], sizes = [5, 8], strides = [1, 1]} : vector<5x96xf32> to vector<5x8xf32>
    %251 = vector.extract_strided_slice %247 {offsets = [0, 64], sizes = [5, 8], strides = [1, 1]} : vector<5x96xf32> to vector<5x8xf32>
    %cst_135 = arith.constant dense<0.000000e+00> : vector<5x5xf32>
    %252 = tpu.matmul %249, %250, %cst_135 {dimension_numbers = #tpu.dot_dimension_numbers<[1], [1], [0], [0], [0, 0, 1, 0], [], []>} : vector<5x8xf32>, vector<5x8xf32>, vector<5x5xf32> -> vector<5x5xf32>
    %cst_136 = arith.constant 0.353553385 : f32
    %253 = vector.broadcast %cst_136 : f32 to vector<5x5xf32>
    %254 = arith.mulf %252, %253 : vector<5x5xf32>
    %cst_137 = arith.constant dense<0xFF800000> : vector<5xf32>
    %255 = vector.multi_reduction <maximumf>, %254, %cst_137 [1] : vector<5x5xf32> to vector<5xf32>
    %256 = vector.shape_cast %255 : vector<5xf32> to vector<5x1xf32>
    %257 = vector.broadcast %256 : vector<5x1xf32> to vector<5x5xf32>
    %258 = arith.subf %254, %257 : vector<5x5xf32>
    %259 = math.exp %258 : vector<5x5xf32>
    %cst_138 = arith.constant dense<0.000000e+00> : vector<5xf32>
    %260 = vector.multi_reduction <add>, %259, %cst_138 [1] : vector<5x5xf32> to vector<5xf32>
    %261 = vector.shape_cast %260 : vector<5xf32> to vector<5x1xf32>
    %262 = tpu.reciprocal %261 {approx = true} : vector<5x1xf32> -> vector<5x1xf32>
    %263 = vector.broadcast %262 : vector<5x1xf32> to vector<5x5xf32>
    %264 = arith.mulf %259, %263 : vector<5x5xf32>
    %cst_139 = arith.constant dense<0.000000e+00> : vector<5x8xf32>
    %265 = tpu.matmul %264, %251, %cst_139 {dimension_numbers = #tpu.dot_dimension_numbers<[1], [0], [0], [1], [0, 0, 1, 1], [], []>} : vector<5x5xf32>, vector<5x8xf32>, vector<5x8xf32> -> vector<5x8xf32>
    %266 = vector.extract_strided_slice %208 {offsets = [0, 0], sizes = [8, 32], strides = [1, 1]} : vector<32x32xf32> to vector<8x32xf32>
    %cst_140 = arith.constant dense<0.000000e+00> : vector<5x32xf32>
    %267 = tpu.matmul %265, %266, %cst_140 {dimension_numbers = #tpu.dot_dimension_numbers<[1], [0], [0], [1], [0, 0, 1, 1], [], []>} : vector<5x8xf32>, vector<8x32xf32>, vector<5x32xf32> -> vector<5x32xf32>
    %268 = arith.addf %248, %267 : vector<5x32xf32>
    %269 = vector.extract_strided_slice %247 {offsets = [0, 8], sizes = [5, 8], strides = [1, 1]} : vector<5x96xf32> to vector<5x8xf32>
    %270 = vector.extract_strided_slice %247 {offsets = [0, 40], sizes = [5, 8], strides = [1, 1]} : vector<5x96xf32> to vector<5x8xf32>
    %271 = vector.extract_strided_slice %247 {offsets = [0, 72], sizes = [5, 8], strides = [1, 1]} : vector<5x96xf32> to vector<5x8xf32>
    %cst_141 = arith.constant dense<0.000000e+00> : vector<5x5xf32>
    %272 = tpu.matmul %269, %270, %cst_141 {dimension_numbers = #tpu.dot_dimension_numbers<[1], [1], [0], [0], [0, 0, 1, 0], [], []>} : vector<5x8xf32>, vector<5x8xf32>, vector<5x5xf32> -> vector<5x5xf32>
    %cst_142 = arith.constant 0.353553385 : f32
    %273 = vector.broadcast %cst_142 : f32 to vector<5x5xf32>
    %274 = arith.mulf %272, %273 : vector<5x5xf32>
    %cst_143 = arith.constant dense<0xFF800000> : vector<5xf32>
    %275 = vector.multi_reduction <maximumf>, %274, %cst_143 [1] : vector<5x5xf32> to vector<5xf32>
    %276 = vector.shape_cast %275 : vector<5xf32> to vector<5x1xf32>
    %277 = vector.broadcast %276 : vector<5x1xf32> to vector<5x5xf32>
    %278 = arith.subf %274, %277 : vector<5x5xf32>
    %279 = math.exp %278 : vector<5x5xf32>
    %cst_144 = arith.constant dense<0.000000e+00> : vector<5xf32>
    %280 = vector.multi_reduction <add>, %279, %cst_144 [1] : vector<5x5xf32> to vector<5xf32>
    %281 = vector.shape_cast %280 : vector<5xf32> to vector<5x1xf32>
    %282 = tpu.reciprocal %281 {approx = true} : vector<5x1xf32> -> vector<5x1xf32>
    %283 = vector.broadcast %282 : vector<5x1xf32> to vector<5x5xf32>
    %284 = arith.mulf %279, %283 : vector<5x5xf32>
    %cst_145 = arith.constant dense<0.000000e+00> : vector<5x8xf32>
    %285 = tpu.matmul %284, %271, %cst_145 {dimension_numbers = #tpu.dot_dimension_numbers<[1], [0], [0], [1], [0, 0, 1, 1], [], []>} : vector<5x5xf32>, vector<5x8xf32>, vector<5x8xf32> -> vector<5x8xf32>
    %286 = vector.extract_strided_slice %208 {offsets = [8, 0], sizes = [8, 32], strides = [1, 1]} : vector<32x32xf32> to vector<8x32xf32>
    %cst_146 = arith.constant dense<0.000000e+00> : vector<5x32xf32>
    %287 = tpu.matmul %285, %286, %cst_146 {dimension_numbers = #tpu.dot_dimension_numbers<[1], [0], [0], [1], [0, 0, 1, 1], [], []>} : vector<5x8xf32>, vector<8x32xf32>, vector<5x32xf32> -> vector<5x32xf32>
    %288 = arith.addf %268, %287 : vector<5x32xf32>
    %289 = vector.extract_strided_slice %247 {offsets = [0, 16], sizes = [5, 8], strides = [1, 1]} : vector<5x96xf32> to vector<5x8xf32>
    %290 = vector.extract_strided_slice %247 {offsets = [0, 48], sizes = [5, 8], strides = [1, 1]} : vector<5x96xf32> to vector<5x8xf32>
    %291 = vector.extract_strided_slice %247 {offsets = [0, 80], sizes = [5, 8], strides = [1, 1]} : vector<5x96xf32> to vector<5x8xf32>
    %cst_147 = arith.constant dense<0.000000e+00> : vector<5x5xf32>
    %292 = tpu.matmul %289, %290, %cst_147 {dimension_numbers = #tpu.dot_dimension_numbers<[1], [1], [0], [0], [0, 0, 1, 0], [], []>} : vector<5x8xf32>, vector<5x8xf32>, vector<5x5xf32> -> vector<5x5xf32>
    %cst_148 = arith.constant 0.353553385 : f32
    %293 = vector.broadcast %cst_148 : f32 to vector<5x5xf32>
    %294 = arith.mulf %292, %293 : vector<5x5xf32>
    %cst_149 = arith.constant dense<0xFF800000> : vector<5xf32>
    %295 = vector.multi_reduction <maximumf>, %294, %cst_149 [1] : vector<5x5xf32> to vector<5xf32>
    %296 = vector.shape_cast %295 : vector<5xf32> to vector<5x1xf32>
    %297 = vector.broadcast %296 : vector<5x1xf32> to vector<5x5xf32>
    %298 = arith.subf %294, %297 : vector<5x5xf32>
    %299 = math.exp %298 : vector<5x5xf32>
    %cst_150 = arith.constant dense<0.000000e+00> : vector<5xf32>
    %300 = vector.multi_reduction <add>, %299, %cst_150 [1] : vector<5x5xf32> to vector<5xf32>
    %301 = vector.shape_cast %300 : vector<5xf32> to vector<5x1xf32>
    %302 = tpu.reciprocal %301 {approx = true} : vector<5x1xf32> -> vector<5x1xf32>
    %303 = vector.broadcast %302 : vector<5x1xf32> to vector<5x5xf32>
    %304 = arith.mulf %299, %303 : vector<5x5xf32>
    %cst_151 = arith.constant dense<0.000000e+00> : vector<5x8xf32>
    %305 = tpu.matmul %304, %291, %cst_151 {dimension_numbers = #tpu.dot_dimension_numbers<[1], [0], [0], [1], [0, 0, 1, 1], [], []>} : vector<5x5xf32>, vector<5x8xf32>, vector<5x8xf32> -> vector<5x8xf32>
    %306 = vector.extract_strided_slice %208 {offsets = [16, 0], sizes = [8, 32], strides = [1, 1]} : vector<32x32xf32> to vector<8x32xf32>
    %cst_152 = arith.constant dense<0.000000e+00> : vector<5x32xf32>
    %307 = tpu.matmul %305, %306, %cst_152 {dimension_numbers = #tpu.dot_dimension_numbers<[1], [0], [0], [1], [0, 0, 1, 1], [], []>} : vector<5x8xf32>, vector<8x32xf32>, vector<5x32xf32> -> vector<5x32xf32>
    %308 = arith.addf %288, %307 : vector<5x32xf32>
    %309 = vector.extract_strided_slice %247 {offsets = [0, 24], sizes = [5, 8], strides = [1, 1]} : vector<5x96xf32> to vector<5x8xf32>
    %310 = vector.extract_strided_slice %247 {offsets = [0, 56], sizes = [5, 8], strides = [1, 1]} : vector<5x96xf32> to vector<5x8xf32>
    %311 = vector.extract_strided_slice %247 {offsets = [0, 88], sizes = [5, 8], strides = [1, 1]} : vector<5x96xf32> to vector<5x8xf32>
    %cst_153 = arith.constant dense<0.000000e+00> : vector<5x5xf32>
    %312 = tpu.matmul %309, %310, %cst_153 {dimension_numbers = #tpu.dot_dimension_numbers<[1], [1], [0], [0], [0, 0, 1, 0], [], []>} : vector<5x8xf32>, vector<5x8xf32>, vector<5x5xf32> -> vector<5x5xf32>
    %cst_154 = arith.constant 0.353553385 : f32
    %313 = vector.broadcast %cst_154 : f32 to vector<5x5xf32>
    %314 = arith.mulf %312, %313 : vector<5x5xf32>
    %cst_155 = arith.constant dense<0xFF800000> : vector<5xf32>
    %315 = vector.multi_reduction <maximumf>, %314, %cst_155 [1] : vector<5x5xf32> to vector<5xf32>
    %316 = vector.shape_cast %315 : vector<5xf32> to vector<5x1xf32>
    %317 = vector.broadcast %316 : vector<5x1xf32> to vector<5x5xf32>
    %318 = arith.subf %314, %317 : vector<5x5xf32>
    %319 = math.exp %318 : vector<5x5xf32>
    %cst_156 = arith.constant dense<0.000000e+00> : vector<5xf32>
    %320 = vector.multi_reduction <add>, %319, %cst_156 [1] : vector<5x5xf32> to vector<5xf32>
    %321 = vector.shape_cast %320 : vector<5xf32> to vector<5x1xf32>
    %322 = tpu.reciprocal %321 {approx = true} : vector<5x1xf32> -> vector<5x1xf32>
    %323 = vector.broadcast %322 : vector<5x1xf32> to vector<5x5xf32>
    %324 = arith.mulf %319, %323 : vector<5x5xf32>
    %cst_157 = arith.constant dense<0.000000e+00> : vector<5x8xf32>
    %325 = tpu.matmul %324, %311, %cst_157 {dimension_numbers = #tpu.dot_dimension_numbers<[1], [0], [0], [1], [0, 0, 1, 1], [], []>} : vector<5x5xf32>, vector<5x8xf32>, vector<5x8xf32> -> vector<5x8xf32>
    %326 = vector.extract_strided_slice %208 {offsets = [24, 0], sizes = [8, 32], strides = [1, 1]} : vector<32x32xf32> to vector<8x32xf32>
    %cst_158 = arith.constant dense<0.000000e+00> : vector<5x32xf32>
    %327 = tpu.matmul %325, %326, %cst_158 {dimension_numbers = #tpu.dot_dimension_numbers<[1], [0], [0], [1], [0, 0, 1, 1], [], []>} : vector<5x8xf32>, vector<8x32xf32>, vector<5x32xf32> -> vector<5x32xf32>
    %328 = arith.addf %308, %327 : vector<5x32xf32>
    %329 = arith.addf %198, %328 : vector<5x32xf32>
    %330 = vector.broadcast %210 : vector<1x32xf32> to vector<5x32xf32>
    %331 = arith.addf %329, %330 : vector<5x32xf32>
    %cst_159 = arith.constant dense<0.000000e+00> : vector<5xf32>
    %332 = vector.multi_reduction <add>, %331, %cst_159 [1] : vector<5x32xf32> to vector<5xf32>
    %333 = vector.shape_cast %332 : vector<5xf32> to vector<5x1xf32>
    %cst_160 = arith.constant 3.200000e+01 : f32
    %334 = vector.broadcast %cst_160 : f32 to vector<5x1xf32>
    %335 = arith.divf %333, %334 : vector<5x1xf32>
    %336 = arith.mulf %331, %331 : vector<5x32xf32>
    %cst_161 = arith.constant dense<0.000000e+00> : vector<5xf32>
    %337 = vector.multi_reduction <add>, %336, %cst_161 [1] : vector<5x32xf32> to vector<5xf32>
    %338 = vector.shape_cast %337 : vector<5xf32> to vector<5x1xf32>
    %cst_162 = arith.constant 3.200000e+01 : f32
    %339 = vector.broadcast %cst_162 : f32 to vector<5x1xf32>
    %340 = arith.divf %338, %339 : vector<5x1xf32>
    %341 = arith.mulf %335, %335 : vector<5x1xf32>
    %342 = arith.subf %340, %341 : vector<5x1xf32>
    %343 = vector.broadcast %335 : vector<5x1xf32> to vector<5x32xf32>
    %344 = arith.subf %331, %343 : vector<5x32xf32>
    %cst_163 = arith.constant 9.99999974E-6 : f32
    %345 = vector.broadcast %cst_163 : f32 to vector<5x1xf32>
    %346 = arith.addf %342, %345 : vector<5x1xf32>
    %347 = math.rsqrt %346 : vector<5x1xf32>
    %348 = vector.broadcast %347 : vector<5x1xf32> to vector<5x32xf32>
    %349 = arith.mulf %344, %348 : vector<5x32xf32>
    %350 = vector.broadcast %212 : vector<1x32xf32> to vector<5x32xf32>
    %351 = arith.mulf %349, %350 : vector<5x32xf32>
    %352 = vector.broadcast %214 : vector<1x32xf32> to vector<5x32xf32>
    %353 = arith.addf %351, %352 : vector<5x32xf32>
    %cst_164 = arith.constant dense<0.000000e+00> : vector<5x128xf32>
    %354 = tpu.matmul %353, %216, %cst_164 {dimension_numbers = #tpu.dot_dimension_numbers<[1], [0], [0], [1], [0, 0, 1, 1], [], []>} : vector<5x32xf32>, vector<32x128xf32>, vector<5x128xf32> -> vector<5x128xf32>
    %355 = vector.broadcast %218 : vector<1x128xf32> to vector<5x128xf32>
    %356 = arith.addf %354, %355 : vector<5x128xf32>
    %cst_165 = arith.constant 5.000000e-01 : f32
    %357 = vector.broadcast %cst_165 : f32 to vector<5x128xf32>
    %358 = arith.mulf %357, %356 : vector<5x128xf32>
    %cst_166 = arith.constant 4.471500e-02 : f32
    %359 = vector.broadcast %cst_166 : f32 to vector<5x128xf32>
    %360 = arith.mulf %359, %356 : vector<5x128xf32>
    %361 = arith.mulf %360, %356 : vector<5x128xf32>
    %362 = arith.mulf %361, %356 : vector<5x128xf32>
    %363 = arith.addf %356, %362 : vector<5x128xf32>
    %cst_167 = arith.constant 0.797884583 : f32
    %364 = vector.broadcast %cst_167 : f32 to vector<5x128xf32>
    %365 = arith.mulf %364, %363 : vector<5x128xf32>
    %366 = math.tanh %365 : vector<5x128xf32>
    %cst_168 = arith.constant 1.000000e+00 : f32
    %367 = vector.broadcast %cst_168 : f32 to vector<5x128xf32>
    %368 = arith.addf %367, %366 : vector<5x128xf32>
    %369 = arith.mulf %358, %368 : vector<5x128xf32>
    %cst_169 = arith.constant dense<0.000000e+00> : vector<5x32xf32>
    %370 = tpu.matmul %369, %220, %cst_169 {dimension_numbers = #tpu.dot_dimension_numbers<[1], [0], [0], [1], [0, 0, 1, 1], [], []>} : vector<5x128xf32>, vector<128x32xf32>, vector<5x32xf32> -> vector<5x32xf32>
    %371 = vector.broadcast %222 : vector<1x32xf32> to vector<5x32xf32>
    %372 = arith.addf %370, %371 : vector<5x32xf32>
    %373 = arith.addf %331, %372 : vector<5x32xf32>
    %c0_170 = arith.constant 0 : index
    %c0_171 = arith.constant 0 : index
    %374 = vector.load %arg21[%c0_170, %c0_171] : memref<1x32xf32, #tpu.memory_space<vmem>>, vector<1x32xf32>
    %c0_172 = arith.constant 0 : index
    %c0_173 = arith.constant 0 : index
    %375 = vector.load %arg22[%c0_172, %c0_173] : memref<1x32xf32, #tpu.memory_space<vmem>>, vector<1x32xf32>
    %cst_174 = arith.constant dense<0.000000e+00> : vector<5xf32>
    %376 = vector.multi_reduction <add>, %373, %cst_174 [1] : vector<5x32xf32> to vector<5xf32>
    %377 = vector.shape_cast %376 : vector<5xf32> to vector<5x1xf32>
    %cst_175 = arith.constant 3.200000e+01 : f32
    %378 = vector.broadcast %cst_175 : f32 to vector<5x1xf32>
    %379 = arith.divf %377, %378 : vector<5x1xf32>
    %380 = arith.mulf %373, %373 : vector<5x32xf32>
    %cst_176 = arith.constant dense<0.000000e+00> : vector<5xf32>
    %381 = vector.multi_reduction <add>, %380, %cst_176 [1] : vector<5x32xf32> to vector<5xf32>
    %382 = vector.shape_cast %381 : vector<5xf32> to vector<5x1xf32>
    %cst_177 = arith.constant 3.200000e+01 : f32
    %383 = vector.broadcast %cst_177 : f32 to vector<5x1xf32>
    %384 = arith.divf %382, %383 : vector<5x1xf32>
    %385 = arith.mulf %379, %379 : vector<5x1xf32>
    %386 = arith.subf %384, %385 : vector<5x1xf32>
    %387 = vector.broadcast %379 : vector<5x1xf32> to vector<5x32xf32>
    %388 = arith.subf %373, %387 : vector<5x32xf32>
    %cst_178 = arith.constant 9.99999974E-6 : f32
    %389 = vector.broadcast %cst_178 : f32 to vector<5x1xf32>
    %390 = arith.addf %386, %389 : vector<5x1xf32>
    %391 = math.rsqrt %390 : vector<5x1xf32>
    %392 = vector.broadcast %391 : vector<5x1xf32> to vector<5x32xf32>
    %393 = arith.mulf %388, %392 : vector<5x32xf32>
    %394 = vector.broadcast %374 : vector<1x32xf32> to vector<5x32xf32>
    %395 = arith.mulf %393, %394 : vector<5x32xf32>
    %396 = vector.broadcast %375 : vector<1x32xf32> to vector<5x32xf32>
    %397 = arith.addf %395, %396 : vector<5x32xf32>
    %c0_179 = arith.constant 0 : index
    %c0_180 = arith.constant 0 : index
    %398 = vector.load %arg23[%c0_179, %c0_180] : memref<32x32xf32, #tpu.memory_space<vmem>>, vector<32x32xf32>
    %cst_181 = arith.constant dense<0.000000e+00> : vector<5x32xf32>
    %399 = tpu.matmul %397, %398, %cst_181 {dimension_numbers = #tpu.dot_dimension_numbers<[1], [0], [0], [1], [0, 0, 1, 1], [], []>} : vector<5x32xf32>, vector<32x32xf32>, vector<5x32xf32> -> vector<5x32xf32>
    %c0_182 = arith.constant 0 : index
    %c0_183 = arith.constant 0 : index
    %400 = vector.load %arg24[%c0_182, %c0_183] : memref<1x32xf32, #tpu.memory_space<vmem>>, vector<1x32xf32>
    %401 = vector.broadcast %400 : vector<1x32xf32> to vector<5x32xf32>
    %402 = arith.addf %399, %401 : vector<5x32xf32>
    %403 = vector.extract_strided_slice %402 {offsets = [1, 0], sizes = [4, 32], strides = [1, 1]} : vector<5x32xf32> to vector<4x32xf32>
    %c0_184 = arith.constant 0 : index
    %c0_185 = arith.constant 0 : index
    %404 = vector.load %arg25[%c0_184, %c0_185] : memref<1x32xf32, #tpu.memory_space<vmem>>, vector<1x32xf32>
    %405 = vector.shape_cast %404 : vector<1x32xf32> to vector<1x32xf32>
    %406 = vector.broadcast %405 : vector<1x32xf32> to vector<12x32xf32>
    %407 = tpu.concatenate %403, %406 in 0 : vector<4x32xf32>, vector<12x32xf32> -> vector<16x32xf32>
    %c0_186 = arith.constant 0 : index
    %c0_187 = arith.constant 0 : index
    %c0_188 = arith.constant 0 : index
    %408 = vector.load %arg3[%c0_186, %c0_187, %c0_188] : memref<1x16x1xi32, #tpu.memory_space<vmem>>, vector<1x16x1xi32>
    %409 = vector.shape_cast %408 : vector<1x16x1xi32> to vector<16x1xi32>
    %410 = tpu.iota {dimensions = array<i32: 1>} : vector<16x16xi32>
    %411 = vector.broadcast %409 : vector<16x1xi32> to vector<16x16xi32>
    %412 = arith.cmpi eq, %411, %410 : vector<16x16xi32>
    %413 = arith.extui %412 : vector<16x16xi1> to vector<16x16xi32>
    %414 = arith.sitofp %413 : vector<16x16xi32> to vector<16x16xf32>
    %cst_189 = arith.constant dense<0.000000e+00> : vector<16x32xf32>
    %415 = tpu.matmul %414, %407, %cst_189 {dimension_numbers = #tpu.dot_dimension_numbers<[1], [0], [0], [1], [0, 0, 1, 1], [], []>} : vector<16x16xf32>, vector<16x32xf32>, vector<16x32xf32> -> vector<16x32xf32>
    %416 = vector.extract_strided_slice %402 {offsets = [0, 0], sizes = [1, 32], strides = [1, 1]} : vector<5x32xf32> to vector<1x32xf32>
    %417 = tpu.concatenate %416, %415 in 0 : vector<1x32xf32>, vector<16x32xf32> -> vector<17x32xf32>
    %c0_190 = arith.constant 0 : index
    %c0_191 = arith.constant 0 : index
    %418 = vector.load %arg26[%c0_190, %c0_191] : memref<17x32xf32, #tpu.memory_space<vmem>>, vector<17x32xf32>
    %419 = arith.addf %417, %418 : vector<17x32xf32>
    %c0_192 = arith.constant 0 : index
    %c0_193 = arith.constant 0 : index
    %c0_194 = arith.constant 0 : index
    %420 = vector.load %arg27[%c0_192, %c0_193, %c0_194] : memref<1x1x32xf32, #tpu.memory_space<vmem>>, vector<1x1x32xf32>
    %421 = vector.shape_cast %420 : vector<1x1x32xf32> to vector<1x32xf32>
    %c0_195 = arith.constant 0 : index
    %c0_196 = arith.constant 0 : index
    %c0_197 = arith.constant 0 : index
    %422 = vector.load %arg28[%c0_195, %c0_196, %c0_197] : memref<1x1x32xf32, #tpu.memory_space<vmem>>, vector<1x1x32xf32>
    %423 = vector.shape_cast %422 : vector<1x1x32xf32> to vector<1x32xf32>
    %c0_198 = arith.constant 0 : index
    %c0_199 = arith.constant 0 : index
    %c0_200 = arith.constant 0 : index
    %424 = vector.load %arg29[%c0_198, %c0_199, %c0_200] : memref<1x32x96xf32, #tpu.memory_space<vmem>>, vector<1x32x96xf32>
    %425 = vector.shape_cast %424 : vector<1x32x96xf32> to vector<32x96xf32>
    %c0_201 = arith.constant 0 : index
    %c0_202 = arith.constant 0 : index
    %c0_203 = arith.constant 0 : index
    %426 = vector.load %arg30[%c0_201, %c0_202, %c0_203] : memref<1x1x96xf32, #tpu.memory_space<vmem>>, vector<1x1x96xf32>
    %427 = vector.shape_cast %426 : vector<1x1x96xf32> to vector<1x96xf32>
    %c0_204 = arith.constant 0 : index
    %c0_205 = arith.constant 0 : index
    %c0_206 = arith.constant 0 : index
    %428 = vector.load %arg31[%c0_204, %c0_205, %c0_206] : memref<1x32x32xf32, #tpu.memory_space<vmem>>, vector<1x32x32xf32>
    %429 = vector.shape_cast %428 : vector<1x32x32xf32> to vector<32x32xf32>
    %c0_207 = arith.constant 0 : index
    %c0_208 = arith.constant 0 : index
    %c0_209 = arith.constant 0 : index
    %430 = vector.load %arg32[%c0_207, %c0_208, %c0_209] : memref<1x1x32xf32, #tpu.memory_space<vmem>>, vector<1x1x32xf32>
    %431 = vector.shape_cast %430 : vector<1x1x32xf32> to vector<1x32xf32>
    %c0_210 = arith.constant 0 : index
    %c0_211 = arith.constant 0 : index
    %c0_212 = arith.constant 0 : index
    %432 = vector.load %arg33[%c0_210, %c0_211, %c0_212] : memref<1x1x32xf32, #tpu.memory_space<vmem>>, vector<1x1x32xf32>
    %433 = vector.shape_cast %432 : vector<1x1x32xf32> to vector<1x32xf32>
    %c0_213 = arith.constant 0 : index
    %c0_214 = arith.constant 0 : index
    %c0_215 = arith.constant 0 : index
    %434 = vector.load %arg34[%c0_213, %c0_214, %c0_215] : memref<1x1x32xf32, #tpu.memory_space<vmem>>, vector<1x1x32xf32>
    %435 = vector.shape_cast %434 : vector<1x1x32xf32> to vector<1x32xf32>
    %c0_216 = arith.constant 0 : index
    %c0_217 = arith.constant 0 : index
    %c0_218 = arith.constant 0 : index
    %436 = vector.load %arg35[%c0_216, %c0_217, %c0_218] : memref<1x32x128xf32, #tpu.memory_space<vmem>>, vector<1x32x128xf32>
    %437 = vector.shape_cast %436 : vector<1x32x128xf32> to vector<32x128xf32>
    %c0_219 = arith.constant 0 : index
    %c0_220 = arith.constant 0 : index
    %c0_221 = arith.constant 0 : index
    %438 = vector.load %arg36[%c0_219, %c0_220, %c0_221] : memref<1x1x128xf32, #tpu.memory_space<vmem>>, vector<1x1x128xf32>
    %439 = vector.shape_cast %438 : vector<1x1x128xf32> to vector<1x128xf32>
    %c0_222 = arith.constant 0 : index
    %c0_223 = arith.constant 0 : index
    %c0_224 = arith.constant 0 : index
    %440 = vector.load %arg37[%c0_222, %c0_223, %c0_224] : memref<1x128x32xf32, #tpu.memory_space<vmem>>, vector<1x128x32xf32>
    %441 = vector.shape_cast %440 : vector<1x128x32xf32> to vector<128x32xf32>
    %c0_225 = arith.constant 0 : index
    %c0_226 = arith.constant 0 : index
    %c0_227 = arith.constant 0 : index
    %442 = vector.load %arg38[%c0_225, %c0_226, %c0_227] : memref<1x1x32xf32, #tpu.memory_space<vmem>>, vector<1x1x32xf32>
    %443 = vector.shape_cast %442 : vector<1x1x32xf32> to vector<1x32xf32>
    %cst_228 = arith.constant dense<0.000000e+00> : vector<17xf32>
    %444 = vector.multi_reduction <add>, %419, %cst_228 [1] : vector<17x32xf32> to vector<17xf32>
    %445 = vector.shape_cast %444 : vector<17xf32> to vector<17x1xf32>
    %cst_229 = arith.constant 3.200000e+01 : f32
    %446 = vector.broadcast %cst_229 : f32 to vector<17x1xf32>
    %447 = arith.divf %445, %446 : vector<17x1xf32>
    %448 = arith.mulf %419, %419 : vector<17x32xf32>
    %cst_230 = arith.constant dense<0.000000e+00> : vector<17xf32>
    %449 = vector.multi_reduction <add>, %448, %cst_230 [1] : vector<17x32xf32> to vector<17xf32>
    %450 = vector.shape_cast %449 : vector<17xf32> to vector<17x1xf32>
    %cst_231 = arith.constant 3.200000e+01 : f32
    %451 = vector.broadcast %cst_231 : f32 to vector<17x1xf32>
    %452 = arith.divf %450, %451 : vector<17x1xf32>
    %453 = arith.mulf %447, %447 : vector<17x1xf32>
    %454 = arith.subf %452, %453 : vector<17x1xf32>
    %455 = vector.broadcast %447 : vector<17x1xf32> to vector<17x32xf32>
    %456 = arith.subf %419, %455 : vector<17x32xf32>
    %cst_232 = arith.constant 9.99999974E-6 : f32
    %457 = vector.broadcast %cst_232 : f32 to vector<17x1xf32>
    %458 = arith.addf %454, %457 : vector<17x1xf32>
    %459 = math.rsqrt %458 : vector<17x1xf32>
    %460 = vector.broadcast %459 : vector<17x1xf32> to vector<17x32xf32>
    %461 = arith.mulf %456, %460 : vector<17x32xf32>
    %462 = vector.broadcast %421 : vector<1x32xf32> to vector<17x32xf32>
    %463 = arith.mulf %461, %462 : vector<17x32xf32>
    %464 = vector.broadcast %423 : vector<1x32xf32> to vector<17x32xf32>
    %465 = arith.addf %463, %464 : vector<17x32xf32>
    %cst_233 = arith.constant dense<0.000000e+00> : vector<17x96xf32>
    %466 = tpu.matmul %465, %425, %cst_233 {dimension_numbers = #tpu.dot_dimension_numbers<[1], [0], [0], [1], [0, 0, 1, 1], [], []>} : vector<17x32xf32>, vector<32x96xf32>, vector<17x96xf32> -> vector<17x96xf32>
    %467 = vector.broadcast %427 : vector<1x96xf32> to vector<17x96xf32>
    %468 = arith.addf %466, %467 : vector<17x96xf32>
    %cst_234 = arith.constant 0.000000e+00 : f32
    %469 = vector.broadcast %cst_234 : f32 to vector<17x32xf32>
    %470 = vector.extract_strided_slice %468 {offsets = [0, 0], sizes = [17, 8], strides = [1, 1]} : vector<17x96xf32> to vector<17x8xf32>
    %471 = vector.extract_strided_slice %468 {offsets = [0, 32], sizes = [17, 8], strides = [1, 1]} : vector<17x96xf32> to vector<17x8xf32>
    %472 = vector.extract_strided_slice %468 {offsets = [0, 64], sizes = [17, 8], strides = [1, 1]} : vector<17x96xf32> to vector<17x8xf32>
    %cst_235 = arith.constant dense<0.000000e+00> : vector<17x17xf32>
    %473 = tpu.matmul %470, %471, %cst_235 {dimension_numbers = #tpu.dot_dimension_numbers<[1], [1], [0], [0], [0, 0, 1, 0], [], []>} : vector<17x8xf32>, vector<17x8xf32>, vector<17x17xf32> -> vector<17x17xf32>
    %cst_236 = arith.constant 0.353553385 : f32
    %474 = vector.broadcast %cst_236 : f32 to vector<17x17xf32>
    %475 = arith.mulf %473, %474 : vector<17x17xf32>
    %cst_237 = arith.constant dense<0xFF800000> : vector<17xf32>
    %476 = vector.multi_reduction <maximumf>, %475, %cst_237 [1] : vector<17x17xf32> to vector<17xf32>
    %477 = vector.shape_cast %476 : vector<17xf32> to vector<17x1xf32>
    %478 = vector.broadcast %477 : vector<17x1xf32> to vector<17x17xf32>
    %479 = arith.subf %475, %478 : vector<17x17xf32>
    %480 = math.exp %479 : vector<17x17xf32>
    %cst_238 = arith.constant dense<0.000000e+00> : vector<17xf32>
    %481 = vector.multi_reduction <add>, %480, %cst_238 [1] : vector<17x17xf32> to vector<17xf32>
    %482 = vector.shape_cast %481 : vector<17xf32> to vector<17x1xf32>
    %483 = tpu.reciprocal %482 {approx = true} : vector<17x1xf32> -> vector<17x1xf32>
    %484 = vector.broadcast %483 : vector<17x1xf32> to vector<17x17xf32>
    %485 = arith.mulf %480, %484 : vector<17x17xf32>
    %cst_239 = arith.constant dense<0.000000e+00> : vector<17x8xf32>
    %486 = tpu.matmul %485, %472, %cst_239 {dimension_numbers = #tpu.dot_dimension_numbers<[1], [0], [0], [1], [0, 0, 1, 1], [], []>} : vector<17x17xf32>, vector<17x8xf32>, vector<17x8xf32> -> vector<17x8xf32>
    %487 = vector.extract_strided_slice %429 {offsets = [0, 0], sizes = [8, 32], strides = [1, 1]} : vector<32x32xf32> to vector<8x32xf32>
    %cst_240 = arith.constant dense<0.000000e+00> : vector<17x32xf32>
    %488 = tpu.matmul %486, %487, %cst_240 {dimension_numbers = #tpu.dot_dimension_numbers<[1], [0], [0], [1], [0, 0, 1, 1], [], []>} : vector<17x8xf32>, vector<8x32xf32>, vector<17x32xf32> -> vector<17x32xf32>
    %489 = arith.addf %469, %488 : vector<17x32xf32>
    %490 = vector.extract_strided_slice %468 {offsets = [0, 8], sizes = [17, 8], strides = [1, 1]} : vector<17x96xf32> to vector<17x8xf32>
    %491 = vector.extract_strided_slice %468 {offsets = [0, 40], sizes = [17, 8], strides = [1, 1]} : vector<17x96xf32> to vector<17x8xf32>
    %492 = vector.extract_strided_slice %468 {offsets = [0, 72], sizes = [17, 8], strides = [1, 1]} : vector<17x96xf32> to vector<17x8xf32>
    %cst_241 = arith.constant dense<0.000000e+00> : vector<17x17xf32>
    %493 = tpu.matmul %490, %491, %cst_241 {dimension_numbers = #tpu.dot_dimension_numbers<[1], [1], [0], [0], [0, 0, 1, 0], [], []>} : vector<17x8xf32>, vector<17x8xf32>, vector<17x17xf32> -> vector<17x17xf32>
    %cst_242 = arith.constant 0.353553385 : f32
    %494 = vector.broadcast %cst_242 : f32 to vector<17x17xf32>
    %495 = arith.mulf %493, %494 : vector<17x17xf32>
    %cst_243 = arith.constant dense<0xFF800000> : vector<17xf32>
    %496 = vector.multi_reduction <maximumf>, %495, %cst_243 [1] : vector<17x17xf32> to vector<17xf32>
    %497 = vector.shape_cast %496 : vector<17xf32> to vector<17x1xf32>
    %498 = vector.broadcast %497 : vector<17x1xf32> to vector<17x17xf32>
    %499 = arith.subf %495, %498 : vector<17x17xf32>
    %500 = math.exp %499 : vector<17x17xf32>
    %cst_244 = arith.constant dense<0.000000e+00> : vector<17xf32>
    %501 = vector.multi_reduction <add>, %500, %cst_244 [1] : vector<17x17xf32> to vector<17xf32>
    %502 = vector.shape_cast %501 : vector<17xf32> to vector<17x1xf32>
    %503 = tpu.reciprocal %502 {approx = true} : vector<17x1xf32> -> vector<17x1xf32>
    %504 = vector.broadcast %503 : vector<17x1xf32> to vector<17x17xf32>
    %505 = arith.mulf %500, %504 : vector<17x17xf32>
    %cst_245 = arith.constant dense<0.000000e+00> : vector<17x8xf32>
    %506 = tpu.matmul %505, %492, %cst_245 {dimension_numbers = #tpu.dot_dimension_numbers<[1], [0], [0], [1], [0, 0, 1, 1], [], []>} : vector<17x17xf32>, vector<17x8xf32>, vector<17x8xf32> -> vector<17x8xf32>
    %507 = vector.extract_strided_slice %429 {offsets = [8, 0], sizes = [8, 32], strides = [1, 1]} : vector<32x32xf32> to vector<8x32xf32>
    %cst_246 = arith.constant dense<0.000000e+00> : vector<17x32xf32>
    %508 = tpu.matmul %506, %507, %cst_246 {dimension_numbers = #tpu.dot_dimension_numbers<[1], [0], [0], [1], [0, 0, 1, 1], [], []>} : vector<17x8xf32>, vector<8x32xf32>, vector<17x32xf32> -> vector<17x32xf32>
    %509 = arith.addf %489, %508 : vector<17x32xf32>
    %510 = vector.extract_strided_slice %468 {offsets = [0, 16], sizes = [17, 8], strides = [1, 1]} : vector<17x96xf32> to vector<17x8xf32>
    %511 = vector.extract_strided_slice %468 {offsets = [0, 48], sizes = [17, 8], strides = [1, 1]} : vector<17x96xf32> to vector<17x8xf32>
    %512 = vector.extract_strided_slice %468 {offsets = [0, 80], sizes = [17, 8], strides = [1, 1]} : vector<17x96xf32> to vector<17x8xf32>
    %cst_247 = arith.constant dense<0.000000e+00> : vector<17x17xf32>
    %513 = tpu.matmul %510, %511, %cst_247 {dimension_numbers = #tpu.dot_dimension_numbers<[1], [1], [0], [0], [0, 0, 1, 0], [], []>} : vector<17x8xf32>, vector<17x8xf32>, vector<17x17xf32> -> vector<17x17xf32>
    %cst_248 = arith.constant 0.353553385 : f32
    %514 = vector.broadcast %cst_248 : f32 to vector<17x17xf32>
    %515 = arith.mulf %513, %514 : vector<17x17xf32>
    %cst_249 = arith.constant dense<0xFF800000> : vector<17xf32>
    %516 = vector.multi_reduction <maximumf>, %515, %cst_249 [1] : vector<17x17xf32> to vector<17xf32>
    %517 = vector.shape_cast %516 : vector<17xf32> to vector<17x1xf32>
    %518 = vector.broadcast %517 : vector<17x1xf32> to vector<17x17xf32>
    %519 = arith.subf %515, %518 : vector<17x17xf32>
    %520 = math.exp %519 : vector<17x17xf32>
    %cst_250 = arith.constant dense<0.000000e+00> : vector<17xf32>
    %521 = vector.multi_reduction <add>, %520, %cst_250 [1] : vector<17x17xf32> to vector<17xf32>
    %522 = vector.shape_cast %521 : vector<17xf32> to vector<17x1xf32>
    %523 = tpu.reciprocal %522 {approx = true} : vector<17x1xf32> -> vector<17x1xf32>
    %524 = vector.broadcast %523 : vector<17x1xf32> to vector<17x17xf32>
    %525 = arith.mulf %520, %524 : vector<17x17xf32>
    %cst_251 = arith.constant dense<0.000000e+00> : vector<17x8xf32>
    %526 = tpu.matmul %525, %512, %cst_251 {dimension_numbers = #tpu.dot_dimension_numbers<[1], [0], [0], [1], [0, 0, 1, 1], [], []>} : vector<17x17xf32>, vector<17x8xf32>, vector<17x8xf32> -> vector<17x8xf32>
    %527 = vector.extract_strided_slice %429 {offsets = [16, 0], sizes = [8, 32], strides = [1, 1]} : vector<32x32xf32> to vector<8x32xf32>
    %cst_252 = arith.constant dense<0.000000e+00> : vector<17x32xf32>
    %528 = tpu.matmul %526, %527, %cst_252 {dimension_numbers = #tpu.dot_dimension_numbers<[1], [0], [0], [1], [0, 0, 1, 1], [], []>} : vector<17x8xf32>, vector<8x32xf32>, vector<17x32xf32> -> vector<17x32xf32>
    %529 = arith.addf %509, %528 : vector<17x32xf32>
    %530 = vector.extract_strided_slice %468 {offsets = [0, 24], sizes = [17, 8], strides = [1, 1]} : vector<17x96xf32> to vector<17x8xf32>
    %531 = vector.extract_strided_slice %468 {offsets = [0, 56], sizes = [17, 8], strides = [1, 1]} : vector<17x96xf32> to vector<17x8xf32>
    %532 = vector.extract_strided_slice %468 {offsets = [0, 88], sizes = [17, 8], strides = [1, 1]} : vector<17x96xf32> to vector<17x8xf32>
    %cst_253 = arith.constant dense<0.000000e+00> : vector<17x17xf32>
    %533 = tpu.matmul %530, %531, %cst_253 {dimension_numbers = #tpu.dot_dimension_numbers<[1], [1], [0], [0], [0, 0, 1, 0], [], []>} : vector<17x8xf32>, vector<17x8xf32>, vector<17x17xf32> -> vector<17x17xf32>
    %cst_254 = arith.constant 0.353553385 : f32
    %534 = vector.broadcast %cst_254 : f32 to vector<17x17xf32>
    %535 = arith.mulf %533, %534 : vector<17x17xf32>
    %cst_255 = arith.constant dense<0xFF800000> : vector<17xf32>
    %536 = vector.multi_reduction <maximumf>, %535, %cst_255 [1] : vector<17x17xf32> to vector<17xf32>
    %537 = vector.shape_cast %536 : vector<17xf32> to vector<17x1xf32>
    %538 = vector.broadcast %537 : vector<17x1xf32> to vector<17x17xf32>
    %539 = arith.subf %535, %538 : vector<17x17xf32>
    %540 = math.exp %539 : vector<17x17xf32>
    %cst_256 = arith.constant dense<0.000000e+00> : vector<17xf32>
    %541 = vector.multi_reduction <add>, %540, %cst_256 [1] : vector<17x17xf32> to vector<17xf32>
    %542 = vector.shape_cast %541 : vector<17xf32> to vector<17x1xf32>
    %543 = tpu.reciprocal %542 {approx = true} : vector<17x1xf32> -> vector<17x1xf32>
    %544 = vector.broadcast %543 : vector<17x1xf32> to vector<17x17xf32>
    %545 = arith.mulf %540, %544 : vector<17x17xf32>
    %cst_257 = arith.constant dense<0.000000e+00> : vector<17x8xf32>
    %546 = tpu.matmul %545, %532, %cst_257 {dimension_numbers = #tpu.dot_dimension_numbers<[1], [0], [0], [1], [0, 0, 1, 1], [], []>} : vector<17x17xf32>, vector<17x8xf32>, vector<17x8xf32> -> vector<17x8xf32>
    %547 = vector.extract_strided_slice %429 {offsets = [24, 0], sizes = [8, 32], strides = [1, 1]} : vector<32x32xf32> to vector<8x32xf32>
    %cst_258 = arith.constant dense<0.000000e+00> : vector<17x32xf32>
    %548 = tpu.matmul %546, %547, %cst_258 {dimension_numbers = #tpu.dot_dimension_numbers<[1], [0], [0], [1], [0, 0, 1, 1], [], []>} : vector<17x8xf32>, vector<8x32xf32>, vector<17x32xf32> -> vector<17x32xf32>
    %549 = arith.addf %529, %548 : vector<17x32xf32>
    %550 = arith.addf %419, %549 : vector<17x32xf32>
    %551 = vector.broadcast %431 : vector<1x32xf32> to vector<17x32xf32>
    %552 = arith.addf %550, %551 : vector<17x32xf32>
    %cst_259 = arith.constant dense<0.000000e+00> : vector<17xf32>
    %553 = vector.multi_reduction <add>, %552, %cst_259 [1] : vector<17x32xf32> to vector<17xf32>
    %554 = vector.shape_cast %553 : vector<17xf32> to vector<17x1xf32>
    %cst_260 = arith.constant 3.200000e+01 : f32
    %555 = vector.broadcast %cst_260 : f32 to vector<17x1xf32>
    %556 = arith.divf %554, %555 : vector<17x1xf32>
    %557 = arith.mulf %552, %552 : vector<17x32xf32>
    %cst_261 = arith.constant dense<0.000000e+00> : vector<17xf32>
    %558 = vector.multi_reduction <add>, %557, %cst_261 [1] : vector<17x32xf32> to vector<17xf32>
    %559 = vector.shape_cast %558 : vector<17xf32> to vector<17x1xf32>
    %cst_262 = arith.constant 3.200000e+01 : f32
    %560 = vector.broadcast %cst_262 : f32 to vector<17x1xf32>
    %561 = arith.divf %559, %560 : vector<17x1xf32>
    %562 = arith.mulf %556, %556 : vector<17x1xf32>
    %563 = arith.subf %561, %562 : vector<17x1xf32>
    %564 = vector.broadcast %556 : vector<17x1xf32> to vector<17x32xf32>
    %565 = arith.subf %552, %564 : vector<17x32xf32>
    %cst_263 = arith.constant 9.99999974E-6 : f32
    %566 = vector.broadcast %cst_263 : f32 to vector<17x1xf32>
    %567 = arith.addf %563, %566 : vector<17x1xf32>
    %568 = math.rsqrt %567 : vector<17x1xf32>
    %569 = vector.broadcast %568 : vector<17x1xf32> to vector<17x32xf32>
    %570 = arith.mulf %565, %569 : vector<17x32xf32>
    %571 = vector.broadcast %433 : vector<1x32xf32> to vector<17x32xf32>
    %572 = arith.mulf %570, %571 : vector<17x32xf32>
    %573 = vector.broadcast %435 : vector<1x32xf32> to vector<17x32xf32>
    %574 = arith.addf %572, %573 : vector<17x32xf32>
    %cst_264 = arith.constant dense<0.000000e+00> : vector<17x128xf32>
    %575 = tpu.matmul %574, %437, %cst_264 {dimension_numbers = #tpu.dot_dimension_numbers<[1], [0], [0], [1], [0, 0, 1, 1], [], []>} : vector<17x32xf32>, vector<32x128xf32>, vector<17x128xf32> -> vector<17x128xf32>
    %576 = vector.broadcast %439 : vector<1x128xf32> to vector<17x128xf32>
    %577 = arith.addf %575, %576 : vector<17x128xf32>
    %cst_265 = arith.constant 5.000000e-01 : f32
    %578 = vector.broadcast %cst_265 : f32 to vector<17x128xf32>
    %579 = arith.mulf %578, %577 : vector<17x128xf32>
    %cst_266 = arith.constant 4.471500e-02 : f32
    %580 = vector.broadcast %cst_266 : f32 to vector<17x128xf32>
    %581 = arith.mulf %580, %577 : vector<17x128xf32>
    %582 = arith.mulf %581, %577 : vector<17x128xf32>
    %583 = arith.mulf %582, %577 : vector<17x128xf32>
    %584 = arith.addf %577, %583 : vector<17x128xf32>
    %cst_267 = arith.constant 0.797884583 : f32
    %585 = vector.broadcast %cst_267 : f32 to vector<17x128xf32>
    %586 = arith.mulf %585, %584 : vector<17x128xf32>
    %587 = math.tanh %586 : vector<17x128xf32>
    %cst_268 = arith.constant 1.000000e+00 : f32
    %588 = vector.broadcast %cst_268 : f32 to vector<17x128xf32>
    %589 = arith.addf %588, %587 : vector<17x128xf32>
    %590 = arith.mulf %579, %589 : vector<17x128xf32>
    %cst_269 = arith.constant dense<0.000000e+00> : vector<17x32xf32>
    %591 = tpu.matmul %590, %441, %cst_269 {dimension_numbers = #tpu.dot_dimension_numbers<[1], [0], [0], [1], [0, 0, 1, 1], [], []>} : vector<17x128xf32>, vector<128x32xf32>, vector<17x32xf32> -> vector<17x32xf32>
    %592 = vector.broadcast %443 : vector<1x32xf32> to vector<17x32xf32>
    %593 = arith.addf %591, %592 : vector<17x32xf32>
    %594 = arith.addf %552, %593 : vector<17x32xf32>
    %c0_270 = arith.constant 0 : index
    %c0_271 = arith.constant 0 : index
    %595 = vector.load %arg39[%c0_270, %c0_271] : memref<1x32xf32, #tpu.memory_space<vmem>>, vector<1x32xf32>
    %c0_272 = arith.constant 0 : index
    %c0_273 = arith.constant 0 : index
    %596 = vector.load %arg40[%c0_272, %c0_273] : memref<1x32xf32, #tpu.memory_space<vmem>>, vector<1x32xf32>
    %cst_274 = arith.constant dense<0.000000e+00> : vector<17xf32>
    %597 = vector.multi_reduction <add>, %594, %cst_274 [1] : vector<17x32xf32> to vector<17xf32>
    %598 = vector.shape_cast %597 : vector<17xf32> to vector<17x1xf32>
    %cst_275 = arith.constant 3.200000e+01 : f32
    %599 = vector.broadcast %cst_275 : f32 to vector<17x1xf32>
    %600 = arith.divf %598, %599 : vector<17x1xf32>
    %601 = arith.mulf %594, %594 : vector<17x32xf32>
    %cst_276 = arith.constant dense<0.000000e+00> : vector<17xf32>
    %602 = vector.multi_reduction <add>, %601, %cst_276 [1] : vector<17x32xf32> to vector<17xf32>
    %603 = vector.shape_cast %602 : vector<17xf32> to vector<17x1xf32>
    %cst_277 = arith.constant 3.200000e+01 : f32
    %604 = vector.broadcast %cst_277 : f32 to vector<17x1xf32>
    %605 = arith.divf %603, %604 : vector<17x1xf32>
    %606 = arith.mulf %600, %600 : vector<17x1xf32>
    %607 = arith.subf %605, %606 : vector<17x1xf32>
    %608 = vector.broadcast %600 : vector<17x1xf32> to vector<17x32xf32>
    %609 = arith.subf %594, %608 : vector<17x32xf32>
    %cst_278 = arith.constant 9.99999974E-6 : f32
    %610 = vector.broadcast %cst_278 : f32 to vector<17x1xf32>
    %611 = arith.addf %607, %610 : vector<17x1xf32>
    %612 = math.rsqrt %611 : vector<17x1xf32>
    %613 = vector.broadcast %612 : vector<17x1xf32> to vector<17x32xf32>
    %614 = arith.mulf %609, %613 : vector<17x32xf32>
    %615 = vector.broadcast %595 : vector<1x32xf32> to vector<17x32xf32>
    %616 = arith.mulf %614, %615 : vector<17x32xf32>
    %617 = vector.broadcast %596 : vector<1x32xf32> to vector<17x32xf32>
    %618 = arith.addf %616, %617 : vector<17x32xf32>
    %619 = vector.extract_strided_slice %618 {offsets = [1, 0], sizes = [16, 32], strides = [1, 1]} : vector<17x32xf32> to vector<16x32xf32>
    %c0_279 = arith.constant 0 : index
    %c0_280 = arith.constant 0 : index
    %620 = vector.load %arg41[%c0_279, %c0_280] : memref<32x128xf32, #tpu.memory_space<vmem>>, vector<32x128xf32>
    %cst_281 = arith.constant dense<0.000000e+00> : vector<16x128xf32>
    %621 = tpu.matmul %619, %620, %cst_281 {dimension_numbers = #tpu.dot_dimension_numbers<[1], [0], [0], [1], [0, 0, 1, 1], [], []>} : vector<16x32xf32>, vector<32x128xf32>, vector<16x128xf32> -> vector<16x128xf32>
    %c0_282 = arith.constant 0 : index
    %c0_283 = arith.constant 0 : index
    %622 = vector.load %arg42[%c0_282, %c0_283] : memref<1x128xf32, #tpu.memory_space<vmem>>, vector<1x128xf32>
    %623 = vector.broadcast %622 : vector<1x128xf32> to vector<16x128xf32>
    %624 = arith.addf %621, %623 : vector<16x128xf32>
    %c0_284 = arith.constant 0 : index
    %c0_285 = arith.constant 0 : index
    %c0_286 = arith.constant 0 : index
    %625 = vector.load %arg45[%c0_284, %c0_285, %c0_286] : memref<1x16x128xf32, #tpu.memory_space<vmem>>, vector<1x16x128xf32>
    %626 = vector.shape_cast %625 : vector<1x16x128xf32> to vector<16x128xf32>
    %627 = vector.shape_cast %624 : vector<16x128xf32> to vector<1x16x128xf32>
    tpu.vector_store %arg45[%c0_284, %c0_285, %c0_286], %627 {strides = array<i32>} : memref<1x16x128xf32, #tpu.memory_space<vmem>>, vector<1x16x128xf32>,
    %c0_287 = arith.constant 0 : index
    %c0_288 = arith.constant 0 : index
    %c0_289 = arith.constant 0 : index
    %628 = vector.load %arg4[%c0_287, %c0_288, %c0_289] : memref<1x16x16xi32, #tpu.memory_space<vmem>>, vector<1x16x16xi32>
    %629 = vector.shape_cast %628 : vector<1x16x16xi32> to vector<16x16xi32>
    %c0_290 = arith.constant 0 : index
    %c0_291 = arith.constant 0 : index
    %c0_292 = arith.constant 0 : index
    %630 = vector.load %arg43[%c0_290, %c0_291, %c0_292] : memref<5x32x16xf32, #tpu.memory_space<vmem>>, vector<1x32x16xf32>
    %631 = vector.shape_cast %630 : vector<1x32x16xf32> to vector<32x16xf32>
    %cst_293 = arith.constant dense<0.000000e+00> : vector<16x16xf32>
    %632 = tpu.matmul %619, %631, %cst_293 {dimension_numbers = #tpu.dot_dimension_numbers<[1], [0], [0], [1], [0, 0, 1, 1], [], []>} : vector<16x32xf32>, vector<32x16xf32>, vector<16x16xf32> -> vector<16x16xf32>
    %c0_294 = arith.constant 0 : index
    %c0_295 = arith.constant 0 : index
    %c0_296 = arith.constant 0 : index
    %633 = vector.load %arg44[%c0_294, %c0_295, %c0_296] : memref<5x1x16xf32, #tpu.memory_space<vmem>>, vector<1x1x16xf32>
    %634 = vector.shape_cast %633 : vector<1x1x16xf32> to vector<1x16xf32>
    %635 = vector.broadcast %634 : vector<1x16xf32> to vector<16x16xf32>
    %636 = arith.addf %632, %635 : vector<16x16xf32>
    %c1_297 = arith.constant 1 : index
    %c0_298 = arith.constant 0 : index
    %c0_299 = arith.constant 0 : index
    %637 = vector.load %arg43[%c1_297, %c0_298, %c0_299] : memref<5x32x16xf32, #tpu.memory_space<vmem>>, vector<1x32x16xf32>
    %638 = vector.shape_cast %637 : vector<1x32x16xf32> to vector<32x16xf32>
    %cst_300 = arith.constant dense<0.000000e+00> : vector<16x16xf32>
    %639 = tpu.matmul %619, %638, %cst_300 {dimension_numbers = #tpu.dot_dimension_numbers<[1], [0], [0], [1], [0, 0, 1, 1], [], []>} : vector<16x32xf32>, vector<32x16xf32>, vector<16x16xf32> -> vector<16x16xf32>
    %c1_301 = arith.constant 1 : index
    %c0_302 = arith.constant 0 : index
    %c0_303 = arith.constant 0 : index
    %640 = vector.load %arg44[%c1_301, %c0_302, %c0_303] : memref<5x1x16xf32, #tpu.memory_space<vmem>>, vector<1x1x16xf32>
    %641 = vector.shape_cast %640 : vector<1x1x16xf32> to vector<1x16xf32>
    %642 = vector.broadcast %641 : vector<1x16xf32> to vector<16x16xf32>
    %643 = arith.addf %639, %642 : vector<16x16xf32>
    %c2 = arith.constant 2 : index
    %c0_304 = arith.constant 0 : index
    %c0_305 = arith.constant 0 : index
    %644 = vector.load %arg43[%c2, %c0_304, %c0_305] : memref<5x32x16xf32, #tpu.memory_space<vmem>>, vector<1x32x16xf32>
    %645 = vector.shape_cast %644 : vector<1x32x16xf32> to vector<32x16xf32>
    %cst_306 = arith.constant dense<0.000000e+00> : vector<16x16xf32>
    %646 = tpu.matmul %619, %645, %cst_306 {dimension_numbers = #tpu.dot_dimension_numbers<[1], [0], [0], [1], [0, 0, 1, 1], [], []>} : vector<16x32xf32>, vector<32x16xf32>, vector<16x16xf32> -> vector<16x16xf32>
    %c2_307 = arith.constant 2 : index
    %c0_308 = arith.constant 0 : index
    %c0_309 = arith.constant 0 : index
    %647 = vector.load %arg44[%c2_307, %c0_308, %c0_309] : memref<5x1x16xf32, #tpu.memory_space<vmem>>, vector<1x1x16xf32>
    %648 = vector.shape_cast %647 : vector<1x1x16xf32> to vector<1x16xf32>
    %649 = vector.broadcast %648 : vector<1x16xf32> to vector<16x16xf32>
    %650 = arith.addf %646, %649 : vector<16x16xf32>
    %c3 = arith.constant 3 : index
    %c0_310 = arith.constant 0 : index
    %c0_311 = arith.constant 0 : index
    %651 = vector.load %arg43[%c3, %c0_310, %c0_311] : memref<5x32x16xf32, #tpu.memory_space<vmem>>, vector<1x32x16xf32>
    %652 = vector.shape_cast %651 : vector<1x32x16xf32> to vector<32x16xf32>
    %cst_312 = arith.constant dense<0.000000e+00> : vector<16x16xf32>
    %653 = tpu.matmul %619, %652, %cst_312 {dimension_numbers = #tpu.dot_dimension_numbers<[1], [0], [0], [1], [0, 0, 1, 1], [], []>} : vector<16x32xf32>, vector<32x16xf32>, vector<16x16xf32> -> vector<16x16xf32>
    %c3_313 = arith.constant 3 : index
    %c0_314 = arith.constant 0 : index
    %c0_315 = arith.constant 0 : index
    %654 = vector.load %arg44[%c3_313, %c0_314, %c0_315] : memref<5x1x16xf32, #tpu.memory_space<vmem>>, vector<1x1x16xf32>
    %655 = vector.shape_cast %654 : vector<1x1x16xf32> to vector<1x16xf32>
    %656 = vector.broadcast %655 : vector<1x16xf32> to vector<16x16xf32>
    %657 = arith.addf %653, %656 : vector<16x16xf32>
    %c4 = arith.constant 4 : index
    %c0_316 = arith.constant 0 : index
    %c0_317 = arith.constant 0 : index
    %658 = vector.load %arg43[%c4, %c0_316, %c0_317] : memref<5x32x16xf32, #tpu.memory_space<vmem>>, vector<1x32x16xf32>
    %659 = vector.shape_cast %658 : vector<1x32x16xf32> to vector<32x16xf32>
    %cst_318 = arith.constant dense<0.000000e+00> : vector<16x16xf32>
    %660 = tpu.matmul %619, %659, %cst_318 {dimension_numbers = #tpu.dot_dimension_numbers<[1], [0], [0], [1], [0, 0, 1, 1], [], []>} : vector<16x32xf32>, vector<32x16xf32>, vector<16x16xf32> -> vector<16x16xf32>
    %c4_319 = arith.constant 4 : index
    %c0_320 = arith.constant 0 : index
    %c0_321 = arith.constant 0 : index
    %661 = vector.load %arg44[%c4_319, %c0_320, %c0_321] : memref<5x1x16xf32, #tpu.memory_space<vmem>>, vector<1x1x16xf32>
    %662 = vector.shape_cast %661 : vector<1x1x16xf32> to vector<1x16xf32>
    %663 = vector.broadcast %662 : vector<1x16xf32> to vector<16x16xf32>
    %664 = arith.addf %660, %663 : vector<16x16xf32>
    %665 = arith.maximumf %636, %643 : vector<16x16xf32>
    %666 = arith.maximumf %665, %650 : vector<16x16xf32>
    %667 = arith.maximumf %666, %657 : vector<16x16xf32>
    %668 = arith.maximumf %667, %664 : vector<16x16xf32>
    %cst_322 = arith.constant 0.000000e+00 : f32
    %669 = vector.broadcast %cst_322 : f32 to vector<16x16xf32>
    %cst_323 = arith.constant 0.000000e+00 : f32
    %670 = vector.broadcast %cst_323 : f32 to vector<16x16xf32>
    %671 = arith.subf %636, %668 : vector<16x16xf32>
    %672 = math.exp %671 : vector<16x16xf32>
    %673 = arith.addf %669, %672 : vector<16x16xf32>
    %c0_i32 = arith.constant 0 : i32
    %674 = vector.broadcast %c0_i32 : i32 to vector<16x16xi32>
    %675 = arith.cmpi eq, %629, %674 : vector<16x16xi32>
    %cst_324 = arith.constant 0.000000e+00 : f32
    %676 = vector.broadcast %cst_324 : f32 to vector<16x16xf32>
    %677 = arith.select %675, %636, %676 : vector<16x16xi1>, vector<16x16xf32>
    %678 = arith.addf %670, %677 : vector<16x16xf32>
    %679 = arith.subf %643, %668 : vector<16x16xf32>
    %680 = math.exp %679 : vector<16x16xf32>
    %681 = arith.addf %673, %680 : vector<16x16xf32>
    %c1_i32 = arith.constant 1 : i32
    %682 = vector.broadcast %c1_i32 : i32 to vector<16x16xi32>
    %683 = arith.cmpi eq, %629, %682 : vector<16x16xi32>
    %cst_325 = arith.constant 0.000000e+00 : f32
    %684 = vector.broadcast %cst_325 : f32 to vector<16x16xf32>
    %685 = arith.select %683, %643, %684 : vector<16x16xi1>, vector<16x16xf32>
    %686 = arith.addf %678, %685 : vector<16x16xf32>
    %687 = arith.subf %650, %668 : vector<16x16xf32>
    %688 = math.exp %687 : vector<16x16xf32>
    %689 = arith.addf %681, %688 : vector<16x16xf32>
    %c2_i32 = arith.constant 2 : i32
    %690 = vector.broadcast %c2_i32 : i32 to vector<16x16xi32>
    %691 = arith.cmpi eq, %629, %690 : vector<16x16xi32>
    %cst_326 = arith.constant 0.000000e+00 : f32
    %692 = vector.broadcast %cst_326 : f32 to vector<16x16xf32>
    %693 = arith.select %691, %650, %692 : vector<16x16xi1>, vector<16x16xf32>
    %694 = arith.addf %686, %693 : vector<16x16xf32>
    %695 = arith.subf %657, %668 : vector<16x16xf32>
    %696 = math.exp %695 : vector<16x16xf32>
    %697 = arith.addf %689, %696 : vector<16x16xf32>
    %c3_i32 = arith.constant 3 : i32
    %698 = vector.broadcast %c3_i32 : i32 to vector<16x16xi32>
    %699 = arith.cmpi eq, %629, %698 : vector<16x16xi32>
    %cst_327 = arith.constant 0.000000e+00 : f32
    %700 = vector.broadcast %cst_327 : f32 to vector<16x16xf32>
    %701 = arith.select %699, %657, %700 : vector<16x16xi1>, vector<16x16xf32>
    %702 = arith.addf %694, %701 : vector<16x16xf32>
    %703 = arith.subf %664, %668 : vector<16x16xf32>
    %704 = math.exp %703 : vector<16x16xf32>
    %705 = arith.addf %697, %704 : vector<16x16xf32>
    %c4_i32 = arith.constant 4 : i32
    %706 = vector.broadcast %c4_i32 : i32 to vector<16x16xi32>
    %707 = arith.cmpi eq, %629, %706 : vector<16x16xi32>
    %cst_328 = arith.constant 0.000000e+00 : f32
    %708 = vector.broadcast %cst_328 : f32 to vector<16x16xf32>
    %709 = arith.select %707, %664, %708 : vector<16x16xi1>, vector<16x16xf32>
    %710 = arith.addf %702, %709 : vector<16x16xf32>
    %711 = math.log %705 : vector<16x16xf32>
    %712 = arith.addf %668, %711 : vector<16x16xf32>
    %c0_i32_329 = arith.constant 0 : i32
    %713 = vector.broadcast %c0_i32_329 : i32 to vector<16x16xi32>
    %714 = arith.cmpi sge, %629, %713 : vector<16x16xi32>
    %715 = arith.extui %714 : vector<16x16xi1> to vector<16x16xi32>
    %716 = arith.sitofp %715 : vector<16x16xi32> to vector<16x16xf32>
    %717 = arith.subf %712, %710 : vector<16x16xf32>
    %718 = arith.mulf %717, %716 : vector<16x16xf32>
    %cst_330 = arith.constant dense<0.000000e+00> : vector<16xf32>
    %719 = vector.multi_reduction <add>, %718, %cst_330 [1] : vector<16x16xf32> to vector<16xf32>
    %720 = vector.shape_cast %719 : vector<16xf32> to vector<16x1xf32>
    %cst_331 = arith.constant dense<0.000000e+00> : vector<1xf32>
    %721 = vector.multi_reduction <add>, %720, %cst_331 [0] : vector<16x1xf32> to vector<1xf32>
    %722 = vector.shape_cast %721 : vector<1xf32> to vector<1x1xf32>
    %cst_332 = arith.constant dense<0.000000e+00> : vector<16xf32>
    %723 = vector.multi_reduction <add>, %716, %cst_332 [1] : vector<16x16xf32> to vector<16xf32>
    %724 = vector.shape_cast %723 : vector<16xf32> to vector<16x1xf32>
    %cst_333 = arith.constant dense<0.000000e+00> : vector<1xf32>
    %725 = vector.multi_reduction <add>, %724, %cst_333 [0] : vector<16x1xf32> to vector<1xf32>
    %726 = vector.shape_cast %725 : vector<1xf32> to vector<1x1xf32>
    %c0_334 = arith.constant 0 : index
    %c0_335 = arith.constant 0 : index
    %c0_336 = arith.constant 0 : index
    %727 = vector.load %arg46[%c0_334, %c0_335, %c0_336] : memref<1x1x1xf32, #tpu.memory_space<vmem>>, vector<1x1x1xf32>
    %728 = vector.shape_cast %727 : vector<1x1x1xf32> to vector<1x1xf32>
    %729 = vector.shape_cast %722 : vector<1x1xf32> to vector<1x1x1xf32>
    tpu.vector_store %arg46[%c0_334, %c0_335, %c0_336], %729 {strides = array<i32>} : memref<1x1x1xf32, #tpu.memory_space<vmem>>, vector<1x1x1xf32>,
    %c0_337 = arith.constant 0 : index
    %c0_338 = arith.constant 0 : index
    %c0_339 = arith.constant 0 : index
    %730 = vector.load %arg47[%c0_337, %c0_338, %c0_339] : memref<1x1x1xf32, #tpu.memory_space<vmem>>, vector<1x1x1xf32>
    %731 = vector.shape_cast %730 : vector<1x1x1xf32> to vector<1x1xf32>
    %732 = vector.shape_cast %726 : vector<1x1xf32> to vector<1x1x1xf32>
    tpu.vector_store %arg47[%c0_337, %c0_338, %c0_339], %732 {strides = array<i32>} : memref<1x1x1xf32, #tpu.memory_space<vmem>>, vector<1x1x1xf32>,
    return
  }
  func.func @transform_0(%arg0: i32) -> (i32, i32, i32) {
    %c0_i32 = arith.constant 0 : i32
    %c0_i32_0 = arith.constant 0 : i32
    %c0_i32_1 = arith.constant 0 : i32
    return %arg0, %c0_i32, %c0_i32_0 : i32, i32, i32
  }
  func.func @transform_1(%arg0: i32) -> (i32, i32, i32) {
    %c0_i32 = arith.constant 0 : i32
    %c0_i32_0 = arith.constant 0 : i32
    %c0_i32_1 = arith.constant 0 : i32
    return %arg0, %c0_i32, %c0_i32_0 : i32, i32, i32
  }
  func.func @transform_2(%arg0: i32) -> (i32, i32, i32) {
    %c0_i32 = arith.constant 0 : i32
    %c0_i32_0 = arith.constant 0 : i32
    %c0_i32_1 = arith.constant 0 : i32
    return %arg0, %c0_i32, %c0_i32_0 : i32, i32, i32
  }
  func.func @transform_3(%arg0: i32) -> (i32, i32, i32) {
    %c0_i32 = arith.constant 0 : i32
    %c0_i32_0 = arith.constant 0 : i32
    %c0_i32_1 = arith.constant 0 : i32
    return %arg0, %c0_i32, %c0_i32_0 : i32, i32, i32
  }
  func.func @transform_4(%arg0: i32) -> (i32, i32) {
    %c0_i32 = arith.constant 0 : i32
    %c0_i32_0 = arith.constant 0 : i32
    %c0_i32_1 = arith.constant 0 : i32
    return %c0_i32, %c0_i32_0 : i32, i32
  }
  func.func @transform_5(%arg0: i32) -> (i32, i32) {
    %c0_i32 = arith.constant 0 : i32
    %c0_i32_0 = arith.constant 0 : i32
    %c0_i32_1 = arith.constant 0 : i32
    return %c0_i32, %c0_i32_0 : i32, i32
  }
  func.func @transform_6(%arg0: i32) -> (i32, i32) {
    %c0_i32 = arith.constant 0 : i32
    %c0_i32_0 = arith.constant 0 : i32
    %c0_i32_1 = arith.constant 0 : i32
    return %c0_i32, %c0_i32_0 : i32, i32
  }
  func.func @transform_7(%arg0: i32) -> (i32, i32) {
    %c0_i32 = arith.constant 0 : i32
    %c0_i32_0 = arith.constant 0 : i32
    %c0_i32_1 = arith.constant 0 : i32
    return %c0_i32, %c0_i32_0 : i32, i32
  }
  func.func @transform_8(%arg0: i32) -> (i32, i32, i32) {
    %c0_i32 = arith.constant 0 : i32
    %c0_i32_0 = arith.constant 0 : i32
    %c0_i32_1 = arith.constant 0 : i32
    %c0_i32_2 = arith.constant 0 : i32
    return %c0_i32, %c0_i32_0, %c0_i32_1 : i32, i32, i32
  }
  func.func @transform_9(%arg0: i32) -> (i32, i32, i32) {
    %c0_i32 = arith.constant 0 : i32
    %c0_i32_0 = arith.constant 0 : i32
    %c0_i32_1 = arith.constant 0 : i32
    %c0_i32_2 = arith.constant 0 : i32
    return %c0_i32, %c0_i32_0, %c0_i32_1 : i32, i32, i32
  }
  func.func @transform_10(%arg0: i32) -> (i32, i32, i32) {
    %c0_i32 = arith.constant 0 : i32
    %c0_i32_0 = arith.constant 0 : i32
    %c0_i32_1 = arith.constant 0 : i32
    %c0_i32_2 = arith.constant 0 : i32
    return %c0_i32, %c0_i32_0, %c0_i32_1 : i32, i32, i32
  }
  func.func @transform_11(%arg0: i32) -> (i32, i32, i32) {
    %c0_i32 = arith.constant 0 : i32
    %c0_i32_0 = arith.constant 0 : i32
    %c0_i32_1 = arith.constant 0 : i32
    %c0_i32_2 = arith.constant 0 : i32
    return %c0_i32, %c0_i32_0, %c0_i32_1 : i32, i32, i32
  }
  func.func @transform_12(%arg0: i32) -> (i32, i32, i32) {
    %c0_i32 = arith.constant 0 : i32
    %c0_i32_0 = arith.constant 0 : i32
    %c0_i32_1 = arith.constant 0 : i32
    %c0_i32_2 = arith.constant 0 : i32
    return %c0_i32, %c0_i32_0, %c0_i32_1 : i32, i32, i32
  }
  func.func @transform_13(%arg0: i32) -> (i32, i32, i32) {
    %c0_i32 = arith.constant 0 : i32
    %c0_i32_0 = arith.constant 0 : i32
    %c0_i32_1 = arith.constant 0 : i32
    %c0_i32_2 = arith.constant 0 : i32
    return %c0_i32, %c0_i32_0, %c0_i32_1 : i32, i32, i32
  }
  func.func @transform_14(%arg0: i32) -> (i32, i32, i32) {
    %c0_i32 = arith.constant 0 : i32
    %c0_i32_0 = arith.constant 0 : i32
    %c0_i32_1 = arith.constant 0 : i32
    %c0_i32_2 = arith.constant 0 : i32
    return %c0_i32, %c0_i32_0, %c0_i32_1 : i32, i32, i32
  }
  func.func @transform_15(%arg0: i32) -> (i32, i32, i32) {
    %c0_i32 = arith.constant 0 : i32
    %c0_i32_0 = arith.constant 0 : i32
    %c0_i32_1 = arith.constant 0 : i32
    %c0_i32_2 = arith.constant 0 : i32
    return %c0_i32, %c0_i32_0, %c0_i32_1 : i32, i32, i32
  }
  func.func @transform_16(%arg0: i32) -> (i32, i32, i32) {
    %c0_i32 = arith.constant 0 : i32
    %c0_i32_0 = arith.constant 0 : i32
    %c0_i32_1 = arith.constant 0 : i32
    %c0_i32_2 = arith.constant 0 : i32
    return %c0_i32, %c0_i32_0, %c0_i32_1 : i32, i32, i32
  }
  func.func @transform_17(%arg0: i32) -> (i32, i32, i32) {
    %c0_i32 = arith.constant 0 : i32
    %c0_i32_0 = arith.constant 0 : i32
    %c0_i32_1 = arith.constant 0 : i32
    %c0_i32_2 = arith.constant 0 : i32
    return %c0_i32, %c0_i32_0, %c0_i32_1 : i32, i32, i32
  }
  func.func @transform_18(%arg0: i32) -> (i32, i32, i32) {
    %c0_i32 = arith.constant 0 : i32
    %c0_i32_0 = arith.constant 0 : i32
    %c0_i32_1 = arith.constant 0 : i32
    %c0_i32_2 = arith.constant 0 : i32
    return %c0_i32, %c0_i32_0, %c0_i32_1 : i32, i32, i32
  }
  func.func @transform_19(%arg0: i32) -> (i32, i32, i32) {
    %c0_i32 = arith.constant 0 : i32
    %c0_i32_0 = arith.constant 0 : i32
    %c0_i32_1 = arith.constant 0 : i32
    %c0_i32_2 = arith.constant 0 : i32
    return %c0_i32, %c0_i32_0, %c0_i32_1 : i32, i32, i32
  }
  func.func @transform_20(%arg0: i32) -> (i32, i32) {
    %c0_i32 = arith.constant 0 : i32
    %c0_i32_0 = arith.constant 0 : i32
    %c0_i32_1 = arith.constant 0 : i32
    return %c0_i32, %c0_i32_0 : i32, i32
  }
  func.func @transform_21(%arg0: i32) -> (i32, i32) {
    %c0_i32 = arith.constant 0 : i32
    %c0_i32_0 = arith.constant 0 : i32
    %c0_i32_1 = arith.constant 0 : i32
    return %c0_i32, %c0_i32_0 : i32, i32
  }
  func.func @transform_22(%arg0: i32) -> (i32, i32) {
    %c0_i32 = arith.constant 0 : i32
    %c0_i32_0 = arith.constant 0 : i32
    %c0_i32_1 = arith.constant 0 : i32
    return %c0_i32, %c0_i32_0 : i32, i32
  }
  func.func @transform_23(%arg0: i32) -> (i32, i32) {
    %c0_i32 = arith.constant 0 : i32
    %c0_i32_0 = arith.constant 0 : i32
    %c0_i32_1 = arith.constant 0 : i32
    return %c0_i32, %c0_i32_0 : i32, i32
  }
  func.func @transform_24(%arg0: i32) -> (i32, i32) {
    %c0_i32 = arith.constant 0 : i32
    %c0_i32_0 = arith.constant 0 : i32
    %c0_i32_1 = arith.constant 0 : i32
    return %c0_i32, %c0_i32_0 : i32, i32
  }
  func.func @transform_25(%arg0: i32) -> (i32, i32) {
    %c0_i32 = arith.constant 0 : i32
    %c0_i32_0 = arith.constant 0 : i32
    %c0_i32_1 = arith.constant 0 : i32
    return %c0_i32, %c0_i32_0 : i32, i32
  }
  func.func @transform_26(%arg0: i32) -> (i32, i32, i32) {
    %c0_i32 = arith.constant 0 : i32
    %c0_i32_0 = arith.constant 0 : i32
    %c0_i32_1 = arith.constant 0 : i32
    %c0_i32_2 = arith.constant 0 : i32
    return %c0_i32, %c0_i32_0, %c0_i32_1 : i32, i32, i32
  }
  func.func @transform_27(%arg0: i32) -> (i32, i32, i32) {
    %c0_i32 = arith.constant 0 : i32
    %c0_i32_0 = arith.constant 0 : i32
    %c0_i32_1 = arith.constant 0 : i32
    %c0_i32_2 = arith.constant 0 : i32
    return %c0_i32, %c0_i32_0, %c0_i32_1 : i32, i32, i32
  }
  func.func @transform_28(%arg0: i32) -> (i32, i32, i32) {
    %c0_i32 = arith.constant 0 : i32
    %c0_i32_0 = arith.constant 0 : i32
    %c0_i32_1 = arith.constant 0 : i32
    %c0_i32_2 = arith.constant 0 : i32
    return %c0_i32, %c0_i32_0, %c0_i32_1 : i32, i32, i32
  }
  func.func @transform_29(%arg0: i32) -> (i32, i32, i32) {
    %c0_i32 = arith.constant 0 : i32
    %c0_i32_0 = arith.constant 0 : i32
    %c0_i32_1 = arith.constant 0 : i32
    %c0_i32_2 = arith.constant 0 : i32
    return %c0_i32, %c0_i32_0, %c0_i32_1 : i32, i32, i32
  }
  func.func @transform_30(%arg0: i32) -> (i32, i32, i32) {
    %c0_i32 = arith.constant 0 : i32
    %c0_i32_0 = arith.constant 0 : i32
    %c0_i32_1 = arith.constant 0 : i32
    %c0_i32_2 = arith.constant 0 : i32
    return %c0_i32, %c0_i32_0, %c0_i32_1 : i32, i32, i32
  }
  func.func @transform_31(%arg0: i32) -> (i32, i32, i32) {
    %c0_i32 = arith.constant 0 : i32
    %c0_i32_0 = arith.constant 0 : i32
    %c0_i32_1 = arith.constant 0 : i32
    %c0_i32_2 = arith.constant 0 : i32
    return %c0_i32, %c0_i32_0, %c0_i32_1 : i32, i32, i32
  }
  func.func @transform_32(%arg0: i32) -> (i32, i32, i32) {
    %c0_i32 = arith.constant 0 : i32
    %c0_i32_0 = arith.constant 0 : i32
    %c0_i32_1 = arith.constant 0 : i32
    %c0_i32_2 = arith.constant 0 : i32
    return %c0_i32, %c0_i32_0, %c0_i32_1 : i32, i32, i32
  }
  func.func @transform_33(%arg0: i32) -> (i32, i32, i32) {
    %c0_i32 = arith.constant 0 : i32
    %c0_i32_0 = arith.constant 0 : i32
    %c0_i32_1 = arith.constant 0 : i32
    %c0_i32_2 = arith.constant 0 : i32
    return %c0_i32, %c0_i32_0, %c0_i32_1 : i32, i32, i32
  }
  func.func @transform_34(%arg0: i32) -> (i32, i32, i32) {
    %c0_i32 = arith.constant 0 : i32
    %c0_i32_0 = arith.constant 0 : i32
    %c0_i32_1 = arith.constant 0 : i32
    %c0_i32_2 = arith.constant 0 : i32
    return %c0_i32, %c0_i32_0, %c0_i32_1 : i32, i32, i32
  }
  func.func @transform_35(%arg0: i32) -> (i32, i32, i32) {
    %c0_i32 = arith.constant 0 : i32
    %c0_i32_0 = arith.constant 0 : i32
    %c0_i32_1 = arith.constant 0 : i32
    %c0_i32_2 = arith.constant 0 : i32
    return %c0_i32, %c0_i32_0, %c0_i32_1 : i32, i32, i32
  }
  func.func @transform_36(%arg0: i32) -> (i32, i32, i32) {
    %c0_i32 = arith.constant 0 : i32
    %c0_i32_0 = arith.constant 0 : i32
    %c0_i32_1 = arith.constant 0 : i32
    %c0_i32_2 = arith.constant 0 : i32
    return %c0_i32, %c0_i32_0, %c0_i32_1 : i32, i32, i32
  }
  func.func @transform_37(%arg0: i32) -> (i32, i32, i32) {
    %c0_i32 = arith.constant 0 : i32
    %c0_i32_0 = arith.constant 0 : i32
    %c0_i32_1 = arith.constant 0 : i32
    %c0_i32_2 = arith.constant 0 : i32
    return %c0_i32, %c0_i32_0, %c0_i32_1 : i32, i32, i32
  }
  func.func @transform_38(%arg0: i32) -> (i32, i32) {
    %c0_i32 = arith.constant 0 : i32
    %c0_i32_0 = arith.constant 0 : i32
    %c0_i32_1 = arith.constant 0 : i32
    return %c0_i32, %c0_i32_0 : i32, i32
  }
  func.func @transform_39(%arg0: i32) -> (i32, i32) {
    %c0_i32 = arith.constant 0 : i32
    %c0_i32_0 = arith.constant 0 : i32
    %c0_i32_1 = arith.constant 0 : i32
    return %c0_i32, %c0_i32_0 : i32, i32
  }
  func.func @transform_40(%arg0: i32) -> (i32, i32) {
    %c0_i32 = arith.constant 0 : i32
    %c0_i32_0 = arith.constant 0 : i32
    %c0_i32_1 = arith.constant 0 : i32
    return %c0_i32, %c0_i32_0 : i32, i32
  }
  func.func @transform_41(%arg0: i32) -> (i32, i32) {
    %c0_i32 = arith.constant 0 : i32
    %c0_i32_0 = arith.constant 0 : i32
    %c0_i32_1 = arith.constant 0 : i32
    return %c0_i32, %c0_i32_0 : i32, i32
  }
  func.func @transform_42(%arg0: i32) -> (i32, i32, i32) {
    %c0_i32 = arith.constant 0 : i32
    %c0_i32_0 = arith.constant 0 : i32
    %c0_i32_1 = arith.constant 0 : i32
    %c0_i32_2 = arith.constant 0 : i32
    return %c0_i32, %c0_i32_0, %c0_i32_1 : i32, i32, i32
  }
  func.func @transform_43(%arg0: i32) -> (i32, i32, i32) {
    %c0_i32 = arith.constant 0 : i32
    %c0_i32_0 = arith.constant 0 : i32
    %c0_i32_1 = arith.constant 0 : i32
    %c0_i32_2 = arith.constant 0 : i32
    return %c0_i32, %c0_i32_0, %c0_i32_1 : i32, i32, i32
  }
  func.func @transform_44(%arg0: i32) -> (i32, i32, i32) {
    %c0_i32 = arith.constant 0 : i32
    %c0_i32_0 = arith.constant 0 : i32
    %c0_i32_1 = arith.constant 0 : i32
    return %arg0, %c0_i32, %c0_i32_0 : i32, i32, i32
  }
  func.func @transform_45(%arg0: i32) -> (i32, i32, i32) {
    %c0_i32 = arith.constant 0 : i32
    %c0_i32_0 = arith.constant 0 : i32
    %c0_i32_1 = arith.constant 0 : i32
    return %arg0, %c0_i32, %c0_i32_0 : i32, i32, i32
  }
  func.func @transform_46(%arg0: i32) -> (i32, i32, i32) {
    %c0_i32 = arith.constant 0 : i32
    %c0_i32_0 = arith.constant 0 : i32
    %c0_i32_1 = arith.constant 0 : i32
    return %arg0, %c0_i32, %c0_i32_0 : i32, i32, i32
  }
}

</mosaic_0001>

<bundles_post_ra>
// kernel: mae_forward.1
= control target key start
LH: loop header
LB: loop body
LE: loop exit
PB: predicated region body
PF: predicated region fallthrough
CT: control target
= control target key end

     0   :  { %s8756_s6 = smov 1   ;;  %s8757_s10 = smov 2   ;;  %s9964_s0 = inlined_call_operand.smem [shape: u32[47], index: -1, kind: input, shape index: {}] }
   0x1   :  { %s8825_s5 = sld [smem:[%s9964_s0]]   ;;  %s8758_s14 = smov 3  }
   0x2   :  { %s8830_s9 = sld [smem:[%s9964_s0 + %s8756_s6]]   ;;  %s8759_s18 = smov 4  }
   0x3   :  { %s8835_s13 = sld [smem:[%s9964_s0 + %s8757_s10]]   ;;  %s8760_s22 = smov 5  }
   0x4   :  { %s8840_s17 = sld [smem:[%s9964_s0 + %s8758_s14]]   ;;  %s8761_s26 = smov 6  }
   0x5   :  { %s8845_s21 = sld [smem:[%s9964_s0 + %s8759_s18]]   ;;  %s8762_s30 = smov 7  }
   0x6   :  { %s8850_s25 = sld [smem:[%s9964_s0 + %s8760_s22]]   ;;  %s8763_s4 = smov 8  }
   0x7   :  { %10002 = sst [smem:[#allocation2_spill]] %s8825_s5  ;;  %s8764_s10 = smov 9  }
   0x8   :  { %10003 = sst [smem:[#allocation3_spill]] %s8830_s9  ;;  %s8765_s15 = smov 10  }
   0x9   :  { %10004 = sst [smem:[#allocation4_spill]] %s8835_s13  ;;  %s8766_s20 = smov 11  }
   0xa   :  { %10005 = sst [smem:[#allocation5_spill]] %s8840_s17  ;;  %s8768_s1 = smov 13  }
   0xb   :  { %s8855_s29 = sld [smem:[%s9964_s0 + %s8761_s26]]   ;;  %s8767_s26 = smov 12  }
   0xc   :  { %s8860_s3 = sld [smem:[%s9964_s0 + %s8762_s30]]   ;;  %s8769_s7 = smov 14  }
   0xd   :  { %s8865_s8 = sld [smem:[%s9964_s0 + %s8763_s4]]   ;;  %s8771_s22 = smov 16  }
   0xe   :  { %s8870_s14 = sld [smem:[%s9964_s0 + %s8764_s10]]   ;;  %s8772_s28 = smov 17  }
   0xf   :  { %s8875_s19 = sld [smem:[%s9964_s0 + %s8765_s15]]   ;;  %s8770_s15 = smov 15  }
  0x10   :  { %s8880_s24 = sld [smem:[%s9964_s0 + %s8766_s20]]  }
  0x11   :  { %s8885_s30 = sld [smem:[%s9964_s0 + %s8767_s26]]  }
  0x12   :  { %10006 = sst [smem:[#allocation6_spill]] %s8860_s3 }
  0x13   :  { %10007 = sst [smem:[#allocation7_spill]] %s8865_s8 }
  0x14   :  { %s8890_s6 = sld [smem:[%s9964_s0 + %s8768_s1]]  }
  0x15   :  { %s8895_s12 = sld [smem:[%s9964_s0 + %s8769_s7]]   ;;  %s8773_s7 = smov 18  }
  0x16   :  { %s8900_s20 = sld [smem:[%s9964_s0 + %s8770_s15]]   ;;  %s8774_s15 = smov 19  }
  0x17   :  { %s8905_s27 = sld [smem:[%s9964_s0 + %s8771_s22]]   ;;  %s8775_s22 = smov 20  }
  0x18   :  { %s8910_s4 = sld [smem:[%s9964_s0 + %s8772_s28]]   ;;  %s8776_s28 = smov 21  }
  0x19   :  { %s8915_s17 = sld [smem:[%s9964_s0 + %s8773_s7]]   ;;  %s8777_s7 = smov 22  }
  0x1a   :  { %10008 = sst [smem:[#allocation8_spill]] %s8890_s6 }
  0x1b   :  { %10009 = sst [smem:[#allocation9_spill]] %s8895_s12 }
  0x1c   :  { %10010 = sst [smem:[#allocation10_spill]] %s8900_s20 }
  0x1d   :  { %s8920_s13 = sld [smem:[%s9964_s0 + %s8774_s15]]   ;;  %s8778_s15 = smov 23  }
  0x1e   :  { %10011 = sst [smem:[#allocation11_spill]] %s8910_s4 }
  0x1f   :  { %s8925_s20 = sld [smem:[%s9964_s0 + %s8775_s22]]   ;;  %s8779_s22 = smov 24  }
  0x20   :  { %s8930_s4 = sld [smem:[%s9964_s0 + %s8776_s28]]   ;;  %s8780_s28 = smov 25  }
  0x21   :  { %s8935_s12 = sld [smem:[%s9964_s0 + %s8777_s7]]   ;;  %s8781_s7 = smov 26  }
  0x23   :  { %10012 = sst [smem:[#allocation12_spill]] %s8920_s13 }
  0x24   :  { %s8940_s13 = sld [smem:[%s9964_s0 + %s8778_s15]]   ;;  %s8782_s15 = smov 27  }
  0x25   :  { %10013 = sst [smem:[#allocation13_spill]] %s8925_s20 }
  0x26   :  { %10014 = sst [smem:[#allocation14_spill]] %s8930_s4 }
  0x27   :  { %10015 = sst [smem:[#allocation15_spill]] %s8935_s12 }
  0x28   :  { %s8945_s20 = sld [smem:[%s9964_s0 + %s8779_s22]]   ;;  %s8783_s22 = smov 28  }
  0x29   :  { %s8950_s4 = sld [smem:[%s9964_s0 + %s8780_s28]]   ;;  %s8784_s28 = smov 29  }
  0x2a   :  { %10016 = sst [smem:[#allocation16_spill]] %s8940_s13 }
  0x2b   :  { %s8955_s12 = sld [smem:[%s9964_s0 + %s8781_s7]]   ;;  %s8785_s7 = smov 30  }
  0x2c   :  { %s8960_s13 = sld [smem:[%s9964_s0 + %s8782_s15]]   ;;  %s8786_s15 = smov 31  }
  0x2e   :  { %10017 = sst [smem:[#allocation17_spill]] %s8945_s20 }
  0x2f   :  { %10018 = sst [smem:[#allocation18_spill]] %s8950_s4 }
  0x30   :  { %s8965_s20 = sld [smem:[%s9964_s0 + %s8783_s22]]   ;;  %s8787_s22 = smov 32  }
  0x31   :  { %10019 = sst [smem:[#allocation19_spill]] %s8955_s12 }
  0x32   :  { %10020 = sst [smem:[#allocation20_spill]] %s8960_s13 }
  0x33   :  { %s8970_s4 = sld [smem:[%s9964_s0 + %s8784_s28]]   ;;  %s8788_s28 = smov 33  }
  0x34   :  { %s8975_s12 = sld [smem:[%s9964_s0 + %s8785_s7]]   ;;  %s8789_s7 = smov 34  }
  0x35   :  { %s8980_s13 = sld [smem:[%s9964_s0 + %s8786_s15]]   ;;  %s8790_s15 = smov 35  }
  0x36   :  { %10021 = sst [smem:[#allocation21_spill]] %s8965_s20 }
  0x37   :  { %s8985_s20 = sld [smem:[%s9964_s0 + %s8787_s22]]   ;;  %s8791_s22 = smov 36  }
  0x39   :  { %10022 = sst [smem:[#allocation22_spill]] %s8970_s4 }
  0x3a   :  { %10023 = sst [smem:[#allocation23_spill]] %s8975_s12 }
  0x3b   :  { %10024 = sst [smem:[#allocation24_spill]] %s8980_s13 }
  0x3c   :  { %s8990_s4 = sld [smem:[%s9964_s0 + %s8788_s28]]   ;;  %s8792_s28 = smov 37  }
  0x3d   :  { %10025 = sst [smem:[#allocation25_spill]] %s8985_s20 }
  0x3e   :  { %s8995_s12 = sld [smem:[%s9964_s0 + %s8789_s7]]   ;;  %s8793_s7 = smov 38  }
  0x3f   :  { %s9000_s13 = sld [smem:[%s9964_s0 + %s8790_s15]]   ;;  %s8794_s15 = smov 39  }
  0x40   :  { %s9005_s20 = sld [smem:[%s9964_s0 + %s8791_s22]]   ;;  %s8795_s22 = smov 40  }
  0x42   :  { %10026 = sst [smem:[#allocation26_spill]] %s8990_s4 }
  0x43   :  { %s9010_s4 = sld [smem:[%s9964_s0 + %s8792_s28]]   ;;  %s8796_s28 = smov 41  }
  0x44   :  { %10027 = sst [smem:[#allocation27_spill]] %s8995_s12 }
  0x45   :  { %10028 = sst [smem:[#allocation28_spill]] %s9000_s13 }
  0x46   :  { %10029 = sst [smem:[#allocation29_spill]] %s9005_s20 }
  0x47   :  { %s9015_s12 = sld [smem:[%s9964_s0 + %s8793_s7]]   ;;  %s8797_s7 = smov 42  }
  0x48   :  { %s9020_s13 = sld [smem:[%s9964_s0 + %s8794_s15]]   ;;  %s8798_s15 = smov 43  }
  0x49   :  { %10030 = sst [smem:[#allocation30_spill]] %s9010_s4 }
  0x4a   :  { %s9025_s20 = sld [smem:[%s9964_s0 + %s8795_s22]]   ;;  %s8799_s22 = smov 44  }
  0x4b   :  { %s9030_s4 = sld [smem:[%s9964_s0 + %s8796_s28]]   ;;  %s8800_s28 = smov 45  }
  0x4d   :  { %10031 = sst [smem:[#allocation31_spill]] %s9015_s12 }
  0x4e   :  { %10032 = sst [smem:[#allocation32_spill]] %s9020_s13 }
  0x4f   :  { %s9035_s12 = sld [smem:[%s9964_s0 + %s8797_s7]]   ;;  %s8801_s7 = smov 46  }
  0x50   :  { %10033 = sst [smem:[#allocation33_spill]] %s9025_s20 }
  0x51   :  { %10034 = sst [smem:[#allocation34_spill]] %s9030_s4 }
  0x52   :  { %s9040_s13 = sld [smem:[%s9964_s0 + %s8798_s15]]   ;;  %s9057_s15 = smov 0  }
  0x53   :  { %s9045_s20 = sld [smem:[%s9964_s0 + %s8799_s22]]  }
  0x54   :  { %s9050_s4 = sld [smem:[%s9964_s0 + %s8800_s28]]  }
  0x55   :  { %10035 = sst [smem:[#allocation35_spill]] %s9035_s12 }
  0x56   :  { %s9055_s12 = sld [smem:[%s9964_s0 + %s8801_s7]]  }
  0x57 LB: > { %s10036_s8 = sld [smem:[#allocation7_spill]]  ;;  %s10037_s6 = sld [smem:[#allocation8_spill]]  ;;  %s8754_s15 = sphi %s9057_s15, %s104_s15  }
  0x58   : > { %s7234_s16 = sadd.s32 4294967295, %s8754_s15   ;;  %p7238_p0 = scmp.ge.s32.totalorder %s8754_s15, 1 }
  0x59   : > { %p1293_p1 = scmp.lt.s32.totalorder %s8754_s15, 3 }
  0x5b   : > { %p1294_p2 = pnand %p7238_p0, %p1293_p1 }
  0x5c   : > { %s10038_s5 = sld [smem:[#allocation2_spill]] (!%p1294_p2)  ;;  %v1458_v0 = vld [vmem:[%s8845_s21] sm:$0xff] (!%p1294_p2)  ;;  %s10039_s9 = sld [smem:[#allocation3_spill]] (!%p1294_p2)  ;;  %v1459_v1 = vld [vmem:[%s8845_s21 + $0x8] sm:$0xff] (!%p1294_p2)  ;;  %v8802_v3 = vmov (!%p1294_p2), 0   ;;  %vm1467_vm0 = vcmask (!%p1294_p2), 130048   ;;  %v1563_v15 = vlaneseq (!%p1294_p2) }
  0x5d   : > { %1297 = sbr.rel (%p1294_p2) target bundleno = 13080 (0x3318), region = 196  ;;  %p1423_p3 = scmp.lt.s32.totalorder (!%p1294_p2), %s7234_s16, 1  ;;  %v8294_v2 = vpack.c.bf16 (!%p1294_p2), %v1459_v1, %v1458_v0  ;;  %8564 = vset.pattern.permute.xlu0 (!%p1294_p2), %v8802_v3  ;;  %8565 = vset.pattern.permute.xlu1 (!%p1294_p2), %v8802_v3  ;;  %v8803_v7 = vmov (!%p1294_p2), 0.0|0.0   ;;  %vm8804_vm1 = vmmov (!%p1294_p2), 0   ;;  %v8805_v8 = vmov (!%p1294_p2), 0.0   ;;  %v1454_v9 = vld [vmem:[%s8855_s29 + $0x8] sm:$0xff] (!%p1294_p2) }
  0x5e   : > { %8301 = vmatprep.subr.bf16.mxu0 (!%p1294_p2), %v8803_v7  ;;  %7745 = vmatprep.mubr.msk.f32.mxu0 (!%p1294_p2), %vm8804_vm1, %v8805_v8  ;;  %v1455_v10 = vld [vmem:[%s8855_s29 + $0x10] sm:$0x1] (!%p1294_p2)  ;;  %v1453_v11 = vld [vmem:[%s8855_s29] sm:$0xff] (!%p1294_p2)  ;;  %v1554_v12 = vrot.slane (!%p1294_p2), %v1454_v9, 1  ;;  %vm1552_vm2 = vcmask (!%p1294_p2), 1046528   ;;  %s10040_s3 = sld [smem:[#allocation6_spill]] (!%p1294_p2) }
  0x5f   : > { %8295 = vmatprep.subr.bf16.mxu1 (!%p1294_p2), %v8294_v2  ;;  %v1556_v13 = vrot.slane (!%p1294_p2), %v1455_v10, 1  ;;  %v1553_v14 = vrot.slane (!%p1294_p2), %v1453_v11, 1  ;;  %v7248_v16 = vld [vmem:[%s8850_s25] ss:$0 sm:$0xff] (!%p1294_p2)  ;;  %v9090_v22 = vand.u32 (!%p1294_p2), 127, %v1563_v15  ;;  %vm1649_vm4 = vcmask (!%p1294_p2), 1040384  }
  0x60   : > { %8297 = vmatpush3.bf16.msra.mxu1 (!%p1294_p2), %v8294_v2  ;;  %vm1687_vm5 = vcmask (!%p1294_p2), 258048   ;;  %v1653_v38 = vld [vmem:[%s8875_s19] sm:$0xff] (!%p1294_p2)  ;;  %v1654_v39 = vld [vmem:[%s8875_s19 + $0x8] sm:$0xff] (!%p1294_p2)  ;;  %v1655_v40 = vld [vmem:[%s8875_s19 + $0x10] sm:$0xff] (!%p1294_p2)  ;;  %vm1724_vm6 = vcmask (!%p1294_p2), 261120   ;;  %s9997_s26 = smov (!%p1294_p2), 96  }
  0x61   : > { %8298 = vmatprep.subr.bf16.mxu1 (!%p1294_p2), %v8803_v7  ;;  %v1557_v18 = vsel (!%p1294_p2), %vm1552_vm2, %v1554_v12, %v1556_v13  ;;  %v1555_v21 = vsel (!%p1294_p2), %vm1552_vm2, %v1553_v14, %v1554_v12  ;;  %v8302_v41 = vpack.c.bf16 (!%p1294_p2), %v1654_v39, %v1653_v38  ;;  %v1656_v42 = vld [vmem:[%s8875_s19 + $0x18] sm:$0xff] (!%p1294_p2)  ;;  %v7253_v53 = vld [vmem:[%s10036_s8] ss:$0 sm:$0xff] (!%p1294_p2)  ;;  %s9993_s28 = smov (!%p1294_p2), 88   ;;  %s9987_s1 = smov (!%p1294_p2), 120   ;;  %vm1801_vm7 = vcmask (!%p1294_p2), 64512  }
  0x62   : > { %v8305_v43 = vpack.c.bf16 (!%p1294_p2), %v1656_v42, %v1655_v40  ;;  %v7254_v55 = vld [vmem:[%s8870_s14] ss:$0 sm:$0xff] (!%p1294_p2)  ;;  %vm1877_vm8 = vcmask (!%p1294_p2), 36864   ;;  %s9991_s2 = smov (!%p1294_p2), 56   ;;  %s9995_s7 = smov (!%p1294_p2), 64   ;;  %vm1895_vm9 = vcmask (!%p1294_p2), 1044480   ;;  %vm9516_vm15 = vmpackc.low (!%p1294_p2), %vm1801_vm7, %vm1801_vm7 }
  0x63   : > { %8303 = vmatpush3.bf16.msra.mxu0 (!%p1294_p2), %v8302_v41  ;;  %v7255_v58 = vld [vmem:[%s8880_s24] ss:$0 sm:$0xff] (!%p1294_p2)  ;;  %s9989_s10 = smov (!%p1294_p2), 80   ;;  %s9985_s11 = smov (!%p1294_p2), 112   ;;  %vm1891_vm10 = vcmask (!%p1294_p2), 39936   ;;  %vm4409_vm12 = vcmask (!%p1294_p2), 1043456  }
  0x64   : > { %s10084_s16 = smov (!%p1423_p3, %s7234_s16), 1  ;;  %v1644_v29 = vld [vmem:[%s10040_s3] sm:$0x1]  ;;  %8304 = vmatprep.subr.bf16.mxu0 %v8803_v7  ;;  %vm4563_vm14 = vcmask 253952  }
  0x65   : > { %s9070_s0 = sshll.u32 %s10084_s16, 4  ;;  %s7241_s18 = sshll.u32 %s10084_s16, 2  ;;  %v1645_v30 = vadd.f32 %v1644_v29, %v1453_v11 }
  0x66   : > { %s1427_s22 = scalar_lea.vmem %s10038_s5, %s9070_s0  ;;  %s1431_s23 = scalar_lea.vmem %s10039_s9, %s7241_s18 }
  0x67   : > { %v1456_v4 = vld [vmem:[%s1427_s22] sm:$0xff]  ;;  %v1457_v5 = vld [vmem:[%s1427_s22 + $0x8] sm:$0xff]  ;;  %8306 = vmatpush3.bf16.msra.mxu0 %v8305_v43  ;;  %s9983_s18 = smov 48   ;;  %s9977_s22 = smov 104  }
  0x68   : > { %7727 = vmatprep.mubr.msk.f32.mxu1 %vm1467_vm0, %v1456_v4  ;;  %v1562_v6 = vld [vmem:[%s1431_s23] sm:$0xf]  ;;  %7758 = vmatprep.subr.mxu0 %v8805_v8  ;;  %s9981_s23 = smov 72   ;;  %s10052_s5 = sld [smem:[#allocation13_spill]] }
  0x69   : > { %7728 = vmatmul.mubr.msk.f32.vlgmr.msra.gmra.mrb[0].mxu1 %vm1467_vm0, %v1457_v5  ;;  %1566 = vperm.xlu0 %8564, %v1562_v6   ;;  %s10055_s9 = sld [smem:[#allocation17_spill]] }
  0x6a   : > { %7734 = vmatprep.mubr.msk.f32.mxu1 %vm8804_vm1, %v8805_v8 }
  0xe8   : > { %v1567_v24 = vpop.permute.xlu0 %1566 }
  0xe9   : > { %vm1568_vm3 = vcmp.eq.s32.totalorder %v1567_v24, %v9090_v22 }
  0xea   : > { %v7251_v28 = vsel %vm1568_vm3, 1.0, %v8805_v8  ;;  %vm4820_vm3 = vcmask 138240  }
 0x13c   : > { %v7729_v17 = vpop.f32.mrb[0].mxu1 }
 0x13d   : > { %v1546_v19 = vadd.f32 %v7729_v17, %v7248_v16  ;;  %v1540_v20 = vpop.f32.mrb[1].mxu1 }
 0x13e   : > { %v1541_v23 = vadd.f32 %v7248_v16, %v1540_v20 }
 0x13f   : > { %v1561_v25 = vadd.f32 %v1557_v18, %v1546_v19 }
 0x140   : > { %v1560_v26 = vadd.f32 %v1555_v21, %v1541_v23  ;;  %v1659_v21 = vld [vmem:[%s8885_s30 + $0x8] sm:$0xff] }
 0x142   : > { %v8299_v27 = vpack.c.bf16 %v1561_v25, %v1560_v26 }
 0x144   : > { %8300 = vmatpush3.bf16.msra.mxu1 %v8299_v27 }
 0x145   : > { %7748 = vmatprep.subr.mxu1 %v8805_v8 }
 0x147   : > { %7735 = vmatmul.mubr.msk.f32.vlgmr.msra.gmra.mrb[2].mxu1 %vm1467_vm0, %v7251_v28 }
 0x148   : > { %7750 = vmatprep.mubr.msk.f32.mxu1 %vm8804_vm1, %v8805_v8 }
 0x21a   : > { %v1640_v31 = vpop.f32.mrb[2].mxu1 }
 0x21b   : > { %v1647_v32 = vrot.slane %v1640_v31, 7  ;;  %v7736_v33 = vpop.f32.mrb[3].mxu1  ;;  %v1658_v31 = vld [vmem:[%s8885_s30] sm:$0xff] }
 0x21d   : > { %v9100_v34 = vsel %vm1649_vm4, %v1645_v30, %v1647_v32 }
 0x21e   : > { %v1688_v35 = vsel %vm1687_vm5, %v9100_v34, 0.0  ;;  %v1693_v36 = vmul.f32 %v9100_v34, %v9100_v34 }
 0x21f   : > { %1689 = vadd.xlane.f32.xlu0 %v1688_v35 }
 0x220   : > { %v1694_v37 = vsel %vm1687_vm5, %v1693_v36, 0.0 }
 0x221   : > { %1695 = vadd.xlane.f32.xlu1 %v1694_v37 }
 0x2ac   : > { %v1690_v44 = vpop.xlane.xlu0 %1689 }
 0x2ad   : > { %v1692_v45 = vmul.f32 0.03125, %v1690_v44 }
 0x2ae   : > { %v1696_v46 = vpop.xlane.xlu1 %1695 }
 0x2af   : > { %v1698_v47 = vmul.f32 %v1692_v45, %v1692_v45  ;;  %v1697_v48 = vmul.f32 0.03125, %v1696_v46  ;;  %v1700_v51 = vsub.f32 %v9100_v34, %v1692_v45 }
 0x2b1   : > { %v1699_v49 = vsub.f32 %v1697_v48, %v1698_v47 }
 0x2b3   : > { %v1701_v50 = vadd.f32 1e-05, %v1699_v49 }
 0x2b5   : > { %8606 = vrsqrt.f32 %v1701_v50 }
 0x2bf   : > { %v8607_v52 = vpop.eup %8606 }
 0x2c0   : > { %v1703_v54 = vmul.f32 %v8607_v52, %v1700_v51 }
 0x2c2   : > { %v1710_v56 = vmul.f32 %v7253_v53, %v1703_v54 }
 0x2c4   : > { %v1717_v57 = vadd.f32 %v7254_v55, %v1710_v56 }
 0x2c6   : > { %7746 = vmatmul.mubr.msk.f32.vlgmr.msra.gmra.mrb[0].mxu0 %vm1724_vm6, %v1717_v57 }
 0x2c7   : > { %7760 = vmatprep.mubr.msk.f32.mxu0 %vm8804_vm1, %v8805_v8 }
 0x399   : > { %v1794_v59 = vpop.f32.mrb[0].mxu0 }
 0x39a   : > { %v9120_v60 = vadd.f32 %v7255_v58, %v1794_v59  ;;  %v7747_v61 = vpop.f32.mrb[1].mxu0  ;;  %v1660_v59 = vld [vmem:[%s8885_s30 + $0x10] sm:$0xff] }
 0x39c   : > { %1799 = vrot.lane.b32.xlu1 %v9120_v60, %s9997_s26 }
 0x3a0   : > { %1970 = vrot.lane.b32.xlu1 %v9120_v60, %s9993_s28 }
 0x3a4   : > { %1968 = vrot.lane.b32.xlu1 %v9120_v60, %s9987_s1 }
 0x40e   : > { %v1800_v62 = vpop.permute.xlu1 %1799 }
 0x40f   : > { %7749 = vmatpush3.xpose.msk.msra.mxu1 %vm1801_vm7, %v1800_v62 }
 0x410   : > { %7753 = vmatprep.subr.mxu1 %v8805_v8 }
 0x412   : > { %7751 = vmatmul.mubr.msk.f32.vlgmr.msra.gmra.mrb[4].mxu1 %vm1801_vm7, %v9120_v60  ;;  %v1971_v63 = vpop.permute.xlu1 %1970 }
 0x413   : > { %7759 = vmatpush3.xpose.msk.msra.mxu0 %vm1801_vm7, %v1971_v63  ;;  %7755 = vmatprep.mubr.msk.f32.mxu1 %vm8804_vm1, %v8805_v8 }
 0x414   : > { %7768 = vmatprep.subr.mxu0 %v8805_v8 }
 0x416   : > { %v1969_v0 = vpop.permute.xlu1 %1968 }
 0x417   : > { %7761 = vmatmul.mubr.msk.f32.vlgmr.msra.gmra.mrb[2].mxu0 %vm1801_vm7, %v1969_v0 }
 0x418   : > { %7770 = vmatprep.mubr.msk.f32.mxu0 %vm8804_vm1, %v8805_v8  ;;  %7769 = vmatpush3.msra.mxu0 %v1659_v21 }
 0x419   : > { %7778 = vmatprep.subr.mxu0 %v8805_v8 }
 0x4e5   : > { %v1872_v1 = vpop.f32.mrb[4].mxu1 }
 0x4e6   : > { %v1876_v2 = vmul.f32 0.35355338, %v1872_v1  ;;  %v7752_v3 = vpop.f32.mrb[5].mxu1 }
 0x4e8   : > { %v1878_v4 = vsel %vm1877_vm8, %v1876_v2, -inf }
 0x4e9   : > { %1879 = vmax.xlane.f32.xlu1 %v1878_v4 }
 0x4ea   : > { %v2042_v5 = vpop.f32.mrb[2].mxu0 }
 0x4eb   : > { %v2046_v6 = vmul.f32 0.35355338, %v2042_v5  ;;  %v7762_v9 = vpop.f32.mrb[3].mxu0 }
 0x4ed   : > { %v2047_v10 = vsel %vm1877_vm8, %v2046_v6, -inf }
 0x4ee   : > { %2048 = vmax.xlane.f32.xlu0 %v2047_v10 }
 0x4fa   : > { %2058 = vrot.lane.b32.xlu1 %v9120_v60, %s9991_s2 }
 0x576   : > { %v1880_v11 = vpop.xlane.xlu1 %1879 }
 0x577   : > { %v1881_v12 = vsub.f32 %v1876_v2, %v1880_v11 }
 0x579   : > { %v1882_v13 = vmul.f32 1.442695, %v1881_v12 }
 0x57a   : > { %v2059_v28 = vpop.permute.xlu1 %2058 }
 0x57b   : > { %8608 = vpow2.f32 %v1882_v13  ;;  %v2049_v14 = vpop.xlane.xlu0 %2048 }
 0x57c   : > { %v2050_v15 = vsub.f32 %v2046_v6, %v2049_v14 }
 0x57e   : > { %v2051_v16 = vmul.f32 1.442695, %v2050_v15 }
 0x580   : > { %8610 = vpow2.f32 %v2051_v16  ;;  %v1661_v16 = vld [vmem:[%s8885_s30 + $0x18] sm:$0xff] }
 0x585   : > { %v8609_v17 = vpop.eup %8608 }
 0x586   : > { %v1884_v18 = vsel %vm1877_vm8, %v8609_v17, 0.0 }
 0x587   : > { %1885 = vadd.xlane.f32.xlu0 %v1884_v18 }
 0x58a   : > { %v8611_v19 = vpop.eup %8610 }
 0x58b   : > { %v2053_v20 = vsel %vm1877_vm8, %v8611_v19, 0.0 }
 0x58c   : > { %2054 = vadd.xlane.f32.xlu0 %v2053_v20 }
 0x5a2   : > { %1889 = vrot.lane.b32.xlu0 %v9120_v60, %s9995_s7 }
 0x5a6   : > { %2283 = vrot.lane.b32.xlu0 %v9120_v60, %s9989_s10 }
 0x5aa   : > { %2281 = vrot.lane.b32.xlu0 %v9120_v60, %s9985_s11  ;;  %s10044_s11 = sld [smem:[#allocation12_spill]] }
 0x614   : > { %v1886_v23 = vpop.xlane.xlu0 %1885 }
 0x615   : > { %8612 = vrcp.f32 %v1886_v23  ;;  %v7277_v23 = vld [vmem:[%s10037_s6] ss:$0 sm:$0xff] }
 0x619   : > { %v2055_v24 = vpop.xlane.xlu0 %2054 }
 0x61a   : > { %8614 = vrcp.f32 %v2055_v24 }
 0x61d   : > { %v1890_v25 = vpop.permute.xlu0 %1889 }
 0x61e   : > { %7754 = vmatpush3.msk.msra.mxu1 %vm1895_vm9, %v1890_v25 }
 0x61f   : > { %v8613_v26 = vpop.eup %8612  ;;  %7763 = vmatprep.subr.mxu1 %v8805_v8 }
 0x620   : > { %v1888_v27 = vmul.f32 %v8613_v26, %v8609_v17 }
 0x621   : > { %v2284_v35 = vpop.permute.xlu0 %2283 }
 0x622   : > { %7756 = vmatmul.mubr.msk.f32.vlgmr.msra.gmra.mrb[6].mxu1 %vm1891_vm10, %v1888_v27 }
 0x623   : > { %7764 = vmatpush3.msk.msra.mxu1 %vm1895_vm9, %v2059_v28  ;;  %7765 = vmatprep.mubr.msk.f32.mxu1 %vm8804_vm1, %v8805_v8 }
 0x624   : > { %v8615_v29 = vpop.eup %8614  ;;  %7773 = vmatprep.subr.mxu1 %v8805_v8 }
 0x625   : > { %v2057_v30 = vmul.f32 %v8615_v29, %v8611_v19  ;;  %v2282_v38 = vpop.permute.xlu0 %2281  ;;  %v1665_v29 = vld [vmem:[%s8905_s27] sm:$0xff] }
 0x627   : > { %7766 = vmatmul.mubr.msk.f32.vlgmr.msra.gmra.mrb[8].mxu1 %vm1891_vm10, %v2057_v30  ;;  %v1666_v30 = vld [vmem:[%s8905_s27 + $0x8] sm:$0xff] }
 0x628   : > { %7775 = vmatprep.mubr.msk.f32.mxu1 %vm8804_vm1, %v8805_v8  ;;  %7774 = vmatpush3.msra.mxu1 %v1658_v31  ;;  %v8308_v31 = vpack.c.bf16 %v1666_v30, %v1665_v29 }
 0x629   : > { %7783 = vmatprep.subr.mxu1 %v8805_v8 }
 0x6f5   : > { %v1964_v32 = vpop.f32.mrb[6].mxu1 }
 0x6f6   : > { %v7757_v33 = vpop.f32.mrb[7].mxu1  ;;  %7776 = vmatmul.mubr.msk.f32.vlgmr.msra.gmra.mrb[10].mxu1 %vm1801_vm7, %v1964_v32  ;;  %v1667_v32 = vld [vmem:[%s8905_s27 + $0x10] sm:$0xff] }
 0x6f7   : > { %7785 = vmatprep.mubr.msk.f32.mxu1 %vm8804_vm1, %v8805_v8 }
 0x6fa   : > { %v2131_v36 = vpop.f32.mrb[8].mxu1 }
 0x6fb   : > { %v7767_v37 = vpop.f32.mrb[9].mxu1  ;;  %7771 = vmatmul.mubr.msk.f32.vlgmr.msra.gmra.mrb[4].mxu0 %vm1801_vm7, %v2131_v36  ;;  %v1671_v36 = vld [vmem:[%s8915_s17 + $0x8] sm:$0xff] }
 0x6fc   : > { %7779 = vmatpush3.xpose.msk.msra.mxu0 %vm1801_vm7, %v2284_v35  ;;  %7780 = vmatprep.mubr.msk.f32.mxu0 %vm8804_vm1, %v8805_v8  ;;  %v1670_v35 = vld [vmem:[%s8915_s17] sm:$0xff] }
 0x6fd   : > { %7788 = vmatprep.subr.mxu0 %v8805_v8  ;;  %v8314_v37 = vpack.c.bf16 %v1671_v36, %v1670_v35  ;;  %v7286_v35 = vld [vmem:[%s8875_s19 + $0x28] sm:$0xff] }
 0x6ff   : > { %7781 = vmatmul.mubr.msk.f32.vlgmr.msra.gmra.mrb[6].mxu0 %vm1801_vm7, %v2282_v38 }
 0x700   : > { %7790 = vmatprep.mubr.msk.f32.mxu0 %vm8804_vm1, %v8805_v8  ;;  %7789 = vmatpush3.msra.mxu0 %v1660_v59  ;;  %v1677_v59 = vld [vmem:[%s8915_s17 + $0x38] sm:$0xff] }
 0x701   : > { %7798 = vmatprep.subr.mxu0 %v8805_v8 }
 0x7c9   : > { %v2277_v39 = vpop.f32.mrb[10].mxu1 }
 0x7ca   : > { %v7777_v40 = vpop.f32.mrb[11].mxu1 }
 0x7ce   : > { %v2204_v41 = vpop.f32.mrb[4].mxu0 }
 0x7cf   : > { %v2278_v42 = vadd.f32 %v2277_v39, %v2204_v41  ;;  %v7772_v43 = vpop.f32.mrb[5].mxu0 }
 0x7d2   : > { %v2355_v44 = vpop.f32.mrb[6].mxu0 }
 0x7d3   : > { %v2359_v45 = vmul.f32 0.35355338, %v2355_v44  ;;  %v7782_v46 = vpop.f32.mrb[7].mxu0 }
 0x7d5   : > { %v2360_v47 = vsel %vm1877_vm8, %v2359_v45, -inf }
 0x7d6   : > { %2361 = vmax.xlane.f32.xlu0 %v2360_v47 }
 0x7ec   : > { %2371 = vrot.lane.b32.xlu0 %v9120_v60, %s9983_s18  ;;  %s10043_s18 = sld [smem:[#allocation11_spill]] }
 0x7f0   : > { %2522 = vrot.lane.b32.xlu0 %v9120_v60, %s9977_s22  ;;  %s9979_s22 = smov 40  }
 0x863   : > { %v2362_v48 = vpop.xlane.xlu0 %2361 }
 0x864   : > { %v2363_v49 = vsub.f32 %v2359_v45, %v2362_v48 }
 0x866   : > { %v2364_v50 = vmul.f32 1.442695, %v2363_v49 }
 0x867   : > { %v2372_v51 = vpop.permute.xlu0 %2371 }
 0x868   : > { %8616 = vpow2.f32 %v2364_v50  ;;  %7784 = vmatpush3.msk.msra.mxu1 %vm1895_vm9, %v2372_v51 }
 0x869   : > { %7793 = vmatprep.subr.mxu1 %v8805_v8 }
 0x86b   : > { %v2523_v58 = vpop.permute.xlu0 %2522 }
 0x872   : > { %v8617_v52 = vpop.eup %8616 }
 0x873   : > { %v2366_v53 = vsel %vm1877_vm8, %v8617_v52, 0.0 }
 0x874   : > { %2367 = vadd.xlane.f32.xlu1 %v2366_v53  ;;  %v1673_v53 = vld [vmem:[%s8915_s17 + $0x18] sm:$0xff] }
 0x885   : > { %2524 = vrot.lane.b32.xlu1 %v9120_v60, %s9981_s23  ;;  %s10042_s23 = sld [smem:[#allocation10_spill]] }
 0x88b   : > { %v7279_v49 = vld [vmem:[%s10042_s23] ss:$0 sm:$0xff] }
 0x901   : > { %v2368_v54 = vpop.xlane.xlu1 %2367 }
 0x902   : > { %8618 = vrcp.f32 %v2368_v54 }
 0x905   : > { %v2525_v57 = vpop.permute.xlu1 %2524 }
 0x90c   : > { %v8619_v55 = vpop.eup %8618 }
 0x90d   : > { %v2370_v56 = vmul.f32 %v8619_v55, %v8617_v52  ;;  %v1672_v52 = vld [vmem:[%s8915_s17 + $0x10] sm:$0xff]  ;;  %v1674_v55 = vld [vmem:[%s8915_s17 + $0x20] sm:$0xff] }
 0x90e   : > { %v8317_v54 = vpack.c.bf16 %v1673_v53, %v1672_v52  ;;  %v7321_v53 = vld [vmem:[%s8880_s24 + $0x1] ss:$0 sm:$0xff] }
 0x90f   : > { %7786 = vmatmul.mubr.msk.f32.vlgmr.msra.gmra.mrb[12].mxu1 %vm1891_vm10, %v2370_v56  ;;  %v1675_v56 = vld [vmem:[%s8915_s17 + $0x28] sm:$0xff] }
 0x910   : > { %7794 = vmatpush3.xpose.msk.msra.mxu1 %vm1801_vm7, %v2525_v57  ;;  %7795 = vmatprep.mubr.msk.f32.mxu1 %vm8804_vm1, %v8805_v8  ;;  %v8320_v57 = vpack.c.bf16 %v1675_v56, %v1674_v55 }
 0x911   : > { %7803 = vmatprep.subr.mxu1 %v8805_v8 }
 0x913   : > { %7796 = vmatmul.mubr.msk.f32.vlgmr.msra.gmra.mrb[14].mxu1 %vm1801_vm7, %v2523_v58  ;;  %v1676_v58 = vld [vmem:[%s8915_s17 + $0x30] sm:$0xff] }
 0x914   : > { %7805 = vmatprep.mubr.msk.f32.mxu1 %vm8804_vm1, %v8805_v8  ;;  %7804 = vmatpush3.msra.mxu1 %v1661_v16 }
 0x915   : > { %8313 = vmatprep.subr.bf16.mxu1 %v8803_v7 }
 0x9e2   : > { %v2444_v61 = vpop.f32.mrb[12].mxu1 }
 0x9e3   : > { %v7787_v62 = vpop.f32.mrb[13].mxu1  ;;  %7791 = vmatmul.mubr.msk.f32.vlgmr.msra.gmra.mrb[8].mxu0 %vm1801_vm7, %v2444_v61  ;;  %v8323_v61 = vpack.c.bf16 %v1677_v59, %v1676_v58 }
 0x9e4   : > { %7800 = vmatprep.mubr.msk.f32.mxu0 %vm8804_vm1, %v8805_v8  ;;  %v1678_v62 = vld [vmem:[%s8915_s17 + $0x40] sm:$0xff] }
 0x9e6   : > { %v2596_v63 = vpop.f32.mrb[14].mxu1 }
 0x9e7   : > { %v2600_v0 = vmul.f32 0.35355338, %v2596_v63  ;;  %v7797_v1 = vpop.f32.mrb[15].mxu1  ;;  %v1679_v63 = vld [vmem:[%s8915_s17 + $0x48] sm:$0xff] }
 0x9e8   : > { %v1680_v1 = vld [vmem:[%s8915_s17 + $0x50] sm:$0xff] }
 0x9e9   : > { %v2601_v2 = vsel %vm1877_vm8, %v2600_v0, -inf }
 0x9ea   : > { %2602 = vmax.xlane.f32.xlu0 %v2601_v2  ;;  %v1681_v2 = vld [vmem:[%s8915_s17 + $0x58] sm:$0xff] }
 0xa00   : > { %2612 = vrot.lane.b32.xlu0 %v9120_v60, %s9979_s22  ;;  %s10041_s22 = sld [smem:[#allocation9_spill]] }
 0xa06   : > { %v7278_v47 = vld [vmem:[%s10041_s22] ss:$0 sm:$0xff] }
 0xa77   : > { %v2603_v3 = vpop.xlane.xlu0 %2602 }
 0xa78   : > { %v2604_v4 = vsub.f32 %v2600_v0, %v2603_v3  ;;  %v8326_v0 = vpack.c.bf16 %v1679_v63, %v1678_v62  ;;  %v8329_v3 = vpack.c.bf16 %v1681_v2, %v1680_v1 }
 0xa7a   : > { %v2605_v5 = vmul.f32 1.442695, %v2604_v4  ;;  %v1682_v4 = vld [vmem:[%s8915_s17 + $0x60] sm:$0xff] }
 0xa7b   : > { %v2613_v6 = vpop.permute.xlu0 %2612 }
 0xa7c   : > { %8620 = vpow2.f32 %v2605_v5  ;;  %7799 = vmatpush3.msk.msra.mxu0 %vm1895_vm9, %v2613_v6  ;;  %v1683_v5 = vld [vmem:[%s8915_s17 + $0x68] sm:$0xff] }
 0xa7d   : > { %8307 = vmatprep.subr.bf16.mxu0 %v8803_v7  ;;  %v8332_v6 = vpack.c.bf16 %v1683_v5, %v1682_v4 }
 0xa86   : > { %v8621_v9 = vpop.eup %8620 }
 0xa87   : > { %v2607_v10 = vsel %vm1877_vm8, %v8621_v9, 0.0 }
 0xa88   : > { %2608 = vadd.xlane.f32.xlu1 %v2607_v10  ;;  %v1685_v10 = vld [vmem:[%s8915_s17 + $0x78] sm:$0xff] }
 0xab6   : > { %v2517_v11 = vpop.f32.mrb[8].mxu0 }
 0xab7   : > { %v2521_v12 = vadd.f32 %v2517_v11, %v2278_v42  ;;  %v7792_v13 = vpop.f32.mrb[9].mxu0 }
 0xb15   : > { %v2609_v14 = vpop.xlane.xlu1 %2608 }
 0xb16   : > { %8622 = vrcp.f32 %v2609_v14 }
 0xb20   : > { %v8623_v60 = vpop.eup %8622 }
 0xb21   : > { %v2611_v15 = vmul.f32 %v8623_v60, %v8621_v9  ;;  %v1684_v9 = vld [vmem:[%s8915_s17 + $0x70] sm:$0xff] }
 0xb22   : > { %v8335_v11 = vpack.c.bf16 %v1685_v10, %v1684_v9 }
 0xb23   : > { %7801 = vmatmul.mubr.msk.f32.vlgmr.msra.gmra.mrb[10].mxu0 %vm1891_vm10, %v2611_v15 }
 0xb24   : > { %7816 = vmatprep.mubr.msk.f32.mxu0 %vm8804_vm1, %v8805_v8  ;;  %8309 = vmatpush3.bf16.msra.mxu0 %v8308_v31 }
 0xb25   : > { %8310 = vmatprep.subr.bf16.mxu0 %v8803_v7 }
 0xbf6   : > { %v2685_v17 = vpop.f32.mrb[10].mxu0 }
 0xbf7   : > { %v7802_v18 = vpop.f32.mrb[11].mxu0  ;;  %7806 = vmatmul.mubr.msk.f32.vlgmr.msra.gmra.mrb[16].mxu1 %vm1801_vm7, %v2685_v17 }
 0xbf8   : > { %7851 = vmatprep.mubr.msk.f32.mxu1 %vm8804_vm1, %v8805_v8  ;;  %8315 = vmatpush3.bf16.msra.mxu1 %v8314_v37  ;;  %v7287_v37 = vld [vmem:[%s8875_s19 + $0x30] sm:$0xff] }
 0xbf9   : > { %8316 = vmatprep.subr.bf16.mxu1 %v8803_v7 }
 0xbfc   : > { %8318 = vmatpush3.bf16.msra.mxu1 %v8317_v54 }
 0xbfd   : > { %8319 = vmatprep.subr.bf16.mxu1 %v8803_v7 }
 0xc00   : > { %8321 = vmatpush3.bf16.msra.mxu1 %v8320_v57 }
 0xc01   : > { %8322 = vmatprep.subr.bf16.mxu1 %v8803_v7 }
 0xc04   : > { %8324 = vmatpush3.bf16.msra.mxu1 %v8323_v61 }
 0xc05   : > { %8325 = vmatprep.subr.bf16.mxu1 %v8803_v7 }
 0xc08   : > { %8327 = vmatpush3.bf16.msra.mxu1 %v8326_v0 }
 0xc09   : > { %8328 = vmatprep.subr.bf16.mxu1 %v8803_v7 }
 0xc0c   : > { %8330 = vmatpush3.bf16.msra.mxu1 %v8329_v3 }
 0xc0d   : > { %8331 = vmatprep.subr.bf16.mxu1 %v8803_v7 }
 0xc10   : > { %8333 = vmatpush3.bf16.msra.mxu1 %v8332_v6 }
 0xc11   : > { %8334 = vmatprep.subr.bf16.mxu1 %v8803_v7 }
 0xc14   : > { %8336 = vmatpush3.bf16.msra.mxu1 %v8335_v11 }
 0xc15   : > { %7890 = vmatprep.subr.mxu1 %v8805_v8 }
 0xcca   : > { %v2758_v19 = vpop.f32.mrb[16].mxu1 }
 0xccb   : > { %v2762_v20 = vadd.f32 %v2758_v19, %v2521_v12  ;;  %v7807_v21 = vpop.f32.mrb[17].mxu1  ;;  %v7280_v12 = vld [vmem:[%s10043_s18] ss:$0 sm:$0xff] }
 0xccd   : > { %v2763_v24 = vadd.f32 %v2762_v20, %v9100_v34  ;;  %v1668_v34 = vld [vmem:[%s8905_s27 + $0x18] sm:$0xff] }
 0xcce   : > { %v8311_v33 = vpack.c.bf16 %v1668_v34, %v1667_v32 }
 0xccf   : > { %v9215_v25 = vadd.f32 %v7277_v23, %v2763_v24 }
 0xcd0   : > { %8312 = vmatpush3.bf16.msra.mxu0 %v8311_v33  ;;  %v7285_v33 = vld [vmem:[%s8875_s19 + $0x20] sm:$0xff] }
 0xcd1   : > { %v2771_v26 = vsel %vm1687_vm5, %v9215_v25, 0.0  ;;  %v2775_v27 = vmul.f32 %v9215_v25, %v9215_v25  ;;  %8337 = vmatprep.subr.bf16.mxu0 %v8803_v7  ;;  %v8338_v36 = vpack.c.bf16 %v7286_v35, %v7285_v33 }
 0xcd2   : > { %2772 = vadd.xlane.f32.xlu1 %v2771_v26  ;;  %v7282_v26 = vld [vmem:[%s10044_s11] ss:$0 sm:$0xff] }
 0xcd3   : > { %v2776_v28 = vsel %vm1687_vm5, %v2775_v27, 0.0 }
 0xcd6   : > { %2777 = vadd.xlane.f32.xlu1 %v2776_v28 }
 0xd5f   : > { %v2773_v38 = vpop.xlane.xlu1 %2772 }
 0xd60   : > { %v2774_v39 = vmul.f32 0.03125, %v2773_v38  ;;  %v7288_v38 = vld [vmem:[%s8875_s19 + $0x38] sm:$0xff] }
 0xd62   : > { %v2780_v41 = vmul.f32 %v2774_v39, %v2774_v39  ;;  %v2782_v45 = vsub.f32 %v9215_v25, %v2774_v39 }
 0xd63   : > { %v2778_v40 = vpop.xlane.xlu1 %2777 }
 0xd64   : > { %v2779_v42 = vmul.f32 0.03125, %v2778_v40 }
 0xd66   : > { %v2781_v43 = vsub.f32 %v2779_v42, %v2780_v41 }
 0xd68   : > { %v2783_v44 = vadd.f32 1e-05, %v2781_v43 }
 0xd6a   : > { %8624 = vrsqrt.f32 %v2783_v44 }
 0xd74   : > { %v8625_v46 = vpop.eup %8624 }
 0xd75   : > { %v2785_v48 = vmul.f32 %v8625_v46, %v2782_v45 }
 0xd77   : > { %v2792_v50 = vmul.f32 %v7278_v47, %v2785_v48  ;;  %v7319_v48 = vld [vmem:[%s10036_s8 + $0x1] ss:$0 sm:$0xff]  ;;  %s10054_s8 = sld [smem:[#allocation16_spill]] }
 0xd79   : > { %v2799_v51 = vadd.f32 %v7279_v49, %v2792_v50  ;;  %v7320_v50 = vld [vmem:[%s8870_s14 + $0x1] ss:$0 sm:$0xff] }
 0xd7b   : > { %7817 = vmatmul.mubr.msk.f32.vlgmr.msra.gmra.mrb[12].mxu0 %vm1724_vm6, %v2799_v51 }
 0xd7c   : > { %7862 = vmatprep.mubr.msk.f32.mxu0 %vm8804_vm1, %v8805_v8  ;;  %8339 = vmatpush3.bf16.msra.mxu0 %v8338_v36 }
 0xd7d   : > { %8340 = vmatprep.subr.bf16.mxu0 %v8803_v7 }
 0xe4e   : > { %v2875_v13 = vpop.f32.mrb[12].mxu0 }
 0xe4f   : > { %v2876_v14 = vadd.f32 %v7280_v12, %v2875_v13  ;;  %v7818_v60 = vpop.f32.mrb[13].mxu0  ;;  %v7290_v12 = vld [vmem:[%s8885_s30 + $0x20] sm:$0xff] }
 0xe51   : > { %v2880_v15 = vmul.f32 0.044715, %v2876_v14  ;;  %v2879_v21 = vmul.f32 0.5, %v2876_v14 }
 0xe53   : > { %v2881_v16 = vmul.f32 %v2880_v15, %v2876_v14 }
 0xe55   : > { %v2882_v17 = vmul.f32 %v2881_v16, %v2876_v14 }
 0xe57   : > { %v2883_v18 = vadd.f32 %v2882_v17, %v2876_v14 }
 0xe59   : > { %v2884_v19 = vmul.f32 0.7978846, %v2883_v18 }
 0xe5b   : > { %8626 = vtanh.f32 %v2884_v19 }
 0xe65   : > { %v8627_v20 = vpop.eup %8626 }
 0xe66   : > { %v2886_v23 = vadd.f32 1.0, %v8627_v20 }
 0xe68   : > { %v2887_v24 = vmul.f32 %v2886_v23, %v2879_v21 }
 0xe6a   : > { %7852 = vmatmul.mubr.f32.vlgmr.msra.gmra.mrb[18].mxu1 %v2887_v24 }
 0xe6b   : > { %7892 = vmatprep.mubr.msk.f32.mxu1 %vm8804_vm1, %v8805_v8  ;;  %7891 = vmatpush3.msra.mxu1 %v7290_v12 }
 0xe6c   : > { %7900 = vmatprep.subr.mxu1 %v8805_v8 }
 0xf3d   : > { %v2960_v27 = vpop.f32.mrb[18].mxu1 }
 0xf3e   : > { %v2961_v28 = vadd.f32 %v7282_v26, %v2960_v27  ;;  %v7853_v29 = vpop.f32.mrb[19].mxu1 }
 0xf40   : > { %v9263_v30 = vadd.f32 %v2961_v28, %v9215_v25  ;;  %v8341_v25 = vpack.c.bf16 %v7288_v38, %v7287_v37 }
 0xf42   : > { %v3013_v31 = vsel %vm1687_vm5, %v9263_v30, 0.0  ;;  %v3017_v32 = vmul.f32 %v9263_v30, %v9263_v30  ;;  %8342 = vmatpush3.bf16.msra.mxu0 %v8341_v25 }
 0xf43   : > { %3014 = vadd.xlane.f32.xlu1 %v3013_v31  ;;  %7865 = vmatprep.subr.mxu0 %v8805_v8 }
 0xf44   : > { %v3018_v34 = vsel %vm1687_vm5, %v3017_v32, 0.0  ;;  %v7291_v32 = vld [vmem:[%s8885_s30 + $0x28] sm:$0xff] }
 0xf47   : > { %3019 = vadd.xlane.f32.xlu1 %v3018_v34 }
 0xfd0   : > { %v3015_v39 = vpop.xlane.xlu1 %3014 }
 0xfd1   : > { %v3016_v40 = vmul.f32 0.03125, %v3015_v39 }
 0xfd3   : > { %v3022_v42 = vmul.f32 %v3016_v40, %v3016_v40  ;;  %v3024_v46 = vsub.f32 %v9263_v30, %v3016_v40 }
 0xfd4   : > { %v3020_v41 = vpop.xlane.xlu1 %3019 }
 0xfd5   : > { %v3021_v43 = vmul.f32 0.03125, %v3020_v41 }
 0xfd7   : > { %v3023_v44 = vsub.f32 %v3021_v43, %v3022_v42 }
 0xfd9   : > { %v3025_v45 = vadd.f32 1e-05, %v3023_v44 }
 0xfdb   : > { %8628 = vrsqrt.f32 %v3025_v45 }
 0xfe5   : > { %v8629_v47 = vpop.eup %8628 }
 0xfe6   : > { %v3027_v49 = vmul.f32 %v8629_v47, %v3024_v46 }
 0xfe8   : > { %v3034_v51 = vmul.f32 %v7319_v48, %v3027_v49 }
 0xfea   : > { %v3041_v52 = vadd.f32 %v7320_v50, %v3034_v51 }
 0xfec   : > { %7863 = vmatmul.mubr.msk.f32.vlgmr.msra.gmra.mrb[14].mxu0 %vm1724_vm6, %v3041_v52 }
 0xfed   : > { %7867 = vmatprep.mubr.msk.f32.mxu0 %vm8804_vm1, %v8805_v8 }
0x10bf   : > { %v3117_v54 = vpop.f32.mrb[14].mxu0 }
0x10c0   : > { %v9283_v55 = vadd.f32 %v7321_v53, %v3117_v54  ;;  %v7864_v56 = vpop.f32.mrb[15].mxu0  ;;  %v7292_v54 = vld [vmem:[%s8885_s30 + $0x30] sm:$0xff] }
0x10c2   : > { %3122 = vrot.lane.b32.xlu0 %v9283_v55, %s9997_s26  ;;  %s10050_s26 = sld [smem:[#allocation4_spill]] }
0x10c8   : > { %s9387_s3 = scalar_lea.vmem %s10050_s26, %s9070_s0  ;;  %s10051_s26 = sld [smem:[#allocation15_spill]] }
0x1134   : > { %v3123_v57 = vpop.permute.xlu0 %3122 }
0x1135   : > { %7866 = vmatpush3.xpose.msk.msra.mxu0 %vm1801_vm7, %v3123_v57 }
0x1136   : > { %7870 = vmatprep.subr.mxu0 %v8805_v8 }
0x1138   : > { %7868 = vmatmul.mubr.msk.f32.vlgmr.msra.gmra.mrb[16].mxu0 %vm1801_vm7, %v9283_v55 }
0x1139   : > { %7872 = vmatprep.mubr.msk.f32.mxu0 %vm8804_vm1, %v8805_v8 }
0x120b   : > { %v3194_v58 = vpop.f32.mrb[16].mxu0 }
0x120c   : > { %v3198_v59 = vmul.f32 0.35355338, %v3194_v58  ;;  %v7869_v61 = vpop.f32.mrb[17].mxu0 }
0x120e   : > { %v3199_v62 = vsel %vm1877_vm8, %v3198_v59, -inf }
0x120f   : > { %3200 = vmax.xlane.f32.xlu1 %v3199_v62 }
0x1220   : > { %3210 = vrot.lane.b32.xlu1 %v9283_v55, %s9995_s7  ;;  %s10049_s7 = smov 40  }
0x1224   : > { %3289 = vrot.lane.b32.xlu1 %v9283_v55, %s9993_s28  ;;  %s10048_s28 = smov 104  }
0x1228   : > { %3287 = vrot.lane.b32.xlu1 %v9283_v55, %s9987_s1  ;;  %s10045_s1 = smov 112  }
0x129c   : > { %v3201_v63 = vpop.xlane.xlu1 %3200 }
0x129d   : > { %v3202_v0 = vsub.f32 %v3198_v59, %v3201_v63 }
0x129f   : > { %v3203_v1 = vmul.f32 1.442695, %v3202_v0 }
0x12a0   : > { %v3211_v2 = vpop.permute.xlu1 %3210 }
0x12a1   : > { %8630 = vpow2.f32 %v3203_v1  ;;  %7871 = vmatpush3.msk.msra.mxu0 %vm1895_vm9, %v3211_v2 }
0x12a2   : > { %7875 = vmatprep.subr.mxu0 %v8805_v8 }
0x12a4   : > { %v3290_v9 = vpop.permute.xlu1 %3289 }
0x12a8   : > { %v3288_v11 = vpop.permute.xlu1 %3287 }
0x12ab   : > { %v8631_v3 = vpop.eup %8630 }
0x12ac   : > { %v3205_v4 = vsel %vm1877_vm8, %v8631_v3, 0.0 }
0x12ad   : > { %3206 = vadd.xlane.f32.xlu0 %v3205_v4 }
0x133a   : > { %v3207_v5 = vpop.xlane.xlu0 %3206 }
0x133b   : > { %8632 = vrcp.f32 %v3207_v5 }
0x1345   : > { %v8633_v6 = vpop.eup %8632 }
0x1346   : > { %v3209_v10 = vmul.f32 %v8633_v6, %v8631_v3 }
0x1348   : > { %7873 = vmatmul.mubr.msk.f32.vlgmr.msra.gmra.mrb[18].mxu0 %vm1891_vm10, %v3209_v10 }
0x1349   : > { %7876 = vmatpush3.xpose.msk.msra.mxu0 %vm1801_vm7, %v3290_v9  ;;  %7877 = vmatprep.mubr.msk.f32.mxu0 %vm8804_vm1, %v8805_v8 }
0x134a   : > { %7880 = vmatprep.subr.mxu0 %v8805_v8 }
0x134c   : > { %7878 = vmatmul.mubr.msk.f32.vlgmr.msra.gmra.mrb[20].mxu0 %vm1801_vm7, %v3288_v11 }
0x134d   : > { %7882 = vmatprep.mubr.msk.f32.mxu0 %vm8804_vm1, %v8805_v8 }
0x141b   : > { %v3283_v13 = vpop.f32.mrb[18].mxu0 }
0x141c   : > { %v7874_v14 = vpop.f32.mrb[19].mxu0  ;;  %7893 = vmatmul.mubr.msk.f32.vlgmr.msra.gmra.mrb[20].mxu1 %vm1801_vm7, %v3283_v13  ;;  %v7293_v13 = vld [vmem:[%s8885_s30 + $0x38] sm:$0xff] }
0x141d   : > { %7902 = vmatprep.mubr.msk.f32.mxu1 %vm8804_vm1, %v8805_v8 }
0x141f   : > { %v3361_v60 = vpop.f32.mrb[20].mxu0 }
0x1420   : > { %v3365_v15 = vmul.f32 0.35355338, %v3361_v60  ;;  %v7879_v16 = vpop.f32.mrb[21].mxu0 }
0x1422   : > { %v3366_v17 = vsel %vm1877_vm8, %v3365_v15, -inf }
0x1423   : > { %3367 = vmax.xlane.f32.xlu1 %v3366_v17  ;;  %v7343_v17 = vld [vmem:[%s10037_s6 + $0x1] ss:$0 sm:$0xff]  ;;  %s10053_s6 = sld [smem:[#allocation14_spill]] }
0x14b0   : > { %v3368_v18 = vpop.xlane.xlu1 %3367 }
0x14b1   : > { %v3369_v19 = vsub.f32 %v3365_v15, %v3368_v18 }
0x14b3   : > { %v3370_v20 = vmul.f32 1.442695, %v3369_v19 }
0x14b5   : > { %8634 = vpow2.f32 %v3370_v20 }
0x14bf   : > { %v8635_v21 = vpop.eup %8634 }
0x14c0   : > { %v3372_v23 = vsel %vm1877_vm8, %v8635_v21, 0.0 }
0x14c1   : > { %3373 = vadd.xlane.f32.xlu0 %v3372_v23 }
0x14d7   : > { %3377 = vrot.lane.b32.xlu0 %v9283_v55, %s9991_s2  ;;  %s10047_s2 = smov 72  }
0x14db   : > { %3602 = vrot.lane.b32.xlu0 %v9283_v55, %s9989_s10  ;;  %s10046_s10 = smov 48  }
0x14df   : > { %3600 = vrot.lane.b32.xlu0 %v9283_v55, %s10045_s1 }
0x14ef   : > { %v3596_v24 = vpop.f32.mrb[20].mxu1 }
0x14f0   : > { %v7894_v26 = vpop.f32.mrb[21].mxu1 }
0x14f1   : > { %v7298_v26 = vld [vmem:[%s8905_s27 + $0x28] sm:$0xff] }
0x154e   : > { %v3374_v27 = vpop.xlane.xlu0 %3373 }
0x154f   : > { %8636 = vrcp.f32 %v3374_v27 }
0x1552   : > { %v3378_v28 = vpop.permute.xlu0 %3377 }
0x1553   : > { %7881 = vmatpush3.msk.msra.mxu0 %vm1895_vm9, %v3378_v28  ;;  %v7299_v28 = vld [vmem:[%s8905_s27 + $0x30] sm:$0xff] }
0x1554   : > { %7885 = vmatprep.subr.mxu0 %v8805_v8 }
0x1556   : > { %v3603_v34 = vpop.permute.xlu0 %3602 }
0x1559   : > { %v8637_v29 = vpop.eup %8636 }
0x155a   : > { %v3376_v31 = vmul.f32 %v8637_v29, %v8635_v21  ;;  %v3601_v36 = vpop.permute.xlu0 %3600  ;;  %v7300_v29 = vld [vmem:[%s8905_s27 + $0x38] sm:$0xff] }
0x155c   : > { %7883 = vmatmul.mubr.msk.f32.vlgmr.msra.gmra.mrb[22].mxu0 %vm1891_vm10, %v3376_v31  ;;  %v8347_v31 = vpack.c.bf16 %v7300_v29, %v7299_v28 }
0x155d   : > { %7886 = vmatpush3.msra.mxu0 %v7291_v32  ;;  %7887 = vmatprep.mubr.msk.f32.mxu0 %vm8804_vm1, %v8805_v8  ;;  %v7302_v32 = vld [vmem:[%s8915_s17 + $0x80] sm:$0xff] }
0x155e   : > { %7895 = vmatprep.subr.mxu0 %v8805_v8 }
0x162f   : > { %v3450_v33 = vpop.f32.mrb[22].mxu0 }
0x1630   : > { %v7884_v35 = vpop.f32.mrb[23].mxu0  ;;  %7888 = vmatmul.mubr.msk.f32.vlgmr.msra.gmra.mrb[24].mxu0 %vm1801_vm7, %v3450_v33 }
0x1631   : > { %7896 = vmatpush3.xpose.msk.msra.mxu0 %vm1801_vm7, %v3603_v34  ;;  %7897 = vmatprep.mubr.msk.f32.mxu0 %vm8804_vm1, %v8805_v8  ;;  %v7303_v34 = vld [vmem:[%s8915_s17 + $0x88] sm:$0xff] }
0x1632   : > { %7905 = vmatprep.subr.mxu0 %v8805_v8  ;;  %v8350_v33 = vpack.c.bf16 %v7303_v34, %v7302_v32  ;;  %v4316_v32 = vld [vmem:[%s10051_s26 + $0x8] sm:$0xff] }
0x1634   : > { %7898 = vmatmul.mubr.msk.f32.vlgmr.msra.gmra.mrb[26].mxu0 %vm1801_vm7, %v3601_v36 }
0x1635   : > { %7907 = vmatprep.mubr.msk.f32.mxu0 %vm8804_vm1, %v8805_v8  ;;  %7906 = vmatpush3.msra.mxu0 %v7292_v54  ;;  %v7308_v54 = vld [vmem:[%s8915_s17 + $0xb0] sm:$0xff] }
0x1636   : > { %7915 = vmatprep.subr.mxu0 %v8805_v8 }
0x1703   : > { %v3523_v37 = vpop.f32.mrb[24].mxu0 }
0x1704   : > { %v3597_v38 = vadd.f32 %v3596_v24, %v3523_v37  ;;  %v7889_v25 = vpop.f32.mrb[25].mxu0  ;;  %v4412_v24 = vld [vmem:[%s9387_s3 + $0x8] sm:$0xff] }
0x1707   : > { %v3674_v39 = vpop.f32.mrb[26].mxu0 }
0x1708   : > { %v3678_v40 = vmul.f32 0.35355338, %v3674_v39  ;;  %v7899_v41 = vpop.f32.mrb[27].mxu0 }
0x170a   : > { %v3679_v42 = vsel %vm1877_vm8, %v3678_v40, -inf }
0x170b   : > { %3680 = vmax.xlane.f32.xlu1 %v3679_v42 }
0x171c   : > { %3690 = vrot.lane.b32.xlu1 %v9283_v55, %s10046_s10 }
0x1720   : > { %3843 = vrot.lane.b32.xlu1 %v9283_v55, %s10047_s2 }
0x1724   : > { %3841 = vrot.lane.b32.xlu1 %v9283_v55, %s10048_s28 }
0x1798   : > { %v3681_v43 = vpop.xlane.xlu1 %3680 }
0x1799   : > { %v3682_v44 = vsub.f32 %v3678_v40, %v3681_v43  ;;  %v7344_v43 = vld [vmem:[%s10041_s22 + $0x1] ss:$0 sm:$0xff] }
0x179b   : > { %v3683_v45 = vmul.f32 1.442695, %v3682_v44 }
0x179c   : > { %v3691_v46 = vpop.permute.xlu1 %3690 }
0x179d   : > { %8638 = vpow2.f32 %v3683_v45  ;;  %7901 = vmatpush3.msk.msra.mxu1 %vm1895_vm9, %v3691_v46  ;;  %v7345_v45 = vld [vmem:[%s10042_s23 + $0x1] ss:$0 sm:$0xff] }
0x179e   : > { %7910 = vmatprep.subr.mxu1 %v8805_v8 }
0x17a0   : > { %v3844_v51 = vpop.permute.xlu1 %3843 }
0x17a4   : > { %v3842_v53 = vpop.permute.xlu1 %3841 }
0x17a7   : > { %v8639_v47 = vpop.eup %8638 }
0x17a8   : > { %v3685_v48 = vsel %vm1877_vm8, %v8639_v47, 0.0 }
0x17a9   : > { %3686 = vadd.xlane.f32.xlu0 %v3685_v48  ;;  %v7304_v48 = vld [vmem:[%s8915_s17 + $0x90] sm:$0xff] }
0x1836   : > { %v3687_v49 = vpop.xlane.xlu0 %3686 }
0x1837   : > { %8640 = vrcp.f32 %v3687_v49  ;;  %v7305_v49 = vld [vmem:[%s8915_s17 + $0x98] sm:$0xff] }
0x1841   : > { %v8641_v50 = vpop.eup %8640 }
0x1842   : > { %v3689_v52 = vmul.f32 %v8641_v50, %v8639_v47  ;;  %v8353_v50 = vpack.c.bf16 %v7305_v49, %v7304_v48 }
0x1844   : > { %7903 = vmatmul.mubr.msk.f32.vlgmr.msra.gmra.mrb[22].mxu1 %vm1891_vm10, %v3689_v52  ;;  %v7307_v52 = vld [vmem:[%s8915_s17 + $0xa8] sm:$0xff] }
0x1845   : > { %7911 = vmatpush3.xpose.msk.msra.mxu1 %vm1801_vm7, %v3844_v51  ;;  %7912 = vmatprep.mubr.msk.f32.mxu1 %vm8804_vm1, %v8805_v8  ;;  %v7306_v51 = vld [vmem:[%s8915_s17 + $0xa0] sm:$0xff] }
0x1846   : > { %7920 = vmatprep.subr.mxu1 %v8805_v8 }
0x1848   : > { %7913 = vmatmul.mubr.msk.f32.vlgmr.msra.gmra.mrb[24].mxu1 %vm1801_vm7, %v3842_v53  ;;  %v8356_v53 = vpack.c.bf16 %v7307_v52, %v7306_v51  ;;  %v7351_v52 = vld [vmem:[%s10054_s8] ss:$0 sm:$0xff]  ;;  %s10059_s8 = sld [smem:[#allocation20_spill]] }
0x1849   : > { %7922 = vmatprep.mubr.msk.f32.mxu1 %vm8804_vm1, %v8805_v8  ;;  %7921 = vmatpush3.msra.mxu1 %v7293_v13 }
0x184a   : > { %8349 = vmatprep.subr.bf16.mxu1 %v8803_v7 }
0x1917   : > { %v3763_v56 = vpop.f32.mrb[22].mxu1 }
0x1918   : > { %v7904_v57 = vpop.f32.mrb[23].mxu1  ;;  %7908 = vmatmul.mubr.msk.f32.vlgmr.msra.gmra.mrb[28].mxu0 %vm1801_vm7, %v3763_v56  ;;  %v7309_v56 = vld [vmem:[%s8915_s17 + $0xb8] sm:$0xff] }
0x1919   : > { %7917 = vmatprep.mubr.msk.f32.mxu0 %vm8804_vm1, %v8805_v8  ;;  %v8359_v57 = vpack.c.bf16 %v7309_v56, %v7308_v54 }
0x191b   : > { %v3915_v58 = vpop.f32.mrb[24].mxu1 }
0x191c   : > { %v3919_v59 = vmul.f32 0.35355338, %v3915_v58  ;;  %v7914_v61 = vpop.f32.mrb[25].mxu1  ;;  %v7310_v58 = vld [vmem:[%s8915_s17 + $0xc0] sm:$0xff] }
0x191e   : > { %v3920_v62 = vsel %vm1877_vm8, %v3919_v59, -inf }
0x191f   : > { %3921 = vmax.xlane.f32.xlu1 %v3920_v62  ;;  %v7312_v62 = vld [vmem:[%s8915_s17 + $0xd0] sm:$0xff] }
0x19ac   : > { %v3922_v63 = vpop.xlane.xlu1 %3921 }
0x19ad   : > { %v3923_v0 = vsub.f32 %v3919_v59, %v3922_v63  ;;  %v7311_v59 = vld [vmem:[%s8915_s17 + $0xc8] sm:$0xff]  ;;  %v7313_v63 = vld [vmem:[%s8915_s17 + $0xd8] sm:$0xff] }
0x19ae   : > { %v8362_v61 = vpack.c.bf16 %v7311_v59, %v7310_v58 }
0x19af   : > { %v3924_v1 = vmul.f32 1.442695, %v3923_v0  ;;  %v8365_v0 = vpack.c.bf16 %v7313_v63, %v7312_v62 }
0x19b1   : > { %8642 = vpow2.f32 %v3924_v1  ;;  %v7314_v1 = vld [vmem:[%s8915_s17 + $0xe0] sm:$0xff] }
0x19bb   : > { %v8643_v2 = vpop.eup %8642 }
0x19bc   : > { %v3926_v3 = vsel %vm1877_vm8, %v8643_v2, 0.0 }
0x19bd   : > { %3927 = vadd.xlane.f32.xlu0 %v3926_v3 }
0x19d3   : > { %3931 = vrot.lane.b32.xlu0 %v9283_v55, %s10049_s7 }
0x19eb   : > { %v3836_v4 = vpop.f32.mrb[28].mxu0 }
0x19ec   : > { %v3840_v5 = vadd.f32 %v3836_v4, %v3597_v38  ;;  %v7909_v6 = vpop.f32.mrb[29].mxu0  ;;  %v7316_v4 = vld [vmem:[%s8915_s17 + $0xf0] sm:$0xff] }
0x1a4a   : > { %v3928_v9 = vpop.xlane.xlu0 %3927 }
0x1a4b   : > { %8644 = vrcp.f32 %v3928_v9  ;;  %v7346_v9 = vld [vmem:[%s10043_s18 + $0x1] ss:$0 sm:$0xff] }
0x1a4e   : > { %v3932_v10 = vpop.permute.xlu0 %3931 }
0x1a4f   : > { %7916 = vmatpush3.msk.msra.mxu0 %vm1895_vm9, %v3932_v10 }
0x1a50   : > { %8343 = vmatprep.subr.bf16.mxu0 %v8803_v7 }
0x1a55   : > { %v8645_v11 = vpop.eup %8644 }
0x1a56   : > { %v3930_v12 = vmul.f32 %v8645_v11, %v8643_v2  ;;  %v7315_v2 = vld [vmem:[%s8915_s17 + $0xe8] sm:$0xff] }
0x1a57   : > { %v8368_v3 = vpack.c.bf16 %v7315_v2, %v7314_v1 }
0x1a58   : > { %7918 = vmatmul.mubr.msk.f32.vlgmr.msra.gmra.mrb[30].mxu0 %vm1891_vm10, %v3930_v12 }
0x1a59   : > { %7933 = vmatprep.mubr.msk.f32.mxu0 %vm8804_vm1, %v8805_v8 }
0x1b2b   : > { %v4004_v55 = vpop.f32.mrb[30].mxu0 }
0x1b2c   : > { %v7919_v14 = vpop.f32.mrb[31].mxu0  ;;  %7923 = vmatmul.mubr.msk.f32.vlgmr.msra.gmra.mrb[26].mxu1 %vm1801_vm7, %v4004_v55 }
0x1b2d   : > { %7968 = vmatprep.mubr.msk.f32.mxu1 %vm8804_vm1, %v8805_v8  ;;  %8351 = vmatpush3.bf16.msra.mxu1 %v8350_v33  ;;  %v4317_v33 = vld [vmem:[%s10051_s26 + $0x10] sm:$0xff] }
0x1b2e   : > { %8352 = vmatprep.subr.bf16.mxu1 %v8803_v7 }
0x1b31   : > { %8354 = vmatpush3.bf16.msra.mxu1 %v8353_v50 }
0x1b32   : > { %8355 = vmatprep.subr.bf16.mxu1 %v8803_v7 }
0x1b35   : > { %8357 = vmatpush3.bf16.msra.mxu1 %v8356_v53 }
0x1b36   : > { %8358 = vmatprep.subr.bf16.mxu1 %v8803_v7 }
0x1b39   : > { %8360 = vmatpush3.bf16.msra.mxu1 %v8359_v57  ;;  %v7353_v57 = vld [vmem:[%s10055_s9] ss:$0 sm:$0xff]  ;;  %s10057_s9 = sld [smem:[#allocation21_spill]] }
0x1b3a   : > { %8361 = vmatprep.subr.bf16.mxu1 %v8803_v7 }
0x1b3d   : > { %8363 = vmatpush3.bf16.msra.mxu1 %v8362_v61 }
0x1b3e   : > { %8364 = vmatprep.subr.bf16.mxu1 %v8803_v7 }
0x1b41   : > { %8366 = vmatpush3.bf16.msra.mxu1 %v8365_v0 }
0x1b42   : > { %8367 = vmatprep.subr.bf16.mxu1 %v8803_v7 }
0x1b45   : > { %8369 = vmatpush3.bf16.msra.mxu1 %v8368_v3 }
0x1b46   : > { %8370 = vmatprep.subr.bf16.mxu1 %v8803_v7 }
0x1bff   : > { %v4077_v60 = vpop.f32.mrb[26].mxu1 }
0x1c00   : > { %v4081_v15 = vadd.f32 %v4077_v60, %v3840_v5  ;;  %v7924_v16 = vpop.f32.mrb[27].mxu1  ;;  %v7317_v5 = vld [vmem:[%s8915_s17 + $0xf8] sm:$0xff] }
0x1c01   : > { %v8371_v6 = vpack.c.bf16 %v7317_v5, %v7316_v4 }
0x1c02   : > { %v4082_v18 = vadd.f32 %v4081_v15, %v9263_v30  ;;  %v7297_v30 = vld [vmem:[%s8905_s27 + $0x20] sm:$0xff] }
0x1c03   : > { %v8344_v27 = vpack.c.bf16 %v7298_v26, %v7297_v30  ;;  %8372 = vmatpush3.bf16.msra.mxu1 %v8371_v6 }
0x1c04   : > { %v9378_v19 = vadd.f32 %v7343_v17, %v4082_v18  ;;  %8393 = vmatprep.subr.bf16.mxu1 %v8803_v7 }
0x1c05   : > { %8345 = vmatpush3.bf16.msra.mxu0 %v8344_v27 }
0x1c06   : > { %v4090_v20 = vsel %vm1687_vm5, %v9378_v19, 0.0  ;;  %v4094_v21 = vmul.f32 %v9378_v19, %v9378_v19  ;;  %8346 = vmatprep.subr.bf16.mxu0 %v8803_v7 }
0x1c07   : > { %4091 = vadd.xlane.f32.xlu0 %v4090_v20 }
0x1c08   : > { %v4095_v23 = vsel %vm1687_vm5, %v4094_v21, 0.0  ;;  %v7348_v21 = vld [vmem:[%s10044_s11 + $0x1] ss:$0 sm:$0xff] }
0x1c09   : > { %4096 = vadd.xlane.f32.xlu1 %v4095_v23  ;;  %8348 = vmatpush3.bf16.msra.mxu0 %v8347_v31  ;;  %v4315_v31 = vld [vmem:[%s10051_s26] sm:$0xff] }
0x1c0a   : > { %8373 = vmatprep.subr.bf16.mxu0 %v8803_v7  ;;  %v8374_v34 = vpack.c.bf16 %v4316_v32, %v4315_v31 }
0x1c1d   : > { %4417 = vperm.xlu0 %8564, %v4412_v24  }
0x1c94   : > { %v4092_v35 = vpop.xlane.xlu0 %4091 }
0x1c95   : > { %v4093_v36 = vmul.f32 0.03125, %v4092_v35  ;;  %v4318_v35 = vld [vmem:[%s10051_s26 + $0x18] sm:$0xff] }
0x1c96   : > { %v4097_v37 = vpop.xlane.xlu1 %4096 }
0x1c97   : > { %v4099_v38 = vmul.f32 %v4093_v36, %v4093_v36  ;;  %v4098_v25 = vmul.f32 0.03125, %v4097_v37  ;;  %v4101_v41 = vsub.f32 %v9378_v19, %v4093_v36  ;;  %v8377_v36 = vpack.c.bf16 %v4318_v35, %v4317_v33 }
0x1c99   : > { %v4100_v39 = vsub.f32 %v4098_v25, %v4099_v38 }
0x1c9b   : > { %v4102_v40 = vadd.f32 1e-05, %v4100_v39 }
0x1c9c   : > { %v4418_v59 = vpop.permute.xlu0 %4417 }
0x1c9d   : > { %8646 = vrsqrt.f32 %v4102_v40  ;;  %vm4420_vm13 = vcmp.eq.s32.totalorder %v4418_v59, %v9090_v22 }
0x1c9e   : > { %v7355_v63 = vsel %vm4420_vm13, 1.0, %v8805_v8 }
0x1ca7   : > { %v8647_v42 = vpop.eup %8646 }
0x1ca8   : > { %v4104_v44 = vmul.f32 %v8647_v42, %v4101_v41 }
0x1caa   : > { %v4111_v46 = vmul.f32 %v7344_v43, %v4104_v44 }
0x1cac   : > { %v4118_v47 = vadd.f32 %v7345_v45, %v4111_v46  ;;  %v7349_v45 = vld [vmem:[%s10052_s5] ss:$0 sm:$0xff]  ;;  %s10056_s5 = sld [smem:[#allocation18_spill]] }
0x1cae   : > { %7934 = vmatmul.mubr.msk.f32.vlgmr.msra.gmra.mrb[32].mxu0 %vm1724_vm6, %v4118_v47  ;;  %v7350_v47 = vld [vmem:[%s10053_s6] ss:$0 sm:$0xff]  ;;  %s10060_s6 = sld [smem:[#allocation22_spill]] }
0x1caf   : > { %7979 = vmatprep.mubr.msk.f32.mxu0 %vm8804_vm1, %v8805_v8  ;;  %8375 = vmatpush3.bf16.msra.mxu0 %v8374_v34 }
0x1cb0   : > { %8376 = vmatprep.subr.bf16.mxu0 %v8803_v7 }
0x1cb2   : > { %v4515_v4 = vld [vmem:[%s10056_s5] sm:$0xff]  ;;  %v4516_v6 = vld [vmem:[%s10056_s5 + $0x8] sm:$0xff] }
0x1cb3   : > { %8378 = vmatpush3.bf16.msra.mxu0 %v8377_v36 }
0x1d81   : > { %v4194_v10 = vpop.f32.mrb[32].mxu0 }
0x1d82   : > { %v4195_v11 = vadd.f32 %v7346_v9, %v4194_v10  ;;  %v7935_v12 = vpop.f32.mrb[33].mxu0 }
0x1d84   : > { %v4199_v13 = vmul.f32 0.044715, %v4195_v11  ;;  %v4198_v17 = vmul.f32 0.5, %v4195_v11 }
0x1d86   : > { %v4200_v55 = vmul.f32 %v4199_v13, %v4195_v11 }
0x1d88   : > { %v4201_v14 = vmul.f32 %v4200_v55, %v4195_v11 }
0x1d8a   : > { %v4202_v60 = vadd.f32 %v4201_v14, %v4195_v11 }
0x1d8c   : > { %v4203_v15 = vmul.f32 0.7978846, %v4202_v60  ;;  %v4517_v60 = vld [vmem:[%s10056_s5 + $0x10] sm:$0x1] }
0x1d8e   : > { %8648 = vtanh.f32 %v4203_v15 }
0x1d98   : > { %v8649_v16 = vpop.eup %8648 }
0x1d99   : > { %v4205_v18 = vadd.f32 1.0, %v8649_v16 }
0x1d9b   : > { %v4206_v20 = vmul.f32 %v4205_v18, %v4198_v17 }
0x1d9d   : > { %7969 = vmatmul.mubr.f32.vlgmr.msra.gmra.mrb[28].mxu1 %v4206_v20 }
0x1d9e   : > { %8027 = vmatprep.mubr.msk.f32.mxu1 %vm8804_vm1, %v8805_v8 }
0x1e70   : > { %v4279_v23 = vpop.f32.mrb[28].mxu1 }
0x1e71   : > { %v4280_v24 = vadd.f32 %v7348_v21, %v4279_v23  ;;  %v7970_v30 = vpop.f32.mrb[29].mxu1  ;;  %v4523_v21 = vld [vmem:[%s10057_s9] sm:$0xff]  ;;  %v4524_v23 = vld [vmem:[%s10057_s9 + $0x8] sm:$0xff] }
0x1e72   : > { %v4525_v30 = vld [vmem:[%s10057_s9 + $0x10] sm:$0xff] }
0x1e73   : > { %v4283_v26 = vadd.f32 %v4280_v24, %v9378_v19  ;;  %v4411_v19 = vld [vmem:[%s9387_s3] sm:$0xff]  ;;  %v8384_v24 = vpack.c.bf16 %v4524_v23, %v4523_v21  ;;  %s10058_s3 = sld [smem:[#allocation19_spill]] }
0x1e75   : > { %v4286_v27 = vsel %vm1687_vm5, %v4283_v26, 0.0  ;;  %v4290_v28 = vmul.f32 %v4283_v26, %v4283_v26 }
0x1e76   : > { %4287 = vadd.xlane.f32.xlu1 %v4286_v27 }
0x1e77   : > { %v4291_v29 = vsel %vm1687_vm5, %v4290_v28, 0.0  ;;  %vm4827_vm5 = vcmask 131072  }
0x1e7a   : > { %4292 = vadd.xlane.f32.xlu1 %v4291_v29 }
0x1e8b   : > { %4414 = vperm.xlu1 %8565, %v4411_v19  }
0x1f03   : > { %v4288_v37 = vpop.xlane.xlu1 %4287 }
0x1f04   : > { %v4289_v38 = vmul.f32 0.03125, %v4288_v37 }
0x1f06   : > { %v4295_v39 = vmul.f32 %v4289_v38, %v4289_v38  ;;  %v4297_v43 = vsub.f32 %v4283_v26, %v4289_v38  ;;  %v4526_v26 = vld [vmem:[%s10057_s9 + $0x18] sm:$0xff] }
0x1f07   : > { %v4293_v25 = vpop.xlane.xlu1 %4292  ;;  %v8387_v27 = vpack.c.bf16 %v4526_v26, %v4525_v30 }
0x1f08   : > { %v4294_v40 = vmul.f32 0.03125, %v4293_v25 }
0x1f0a   : > { %v4296_v41 = vsub.f32 %v4294_v40, %v4295_v39 }
0x1f0b   : > { %v4415_v50 = vpop.permute.xlu1 %4414 }
0x1f0c   : > { %v4298_v42 = vadd.f32 1e-05, %v4296_v41  ;;  %vm4419_vm11 = vcmp.eq.s32.totalorder %v4415_v50, %v9090_v22 }
0x1f0d   : > { %v7354_v51 = vsel %vm4419_vm11, 1.0, %v8805_v8 }
0x1f0e   : > { %8650 = vrsqrt.f32 %v4298_v42 }
0x1f18   : > { %v8651_v44 = vpop.eup %8650 }
0x1f19   : > { %v4300_v46 = vmul.f32 %v8651_v44, %v4297_v43 }
0x1f1b   : > { %v4307_v48 = vmul.f32 %v7349_v45, %v4300_v46 }
0x1f1d   : > { %v4314_v49 = vadd.f32 %v7350_v47, %v4307_v48 }
0x1f1f   : > { %7980 = vmatmul.mubr.msk.f32.vlgmr.msra.gmra.mrb[34].mxu0 %vm1724_vm6, %v4314_v49  ;;  %v7358_v49 = vld [vmem:[%s10058_s3] ss:$0 sm:$0xff]  ;;  %s10061_s3 = smov 96  }
0x1f20   : > { %7986 = vmatprep.mubr.msk.f32.mxu0 %vm1467_vm0, %v7354_v51 }
0x1ff2   : > { %v4395_v53 = vpop.f32.mrb[34].mxu0 }
0x1ff3   : > { %v4396_v54 = vadd.f32 %v7351_v52, %v4395_v53  ;;  %v7981_v56 = vpop.f32.mrb[35].mxu0  ;;  %v7359_v52 = vld [vmem:[%s10059_s8] ss:$0 sm:$0xff]  ;;  %s10064_s8 = smov 64  }
0x1ff5   : > { %v4407_v58 = vrot.slane %v4396_v54, 1 }
0x1ff7   : > { %v4410_v61 = vsel %vm4409_vm12, %v4407_v58, %v7353_v57 }
0x1ff8   : > { %v8379_v62 = vpack.c.bf16 %v7353_v57, %v4410_v61 }
0x1ffa   : > { %8380 = vmatprep.subr.bf16.mxu0 %v8379_v62 }
0x1ffb   : > { %8382 = vmatpush3.bf16.msra.mxu0 %v8379_v62 }
0x1ffc   : > { %8383 = vmatprep.subr.bf16.mxu0 %v8803_v7 }
0x1ffe   : > { %7987 = vmatmul.mubr.msk.f32.vlgmr.msra.gmra.mrb[36].mxu0 %vm1467_vm0, %v7355_v63 }
0x1fff   : > { %7997 = vmatprep.mubr.msk.f32.mxu0 %vm8804_vm1, %v8805_v8  ;;  %8385 = vmatpush3.bf16.msra.mxu0 %v8384_v24 }
0x2000   : > { %8386 = vmatprep.subr.bf16.mxu0 %v8803_v7 }
0x2003   : > { %8388 = vmatpush3.bf16.msra.mxu0 %v8387_v27 }
0x2004   : > { %8389 = vmatprep.subr.bf16.mxu0 %v8803_v7 }
0x20d1   : > { %v7988_v0 = vpop.f32.mrb[36].mxu0 }
0x20d2   : > { %v4509_v1 = vrot.slane %v7988_v0, 7  ;;  %v4497_v2 = vpop.f32.mrb[37].mxu0 }
0x20d3   : > { %v4508_v3 = vrot.slane %v4497_v2, 7 }
0x20d4   : > { %v9471_v15 = vadd.f32 %v4517_v60, %v4509_v1 }
0x20d5   : > { %v4510_v5 = vsel %vm1649_vm4, %v4508_v3, %v4509_v1  ;;  %v4514_v22 = vsel %vm1649_vm4, %v4396_v54, %v4508_v3 }
0x20d6   : > { %v9457_v9 = vadd.f32 %v4515_v4, %v4514_v22  ;;  %v9459_v10 = vadd.f32 %v4516_v6, %v4510_v5  ;;  %v4564_v17 = vsel %vm4563_vm14, %v9471_v15, 0.0  ;;  %v4572_v18 = vmul.f32 %v9471_v15, %v9471_v15  ;;  %v7360_v5 = vld [vmem:[%s10060_s6] ss:$0 sm:$0xff]  ;;  %s10065_s6 = smov 88  }
0x20d8   : > { %v4557_v11 = vsel %vm1724_vm6, %v9457_v9, 0.0  ;;  %v4570_v12 = vmul.f32 %v9457_v9, %v9457_v9  ;;  %v4560_v55 = vsel %vm1724_vm6, %v9459_v10, 0.0  ;;  %v4571_v14 = vmul.f32 %v9459_v10, %v9459_v10 }
0x20d9   : > { %4558 = vadd.xlane.f32.xlu1 %v4557_v11  ;;  %v4579_v20 = vsel %vm4563_vm14, %v4572_v18, 0.0 }
0x20da   : > { %v4573_v13 = vsel %vm1724_vm6, %v4570_v12, 0.0  ;;  %v4576_v16 = vsel %vm1724_vm6, %v4571_v14, 0.0 }
0x20db   : > { %4574 = vadd.xlane.f32.xlu0 %v4573_v13 }
0x20dd   : > { %4561 = vadd.xlane.f32.xlu1 %v4560_v55 }
0x20e1   : > { %4577 = vadd.xlane.f32.xlu1 %v4576_v16 }
0x20e5   : > { %4565 = vadd.xlane.f32.xlu1 %v4564_v17 }
0x20e9   : > { %4580 = vadd.xlane.f32.xlu1 %v4579_v20 }
0x2166   : > { %v4559_v28 = vpop.xlane.xlu1 %4558 }
0x2167   : > { %v4567_v29 = vmul.f32 0.03125, %v4559_v28 }
0x2168   : > { %v4575_v31 = vpop.xlane.xlu0 %4574 }
0x2169   : > { %v4585_v32 = vmul.f32 %v4567_v29, %v4567_v29  ;;  %v4582_v34 = vmul.f32 0.03125, %v4575_v31  ;;  %v4591_v46 = vsub.f32 %v9457_v9, %v4567_v29 }
0x216a   : > { %v4562_v33 = vpop.xlane.xlu1 %4561 }
0x216b   : > { %v4588_v35 = vsub.f32 %v4582_v34, %v4585_v32  ;;  %v4568_v36 = vmul.f32 0.03125, %v4562_v33 }
0x216d   : > { %v4594_v19 = vadd.f32 1e-05, %v4588_v35  ;;  %v4586_v38 = vmul.f32 %v4568_v36, %v4568_v36  ;;  %v4592_v54 = vsub.f32 %v9459_v10, %v4568_v36 }
0x216e   : > { %v4578_v37 = vpop.xlane.xlu1 %4577 }
0x216f   : > { %8652 = vrsqrt.f32 %v4594_v19  ;;  %v4583_v25 = vmul.f32 0.03125, %v4578_v37 }
0x2171   : > { %v4589_v39 = vsub.f32 %v4583_v25, %v4586_v38 }
0x2172   : > { %v4566_v40 = vpop.xlane.xlu1 %4565 }
0x2173   : > { %v4595_v41 = vadd.f32 1e-05, %v4589_v39  ;;  %v4569_v42 = vmul.f32 0.03125, %v4566_v40 }
0x2175   : > { %8654 = vrsqrt.f32 %v4595_v41  ;;  %v4587_v44 = vmul.f32 %v4569_v42, %v4569_v42  ;;  %v4593_v62 = vsub.f32 %v9471_v15, %v4569_v42 }
0x2176   : > { %v4581_v43 = vpop.xlane.xlu1 %4580 }
0x2177   : > { %v4584_v45 = vmul.f32 0.03125, %v4581_v43 }
0x2179   : > { %v8653_v47 = vpop.eup %8652  ;;  %v4590_v48 = vsub.f32 %v4584_v45, %v4587_v44 }
0x217a   : > { %v4600_v50 = vmul.f32 %v8653_v47, %v4591_v46 }
0x217b   : > { %v4596_v51 = vadd.f32 1e-05, %v4590_v48 }
0x217c   : > { %v4609_v53 = vmul.f32 %v7358_v49, %v4600_v50 }
0x217d   : > { %8656 = vrsqrt.f32 %v4596_v51 }
0x217e   : > { %v4618_v56 = vadd.f32 %v7359_v52, %v4609_v53 }
0x217f   : > { %v8655_v57 = vpop.eup %8654 }
0x2180   : > { %7998 = vmatmul.mubr.msk.f32.vlgmr.msra.gmra.mrb[38].mxu0 %vm1724_vm6, %v4618_v56  ;;  %v4601_v58 = vmul.f32 %v8655_v57, %v4592_v54 }
0x2181   : > { %8000 = vmatprep.mubr.msk.f32.mxu0 %vm8804_vm1, %v8805_v8 }
0x2182   : > { %v4610_v59 = vmul.f32 %v7358_v49, %v4601_v58 }
0x2184   : > { %v4619_v61 = vadd.f32 %v7359_v52, %v4610_v59 }
0x2186   : > { %8001 = vmatmul.mubr.msk.f32.gmra.mrb[40].mxu0 %vm1724_vm6, %v4619_v61 }
0x2187   : > { %v8657_v63 = vpop.eup %8656  ;;  %8003 = vmatprep.mubr.msk.f32.mxu0 %vm8804_vm1, %v8805_v8 }
0x2188   : > { %v4602_v0 = vmul.f32 %v8657_v63, %v4593_v62 }
0x218a   : > { %v4611_v1 = vmul.f32 %v7358_v49, %v4602_v0 }
0x218c   : > { %v4620_v2 = vadd.f32 %v7359_v52, %v4611_v1 }
0x218e   : > { %8004 = vmatmul.mubr.msk.f32.gmra.mrb[42].mxu0 %vm1724_vm6, %v4620_v2 }
0x218f   : > { %8012 = vmatprep.mubr.msk.f32.mxu0 %vm8804_vm1, %v8805_v8 }
0x2253   : > { %v4702_v3 = vpop.f32.mrb[38].mxu0 }
0x2254   : > { %v7999_v4 = vpop.f32.mrb[39].mxu0  ;;  %v9500_v6 = vadd.f32 %v7360_v5, %v4702_v3 }
0x2259   : > { %v4707_v22 = vpop.f32.mrb[40].mxu0 }
0x225a   : > { %v9502_v11 = vadd.f32 %v7360_v5, %v4707_v22  ;;  %v8002_v12 = vpop.f32.mrb[41].mxu0 }
0x225c   : > { %v9506_v13 = vpack.i.bf16 %v9502_v11, %v9500_v6 }
0x225e   : > { %8567 = vrot.lane.b32.xlu0 %v9506_v13, %s10061_s3 }
0x2261   : > { %v4712_v55 = vpop.f32.mrb[42].mxu0 }
0x2262   : > { %v9510_v14 = vadd.f32 %v7360_v5, %v4712_v55  ;;  %v8005_v60 = vpop.f32.mrb[43].mxu0 }
0x2264   : > { %4723 = vrot.lane.b32.xlu1 %v9510_v14, %s10061_s3  ;;  %s10066_s3 = smov 120  }
0x22d0   : > { %v8568_v16 = vpop.permute.xlu0 %8567 }
0x22d1   : > { %v8570_v17 = vunpack.i.h.bf16 %v8568_v16  ;;  %v8569_v18 = vunpack.i.l.bf16 %v8568_v16 }
0x22d3   : > { %v8390_v21 = vpack.c.bf16 %v8570_v17, %v8569_v18 }
0x22d5   : > { %8392 = vmatpush3.bf16.xpose.msk.msra.mxu0 %vm9516_vm15, %v8390_v21 }
0x22d6   : > { %8010 = vmatprep.subr.mxu0 %v8805_v8  ;;  %v4724_v23 = vpop.permute.xlu1 %4723 }
0x22dd   : > { %8011 = vmatpush3.xpose.msk.msra.mxu0 %vm1801_vm7, %v4724_v23 }
0x22de   : > { %8400 = vmatprep.subr.bf16.mxu0 %v8803_v7 }
0x22e0   : > { %8013 = vmatmul.mubr.msk.f32.vlgmr.msra.gmra.mrb[44].mxu0 %vm1801_vm7, %v9500_v6 }
0x22e1   : > { %8015 = vmatprep.mubr.msk.f32.mxu0 %vm8804_vm1, %v8805_v8 }
0x22e4   : > { %8016 = vmatmul.mubr.msk.f32.gmra.mrb[46].mxu0 %vm1801_vm7, %v9502_v11 }
0x22e5   : > { %8018 = vmatprep.mubr.msk.f32.mxu0 %vm8804_vm1, %v8805_v8 }
0x22e8   : > { %8019 = vmatmul.mubr.msk.f32.gmra.mrb[48].mxu0 %vm1801_vm7, %v9510_v14 }
0x22e9   : > { %8057 = vmatprep.mubr.msk.f32.mxu0 %vm8804_vm1, %v8805_v8 }
0x23b3   : > { %v4803_v24 = vpop.f32.mrb[44].mxu0 }
0x23b4   : > { %v4817_v30 = vmul.f32 0.35355338, %v4803_v24  ;;  %v8014_v26 = vpop.f32.mrb[45].mxu0 }
0x23b6   : > { %v4821_v27 = vsel %vm4820_vm3, %v4817_v30, -inf }
0x23b7   : > { %4822 = vmax.xlane.f32.xlu1 %v4821_v27  ;;  %v4808_v28 = vpop.f32.mrb[46].mxu0 }
0x23b8   : > { %v4818_v29 = vmul.f32 0.35355338, %v4808_v28  ;;  %v8017_v31 = vpop.f32.mrb[47].mxu0 }
0x23ba   : > { %v4824_v32 = vsel %vm4820_vm3, %v4818_v29, -inf }
0x23bb   : > { %4825 = vmax.xlane.f32.xlu0 %v4824_v32  ;;  %v4813_v34 = vpop.f32.mrb[48].mxu0 }
0x23bc   : > { %v4819_v33 = vmul.f32 0.35355338, %v4813_v34  ;;  %v8020_v35 = vpop.f32.mrb[49].mxu0 }
0x23be   : > { %v4828_v36 = vsel %vm4827_vm5, %v4819_v33, -inf }
0x23bf   : > { %4829 = vmax.xlane.f32.xlu0 %v4828_v36 }
0x2444   : > { %v4823_v19 = vpop.xlane.xlu1 %4822 }
0x2445   : > { %v4831_v37 = vsub.f32 %v4817_v30, %v4823_v19 }
0x2447   : > { %v4834_v38 = vmul.f32 1.442695, %v4831_v37 }
0x2448   : > { %v4826_v25 = vpop.xlane.xlu0 %4825 }
0x2449   : > { %8658 = vpow2.f32 %v4834_v38  ;;  %v4832_v39 = vsub.f32 %v4818_v29, %v4826_v25 }
0x244b   : > { %v4836_v40 = vmul.f32 1.442695, %v4832_v39 }
0x244c   : > { %v4830_v45 = vpop.xlane.xlu0 %4829 }
0x244d   : > { %8660 = vpow2.f32 %v4836_v40  ;;  %v4833_v46 = vsub.f32 %v4819_v33, %v4830_v45 }
0x244f   : > { %v4838_v47 = vmul.f32 1.442695, %v4833_v46 }
0x2451   : > { %8662 = vpow2.f32 %v4838_v47 }
0x2453   : > { %v8659_v41 = vpop.eup %8658 }
0x2454   : > { %v4840_v42 = vsel %vm4820_vm3, %v8659_v41, 0.0 }
0x2455   : > { %4841 = vadd.xlane.f32.xlu1 %v4840_v42 }
0x2457   : > { %v8661_v43 = vpop.eup %8660 }
0x2458   : > { %v4843_v44 = vsel %vm4820_vm3, %v8661_v43, 0.0 }
0x2459   : > { %4844 = vadd.xlane.f32.xlu0 %v4843_v44 }
0x245b   : > { %v8663_v48 = vpop.eup %8662 }
0x245c   : > { %v4846_v49 = vsel %vm4827_vm5, %v8663_v48, 0.0 }
0x2466   : > { %4859 = vrot.lane.b32.xlu1 %v9510_v14, %s10064_s8 }
0x246a   : > { %8577 = vrot.lane.b32.xlu1 %v9506_v13, %s10065_s6 }
0x246f   : > { %8572 = vrot.lane.b32.xlu0 %v9506_v13, %s10064_s8  ;;  %s10067_s8 = sld [smem:[#allocation23_spill]] }
0x2473   : > { %4964 = vrot.lane.b32.xlu0 %v9510_v14, %s10065_s6  ;;  %s10068_s6 = smov 56  }
0x2477   : > { %4956 = vrot.lane.b32.xlu0 %v9502_v11, %s10066_s3 }
0x248e   : > { %4847 = vadd.xlane.f32.xlu1 %v4846_v49 }
0x249f   : > { %4954 = vrot.lane.b32.xlu1 %v9500_v6, %s10066_s3 }
0x24a3   : > { %4958 = vrot.lane.b32.xlu1 %v9510_v14, %s10066_s3  ;;  %s10069_s3 = smov 80  }
0x24e2   : > { %v4842_v50 = vpop.xlane.xlu1 %4841 }
0x24e3   : > { %8664 = vrcp.f32 %v4842_v50 }
0x24e6   : > { %v4845_v51 = vpop.xlane.xlu0 %4844  ;;  %v4860_v53 = vpop.permute.xlu1 %4859 }
0x24e7   : > { %8666 = vrcp.f32 %v4845_v51  ;;  %v4529_v51 = vld [vmem:[%s10067_s8 + $0x8] sm:$0xff] }
0x24ea   : > { %v8573_v52 = vpop.permute.xlu0 %8572  ;;  %v8578_v59 = vpop.permute.xlu1 %8577 }
0x24eb   : > { %v8575_v54 = vunpack.i.h.bf16 %v8573_v52  ;;  %v8574_v56 = vunpack.i.l.bf16 %v8573_v52  ;;  %v8580_v63 = vunpack.i.h.bf16 %v8578_v59  ;;  %v8579_v0 = vunpack.i.l.bf16 %v8578_v59 }
0x24ed   : > { %v8394_v57 = vpack.c.bf16 %v8575_v54, %v8574_v56  ;;  %v8665_v58 = vpop.eup %8664  ;;  %v8397_v2 = vpack.c.bf16 %v8580_v63, %v8579_v0  ;;  %v4528_v0 = vld [vmem:[%s10067_s8] sm:$0xff] }
0x24ee   : > { %v4852_v61 = vmul.f32 %v8665_v58, %v8659_v41  ;;  %v4965_v3 = vpop.permute.xlu0 %4964 }
0x24ef   : > { %8395 = vmatpush3.bf16.msra.mxu1 %v8394_v57 }
0x24f0   : > { %8025 = vmatprep.subr.mxu1 %v8805_v8 }
0x24f1   : > { %v8667_v62 = vpop.eup %8666 }
0x24f2   : > { %v4853_v1 = vmul.f32 %v8667_v62, %v8661_v43  ;;  %v4957_v55 = vpop.permute.xlu0 %4956 }
0x24f3   : > { %8026 = vmatpush3.msk.msra.mxu1 %vm1649_vm4, %v4860_v53 }
0x24f4   : > { %8028 = vmatmul.mubr.msk.f32.vlgmr.msra.gmra.mrb[30].mxu1 %vm4820_vm3, %v4852_v61  ;;  %8396 = vmatprep.subr.bf16.mxu1 %v8803_v7 }
0x24f5   : > { %8030 = vmatprep.mubr.msk.f32.mxu1 %vm8804_vm1, %v8805_v8 }
0x24f8   : > { %8031 = vmatmul.mubr.msk.f32.gmra.mrb[32].mxu1 %vm4820_vm3, %v4853_v1 }
0x24f9   : > { %8033 = vmatprep.mubr.msk.f32.mxu1 %vm8804_vm1, %v8805_v8 }
0x24fa   : > { %8399 = vmatpush3.bf16.xpose.msk.msra.mxu1 %vm9516_vm15, %v8397_v2 }
0x24fb   : > { %8040 = vmatprep.subr.mxu1 %v8805_v8 }
0x2502   : > { %8041 = vmatpush3.xpose.msk.msra.mxu1 %vm1801_vm7, %v4965_v3 }
0x2503   : > { %8066 = vmatprep.subr.mxu1 %v8805_v8 }
0x251b   : > { %v4848_v4 = vpop.xlane.xlu1 %4847 }
0x251c   : > { %8668 = vrcp.f32 %v4848_v4 }
0x251f   : > { %v4955_v12 = vpop.permute.xlu1 %4954 }
0x2523   : > { %v4959_v60 = vpop.permute.xlu1 %4958 }
0x2526   : > { %v8669_v5 = vpop.eup %8668 }
0x2527   : > { %v4854_v22 = vmul.f32 %v8669_v5, %v8663_v48 }
0x2529   : > { %8034 = vmatmul.mubr.msk.f32.gmra.mrb[34].mxu1 %vm4820_vm3, %v4854_v22 }
0x252a   : > { %8042 = vmatprep.mubr.msk.f32.mxu1 %vm8804_vm1, %v8805_v8 }
0x252d   : > { %8043 = vmatmul.mubr.msk.f32.vlgmr.msra.gmra.mrb[36].mxu1 %vm1801_vm7, %v4955_v12 }
0x252e   : > { %8045 = vmatprep.mubr.msk.f32.mxu1 %vm8804_vm1, %v8805_v8  ;;  %8067 = vmatpush3.msra.mxu1 %v4529_v51 }
0x252f   : > { %8403 = vmatprep.subr.bf16.mxu1 %v8803_v7 }
0x2531   : > { %8046 = vmatmul.mubr.msk.f32.gmra.mrb[38].mxu1 %vm1801_vm7, %v4957_v55 }
0x2532   : > { %8048 = vmatprep.mubr.msk.f32.mxu1 %vm8804_vm1, %v8805_v8 }
0x2535   : > { %8049 = vmatmul.mubr.msk.f32.gmra.mrb[40].mxu1 %vm1801_vm7, %v4959_v60 }
0x2536   : > { %8068 = vmatprep.mubr.msk.f32.mxu1 %vm8804_vm1, %v8805_v8 }
0x25c7   : > { %v9583_v16 = vpop.f32.mrb[30].mxu1 }
0x25c8   : > { %v8029_v17 = vpop.f32.mrb[31].mxu1 }
0x25cb   : > { %v9585_v18 = vpop.f32.mrb[32].mxu1 }
0x25cc   : > { %v8032_v21 = vpop.f32.mrb[33].mxu1 }
0x25fc   : > { %v9587_v23 = vpop.f32.mrb[34].mxu1 }
0x25fd   : > { %v8035_v24 = vpop.f32.mrb[35].mxu1 }
0x2600   : > { %v5044_v30 = vpop.f32.mrb[36].mxu1 }
0x2601   : > { %v5058_v26 = vmul.f32 0.35355338, %v5044_v30  ;;  %v8044_v27 = vpop.f32.mrb[37].mxu1 }
0x2603   : > { %v5061_v28 = vsel %vm4820_vm3, %v5058_v26, -inf }
0x2604   : > { %5062 = vmax.xlane.f32.xlu0 %v5061_v28  ;;  %v5049_v29 = vpop.f32.mrb[38].mxu1 }
0x2605   : > { %v5059_v31 = vmul.f32 0.35355338, %v5049_v29  ;;  %v8047_v32 = vpop.f32.mrb[39].mxu1 }
0x2607   : > { %v5064_v34 = vsel %vm4820_vm3, %v5059_v31, -inf }
0x2608   : > { %5065 = vmax.xlane.f32.xlu1 %v5064_v34  ;;  %v5054_v33 = vpop.f32.mrb[40].mxu1 }
0x2609   : > { %v5060_v35 = vmul.f32 0.35355338, %v5054_v33  ;;  %v8050_v36 = vpop.f32.mrb[41].mxu1 }
0x260b   : > { %v5067_v19 = vsel %vm4827_vm5, %v5060_v35, -inf }
0x260c   : > { %5068 = vmax.xlane.f32.xlu0 %v5067_v19 }
0x2691   : > { %v5063_v37 = vpop.xlane.xlu0 %5062 }
0x2692   : > { %v5070_v38 = vsub.f32 %v5058_v26, %v5063_v37 }
0x2694   : > { %v5073_v25 = vmul.f32 1.442695, %v5070_v38 }
0x2695   : > { %v5066_v39 = vpop.xlane.xlu1 %5065 }
0x2696   : > { %8670 = vpow2.f32 %v5073_v25  ;;  %v5071_v40 = vsub.f32 %v5059_v31, %v5066_v39 }
0x2698   : > { %v5075_v41 = vmul.f32 1.442695, %v5071_v40 }
0x2699   : > { %v5069_v42 = vpop.xlane.xlu0 %5068 }
0x269a   : > { %8672 = vpow2.f32 %v5075_v41  ;;  %v5072_v43 = vsub.f32 %v5060_v35, %v5069_v42 }
0x269c   : > { %v5077_v44 = vmul.f32 1.442695, %v5072_v43 }
0x269e   : > { %8674 = vpow2.f32 %v5077_v44 }
0x26a0   : > { %v8671_v45 = vpop.eup %8670 }
0x26a1   : > { %v5079_v46 = vsel %vm4820_vm3, %v8671_v45, 0.0 }
0x26a2   : > { %5080 = vadd.xlane.f32.xlu0 %v5079_v46 }
0x26a4   : > { %v8673_v47 = vpop.eup %8672 }
0x26a5   : > { %v5082_v48 = vsel %vm4820_vm3, %v8673_v47, 0.0 }
0x26a6   : > { %5083 = vadd.xlane.f32.xlu1 %v5082_v48 }
0x26a8   : > { %v8675_v49 = vpop.eup %8674 }
0x26a9   : > { %v5085_v50 = vsel %vm4827_vm5, %v8675_v49, 0.0 }
0x26aa   : > { %5086 = vadd.xlane.f32.xlu0 %v5085_v50 }
0x26b7   : > { %8582 = vrot.lane.b32.xlu1 %v9506_v13, %s10068_s6 }
0x26bb   : > { %8587 = vrot.lane.b32.xlu1 %v9506_v13, %s10069_s3 }
0x26bf   : > { %5381 = vrot.lane.b32.xlu1 %v9510_v14, %s10069_s3  ;;  %s10076_s3 = sld [smem:[#allocation30_spill]] }
0x26c0   : > { %5098 = vrot.lane.b32.xlu0 %v9510_v14, %s10068_s6  ;;  %s10075_s6 = sld [smem:[#allocation28_spill]] }
0x26c3   : > { %5373 = vrot.lane.b32.xlu1 %v9502_v11, %s10045_s1 }
0x26c4   : > { %5371 = vrot.lane.b32.xlu0 %v9500_v6, %s10045_s1 }
0x26c8   : > { %5375 = vrot.lane.b32.xlu0 %v9510_v14, %s10045_s1  ;;  %s10071_s1 = sld [smem:[#allocation27_spill]] }
0x272f   : > { %v5081_v52 = vpop.xlane.xlu0 %5080 }
0x2730   : > { %8676 = vrcp.f32 %v5081_v52 }
0x2733   : > { %v5084_v53 = vpop.xlane.xlu1 %5083 }
0x2734   : > { %8678 = vrcp.f32 %v5084_v53 }
0x2737   : > { %v8583_v54 = vpop.permute.xlu1 %8582  ;;  %v5087_v56 = vpop.xlane.xlu0 %5086 }
0x2738   : > { %v8585_v57 = vunpack.i.h.bf16 %v8583_v54  ;;  %v8584_v58 = vunpack.i.l.bf16 %v8583_v54  ;;  %8680 = vrcp.f32 %v5087_v56 }
0x273a   : > { %v8401_v59 = vpack.c.bf16 %v8585_v57, %v8584_v58  ;;  %v8677_v61 = vpop.eup %8676 }
0x273b   : > { %v5091_v62 = vmul.f32 %v8677_v61, %v8671_v45  ;;  %v5099_v63 = vpop.permute.xlu0 %5098  ;;  %v8588_v5 = vpop.permute.xlu1 %8587 }
0x273c   : > { %8402 = vmatpush3.bf16.msra.mxu0 %v8401_v59  ;;  %v8590_v22 = vunpack.i.h.bf16 %v8588_v5  ;;  %v8589_v12 = vunpack.i.l.bf16 %v8588_v5 }
0x273d   : > { %8055 = vmatprep.subr.mxu0 %v8805_v8 }
0x273e   : > { %v8679_v1 = vpop.eup %8678  ;;  %v8404_v55 = vpack.c.bf16 %v8590_v22, %v8589_v12 }
0x273f   : > { %v5092_v2 = vmul.f32 %v8679_v1, %v8673_v47  ;;  %v5372_v30 = vpop.permute.xlu0 %5371 }
0x2740   : > { %8056 = vmatpush3.msk.msra.mxu0 %vm1649_vm4, %v5099_v63 }
0x2741   : > { %8058 = vmatmul.mubr.msk.f32.vlgmr.msra.gmra.mrb[50].mxu0 %vm4820_vm3, %v5091_v62  ;;  %8077 = vmatprep.subr.mxu0 %v8805_v8 }
0x2742   : > { %8060 = vmatprep.mubr.msk.f32.mxu0 %vm8804_vm1, %v8805_v8  ;;  %8078 = vmatpush3.msra.mxu0 %v4528_v0  ;;  %v8681_v3 = vpop.eup %8680 }
0x2743   : > { %8407 = vmatprep.subr.bf16.mxu0 %v8803_v7  ;;  %v5093_v4 = vmul.f32 %v8681_v3, %v8675_v49  ;;  %v5376_v32 = vpop.permute.xlu0 %5375 }
0x2745   : > { %8061 = vmatmul.mubr.msk.f32.gmra.mrb[52].mxu0 %vm4820_vm3, %v5092_v2 }
0x2746   : > { %8063 = vmatprep.mubr.msk.f32.mxu0 %vm8804_vm1, %v8805_v8 }
0x2749   : > { %8064 = vmatmul.mubr.msk.f32.gmra.mrb[54].mxu0 %vm4820_vm3, %v5093_v4 }
0x274a   : > { %8079 = vmatprep.mubr.msk.f32.mxu0 %vm8804_vm1, %v8805_v8 }
0x274d   : > { %8080 = vmatmul.mubr.msk.f32.vlgmr.msra.gmra.mrb[56].mxu0 %vm1801_vm7, %v9583_v16 }
0x274e   : > { %8082 = vmatprep.mubr.msk.f32.mxu0 %vm8804_vm1, %v8805_v8 }
0x2751   : > { %8083 = vmatmul.mubr.msk.f32.gmra.mrb[58].mxu0 %vm1801_vm7, %v9585_v18 }
0x2752   : > { %8085 = vmatprep.mubr.msk.f32.mxu0 %vm8804_vm1, %v8805_v8 }
0x2755   : > { %8086 = vmatmul.mubr.msk.f32.gmra.mrb[60].mxu0 %vm1801_vm7, %v9587_v23  ;;  %v5382_v23 = vpop.permute.xlu1 %5381 }
0x2756   : > { %8109 = vmatprep.mubr.msk.f32.mxu0 %vm8804_vm1, %v8805_v8 }
0x2759   : > { %v5374_v28 = vpop.permute.xlu1 %5373 }
0x2814   : > { %v5179_v60 = vpop.f32.mrb[50].mxu0 }
0x2815   : > { %v8059_v16 = vpop.f32.mrb[51].mxu0  ;;  %8069 = vmatmul.mubr.msk.f32.vlgmr.msra.gmra.mrb[42].mxu1 %vm1801_vm7, %v5179_v60 }
0x2816   : > { %8406 = vmatpush3.bf16.xpose.msk.msra.mxu1 %vm9516_vm15, %v8404_v55  ;;  %8071 = vmatprep.mubr.msk.f32.mxu1 %vm8804_vm1, %v8805_v8 }
0x2817   : > { %8092 = vmatprep.subr.mxu1 %v8805_v8 }
0x2818   : > { %v5184_v17 = vpop.f32.mrb[52].mxu0 }
0x2819   : > { %v8062_v18 = vpop.f32.mrb[53].mxu0  ;;  %8072 = vmatmul.mubr.msk.f32.gmra.mrb[44].mxu1 %vm1801_vm7, %v5184_v17 }
0x281a   : > { %8074 = vmatprep.mubr.msk.f32.mxu1 %vm8804_vm1, %v8805_v8 }
0x281c   : > { %v5189_v21 = vpop.f32.mrb[54].mxu0 }
0x281d   : > { %v8065_v24 = vpop.f32.mrb[55].mxu0  ;;  %8075 = vmatmul.mubr.msk.f32.gmra.mrb[46].mxu1 %vm1801_vm7, %v5189_v21 }
0x281e   : > { %8093 = vmatpush3.xpose.msk.msra.mxu1 %vm1801_vm7, %v5382_v23  ;;  %8094 = vmatprep.mubr.msk.f32.mxu1 %vm8804_vm1, %v8805_v8 }
0x281f   : > { %8118 = vmatprep.subr.mxu1 %v8805_v8 }
0x2820   : > { %v5357_v26 = vpop.f32.mrb[56].mxu0 }
0x2821   : > { %v8081_v27 = vpop.f32.mrb[57].mxu0  ;;  %8095 = vmatmul.mubr.msk.f32.vlgmr.msra.gmra.mrb[48].mxu1 %vm1801_vm7, %v5372_v30 }
0x2822   : > { %8097 = vmatprep.mubr.msk.f32.mxu1 %vm8804_vm1, %v8805_v8 }
0x2824   : > { %v5362_v29 = vpop.f32.mrb[58].mxu0 }
0x2825   : > { %v8084_v31 = vpop.f32.mrb[59].mxu0  ;;  %8098 = vmatmul.mubr.msk.f32.gmra.mrb[50].mxu1 %vm1801_vm7, %v5374_v28 }
0x2826   : > { %8100 = vmatprep.mubr.msk.f32.mxu1 %vm8804_vm1, %v8805_v8 }
0x2828   : > { %v5367_v34 = vpop.f32.mrb[60].mxu0 }
0x2829   : > { %v8087_v33 = vpop.f32.mrb[61].mxu0  ;;  %8101 = vmatmul.mubr.msk.f32.gmra.mrb[52].mxu1 %vm1801_vm7, %v5376_v32 }
0x282a   : > { %8120 = vmatprep.mubr.msk.f32.mxu1 %vm8804_vm1, %v8805_v8 }
0x28e8   : > { %v5268_v35 = vpop.f32.mrb[42].mxu1 }
0x28e9   : > { %v9660_v36 = vadd.f32 %v5357_v26, %v5268_v35  ;;  %v8070_v19 = vpop.f32.mrb[43].mxu1 }
0x28ea   : > { %v4530_v19 = vld [vmem:[%s10067_s8 + $0x10] sm:$0xff] }
0x28eb   : > { %8119 = vmatpush3.msra.mxu1 %v4530_v19 }
0x28ec   : > { %v5273_v37 = vpop.f32.mrb[44].mxu1  ;;  %8414 = vmatprep.subr.bf16.mxu1 %v8803_v7 }
0x28ed   : > { %v9662_v38 = vadd.f32 %v5362_v29, %v5273_v37  ;;  %v8073_v25 = vpop.f32.mrb[45].mxu1 }
0x28f0   : > { %v5278_v39 = vpop.f32.mrb[46].mxu1 }
0x28f1   : > { %v9664_v40 = vadd.f32 %v5367_v34, %v5278_v39  ;;  %v8076_v41 = vpop.f32.mrb[47].mxu1 }
0x28f4   : > { %v5461_v42 = vpop.f32.mrb[48].mxu1 }
0x28f5   : > { %v5475_v43 = vmul.f32 0.35355338, %v5461_v42  ;;  %v8096_v44 = vpop.f32.mrb[49].mxu1 }
0x28f7   : > { %v5478_v45 = vsel %vm4820_vm3, %v5475_v43, -inf }
0x28f8   : > { %5479 = vmax.xlane.f32.xlu1 %v5478_v45  ;;  %v5466_v46 = vpop.f32.mrb[50].mxu1 }
0x28f9   : > { %v5476_v47 = vmul.f32 0.35355338, %v5466_v46  ;;  %v8099_v48 = vpop.f32.mrb[51].mxu1 }
0x28fb   : > { %v5481_v49 = vsel %vm4820_vm3, %v5476_v47, -inf }
0x28fc   : > { %5482 = vmax.xlane.f32.xlu0 %v5481_v49  ;;  %v5471_v50 = vpop.f32.mrb[52].mxu1 }
0x28fd   : > { %v5477_v51 = vmul.f32 0.35355338, %v5471_v50  ;;  %v8102_v52 = vpop.f32.mrb[53].mxu1 }
0x28ff   : > { %v5484_v53 = vsel %vm4827_vm5, %v5477_v51, -inf }
0x2900   : > { %5485 = vmax.xlane.f32.xlu0 %v5484_v53 }
0x2985   : > { %v5480_v54 = vpop.xlane.xlu1 %5479 }
0x2986   : > { %v5487_v56 = vsub.f32 %v5475_v43, %v5480_v54 }
0x2988   : > { %v5490_v57 = vmul.f32 1.442695, %v5487_v56 }
0x2989   : > { %v5483_v58 = vpop.xlane.xlu0 %5482 }
0x298a   : > { %8682 = vpow2.f32 %v5490_v57  ;;  %v5488_v59 = vsub.f32 %v5476_v47, %v5483_v58 }
0x298c   : > { %v5492_v61 = vmul.f32 1.442695, %v5488_v59 }
0x298d   : > { %v5486_v2 = vpop.xlane.xlu0 %5485 }
0x298e   : > { %8684 = vpow2.f32 %v5492_v61  ;;  %v5489_v3 = vsub.f32 %v5477_v51, %v5486_v2 }
0x2990   : > { %v5494_v4 = vmul.f32 1.442695, %v5489_v3 }
0x2992   : > { %8686 = vpow2.f32 %v5494_v4 }
0x2994   : > { %v8683_v62 = vpop.eup %8682 }
0x2995   : > { %v5496_v63 = vsel %vm4820_vm3, %v8683_v62, 0.0 }
0x2996   : > { %5497 = vadd.xlane.f32.xlu1 %v5496_v63 }
0x2998   : > { %v8685_v0 = vpop.eup %8684 }
0x2999   : > { %v5499_v1 = vsel %vm4820_vm3, %v8685_v0, 0.0 }
0x299a   : > { %5500 = vadd.xlane.f32.xlu0 %v5499_v1 }
0x299c   : > { %v8687_v5 = vpop.eup %8686 }
0x299d   : > { %v5502_v22 = vsel %vm4827_vm5, %v8687_v5, 0.0 }
0x29a7   : > { %5515 = vrot.lane.b32.xlu1 %v9510_v14, %s10046_s10 }
0x29ab   : > { %8597 = vrot.lane.b32.xlu1 %v9506_v13, %s10047_s2 }
0x29b0   : > { %8592 = vrot.lane.b32.xlu0 %v9506_v13, %s10046_s10  ;;  %s10074_s10 = sld [smem:[#allocation26_spill]] }
0x29b4   : > { %5712 = vrot.lane.b32.xlu0 %v9510_v14, %s10047_s2  ;;  %s10072_s2 = sld [smem:[#allocation29_spill]] }
0x29b8   : > { %5704 = vrot.lane.b32.xlu0 %v9502_v11, %s10048_s28 }
0x29cf   : > { %5503 = vadd.xlane.f32.xlu1 %v5502_v22 }
0x29e0   : > { %5702 = vrot.lane.b32.xlu1 %v9500_v6, %s10048_s28 }
0x29e4   : > { %5706 = vrot.lane.b32.xlu1 %v9510_v14, %s10048_s28  ;;  %s10070_s28 = sld [smem:[#allocation24_spill]] }
0x2a23   : > { %v5498_v12 = vpop.xlane.xlu1 %5497 }
0x2a24   : > { %8688 = vrcp.f32 %v5498_v12 }
0x2a27   : > { %v5501_v55 = vpop.xlane.xlu0 %5500  ;;  %v5516_v16 = vpop.permute.xlu1 %5515 }
0x2a28   : > { %8690 = vrcp.f32 %v5501_v55 }
0x2a2b   : > { %v8593_v60 = vpop.permute.xlu0 %8592  ;;  %v8598_v23 = vpop.permute.xlu1 %8597 }
0x2a2c   : > { %v8595_v11 = vunpack.i.h.bf16 %v8593_v60  ;;  %v8594_v17 = vunpack.i.l.bf16 %v8593_v60  ;;  %v8600_v6 = vunpack.i.h.bf16 %v8598_v23  ;;  %v8599_v26 = vunpack.i.l.bf16 %v8598_v23 }
0x2a2e   : > { %v8408_v18 = vpack.c.bf16 %v8595_v11, %v8594_v17  ;;  %v8689_v21 = vpop.eup %8688  ;;  %v8411_v28 = vpack.c.bf16 %v8600_v6, %v8599_v26 }
0x2a2f   : > { %v5508_v24 = vmul.f32 %v8689_v21, %v8683_v62  ;;  %v5713_v29 = vpop.permute.xlu0 %5712 }
0x2a30   : > { %8409 = vmatpush3.bf16.msra.mxu0 %v8408_v18 }
0x2a31   : > { %8107 = vmatprep.subr.mxu0 %v8805_v8 }
0x2a32   : > { %v8691_v30 = vpop.eup %8690 }
0x2a33   : > { %v5509_v27 = vmul.f32 %v8691_v30, %v8685_v0  ;;  %v5705_v20 = vpop.permute.xlu0 %5704 }
0x2a34   : > { %8108 = vmatpush3.msk.msra.mxu0 %vm1649_vm4, %v5516_v16 }
0x2a35   : > { %8110 = vmatmul.mubr.msk.f32.vlgmr.msra.gmra.mrb[62].mxu0 %vm4820_vm3, %v5508_v24  ;;  %8410 = vmatprep.subr.bf16.mxu0 %v8803_v7 }
0x2a36   : > { %8112 = vmatprep.mubr.msk.f32.mxu0 %vm8804_vm1, %v8805_v8 }
0x2a39   : > { %8113 = vmatmul.mubr.msk.f32.gmra.mrb[64].mxu0 %vm4820_vm3, %v5509_v27 }
0x2a3a   : > { %8115 = vmatprep.mubr.msk.f32.mxu0 %vm8804_vm1, %v8805_v8 }
0x2a3b   : > { %8413 = vmatpush3.bf16.xpose.msk.msra.mxu0 %vm9516_vm15, %v8411_v28 }
0x2a3c   : > { %8133 = vmatprep.subr.mxu0 %v8805_v8 }
0x2a43   : > { %8134 = vmatpush3.xpose.msk.msra.mxu0 %vm1801_vm7, %v5713_v29 }
0x2a44   : > { %8159 = vmatprep.subr.mxu0 %v8805_v8 }
0x2a5c   : > { %v5504_v31 = vpop.xlane.xlu1 %5503 }
0x2a5d   : > { %8692 = vrcp.f32 %v5504_v31 }
0x2a60   : > { %v5703_v33 = vpop.permute.xlu1 %5702 }
0x2a64   : > { %v5707_v35 = vpop.permute.xlu1 %5706 }
0x2a67   : > { %v8693_v32 = vpop.eup %8692 }
0x2a68   : > { %v5510_v34 = vmul.f32 %v8693_v32, %v8687_v5 }
0x2a6a   : > { %8116 = vmatmul.mubr.msk.f32.gmra.mrb[66].mxu0 %vm4820_vm3, %v5510_v34 }
0x2a6b   : > { %8135 = vmatprep.mubr.msk.f32.mxu0 %vm8804_vm1, %v8805_v8 }
0x2a6e   : > { %8136 = vmatmul.mubr.msk.f32.vlgmr.msra.gmra.mrb[68].mxu0 %vm1801_vm7, %v5703_v33 }
0x2a6f   : > { %8138 = vmatprep.mubr.msk.f32.mxu0 %vm8804_vm1, %v8805_v8 }
0x2a72   : > { %8139 = vmatmul.mubr.msk.f32.gmra.mrb[70].mxu0 %vm1801_vm7, %v5705_v20 }
0x2a73   : > { %8141 = vmatprep.mubr.msk.f32.mxu0 %vm8804_vm1, %v8805_v8 }
0x2a76   : > { %8142 = vmatmul.mubr.msk.f32.gmra.mrb[72].mxu0 %vm1801_vm7, %v5707_v35 }
0x2a77   : > { %8161 = vmatprep.mubr.msk.f32.mxu0 %vm8804_vm1, %v8805_v8 }
0x2b08   : > { %v5596_v37 = vpop.f32.mrb[62].mxu0 }
0x2b09   : > { %v8111_v25 = vpop.f32.mrb[63].mxu0  ;;  %8121 = vmatmul.mubr.msk.f32.vlgmr.msra.gmra.mrb[54].mxu1 %vm1801_vm7, %v5596_v37 }
0x2b0a   : > { %8123 = vmatprep.mubr.msk.f32.mxu1 %vm8804_vm1, %v8805_v8 }
0x2b0c   : > { %v5601_v39 = vpop.f32.mrb[64].mxu0 }
0x2b0d   : > { %v8114_v41 = vpop.f32.mrb[65].mxu0  ;;  %8124 = vmatmul.mubr.msk.f32.gmra.mrb[56].mxu1 %vm1801_vm7, %v5601_v39 }
0x2b0e   : > { %8126 = vmatprep.mubr.msk.f32.mxu1 %vm8804_vm1, %v8805_v8 }
0x2b3d   : > { %v5606_v42 = vpop.f32.mrb[66].mxu0 }
0x2b3e   : > { %v8117_v43 = vpop.f32.mrb[67].mxu0  ;;  %8127 = vmatmul.mubr.msk.f32.gmra.mrb[58].mxu1 %vm1801_vm7, %v5606_v42 }
0x2b3f   : > { %8150 = vmatprep.mubr.msk.f32.mxu1 %vm8804_vm1, %v8805_v8 }
0x2b41   : > { %v5792_v44 = vpop.f32.mrb[68].mxu0 }
0x2b42   : > { %v5806_v45 = vmul.f32 0.35355338, %v5792_v44  ;;  %v8137_v46 = vpop.f32.mrb[69].mxu0 }
0x2b44   : > { %v5809_v47 = vsel %vm4820_vm3, %v5806_v45, -inf }
0x2b45   : > { %5810 = vmax.xlane.f32.xlu0 %v5809_v47  ;;  %v5797_v48 = vpop.f32.mrb[70].mxu0 }
0x2b46   : > { %v5807_v49 = vmul.f32 0.35355338, %v5797_v48  ;;  %v8140_v50 = vpop.f32.mrb[71].mxu0 }
0x2b48   : > { %v5812_v51 = vsel %vm4820_vm3, %v5807_v49, -inf }
0x2b49   : > { %5813 = vmax.xlane.f32.xlu1 %v5812_v51  ;;  %v5802_v52 = vpop.f32.mrb[72].mxu0 }
0x2b4a   : > { %v5808_v53 = vmul.f32 0.35355338, %v5802_v52  ;;  %v8143_v54 = vpop.f32.mrb[73].mxu0 }
0x2b4c   : > { %v5815_v56 = vsel %vm4827_vm5, %v5808_v53, -inf }
0x2b4d   : > { %5816 = vmax.xlane.f32.xlu0 %v5815_v56 }
0x2bd2   : > { %v5811_v57 = vpop.xlane.xlu0 %5810 }
0x2bd3   : > { %v5818_v58 = vsub.f32 %v5806_v45, %v5811_v57  ;;  %v7416_v45 = vld [vmem:[%s10070_s28] ss:$0 sm:$0xff]  ;;  %s10077_s28 = sld [smem:[#allocation33_spill]] }
0x2bd5   : > { %v5821_v59 = vmul.f32 1.442695, %v5818_v58 }
0x2bd6   : > { %v5814_v61 = vpop.xlane.xlu1 %5813 }
0x2bd7   : > { %8694 = vpow2.f32 %v5821_v59  ;;  %v5819_v62 = vsub.f32 %v5807_v49, %v5814_v61 }
0x2bd9   : > { %v5823_v63 = vmul.f32 1.442695, %v5819_v62 }
0x2bda   : > { %v5817_v0 = vpop.xlane.xlu0 %5816 }
0x2bdb   : > { %8696 = vpow2.f32 %v5823_v63  ;;  %v5820_v1 = vsub.f32 %v5808_v53, %v5817_v0 }
0x2bdc   : > { %v5685_v2 = vpop.f32.mrb[54].mxu1 }
0x2bdd   : > { %v5825_v3 = vmul.f32 1.442695, %v5820_v1  ;;  %v9727_v4 = vadd.f32 %v5685_v2, %v9660_v36  ;;  %v8122_v5 = vpop.f32.mrb[55].mxu1  ;;  %v4535_v2 = vld [vmem:[%s10071_s1] sm:$0xff] }
0x2bde   : > { %v4537_v5 = vld [vmem:[%s10071_s1 + $0x10] sm:$0xff] }
0x2bdf   : > { %8698 = vpow2.f32 %v5825_v3  ;;  %v4536_v3 = vld [vmem:[%s10071_s1 + $0x8] sm:$0xff] }
0x2be0   : > { %v5690_v22 = vpop.f32.mrb[56].mxu1 }
0x2be1   : > { %v8695_v12 = vpop.eup %8694  ;;  %v9730_v55 = vadd.f32 %v5690_v22, %v9662_v38  ;;  %v8125_v60 = vpop.f32.mrb[57].mxu1  ;;  %v4531_v38 = vld [vmem:[%s10067_s8 + $0x18] sm:$0xff] }
0x2be2   : > { %v5827_v16 = vsel %vm4820_vm3, %v8695_v12, 0.0  ;;  %8160 = vmatpush3.msra.mxu0 %v4531_v38  ;;  %v4538_v22 = vld [vmem:[%s10071_s1 + $0x18] sm:$0xff]  ;;  %v4541_v60 = vld [vmem:[%s10072_s2 + $0x8] sm:$0xff] }
0x2be3   : > { %5828 = vadd.xlane.f32.xlu0 %v5827_v16  ;;  %8423 = vmatprep.subr.bf16.mxu0 %v8803_v7 }
0x2be5   : > { %v8697_v11 = vpop.eup %8696 }
0x2be6   : > { %v5830_v17 = vsel %vm4820_vm3, %v8697_v11, 0.0 }
0x2be7   : > { %5831 = vadd.xlane.f32.xlu1 %v5830_v17 }
0x2be9   : > { %v8699_v18 = vpop.eup %8698 }
0x2bea   : > { %v5833_v36 = vsel %vm4827_vm5, %v8699_v18, 0.0 }
0x2beb   : > { %5834 = vadd.xlane.f32.xlu0 %v5833_v36 }
0x2bf8   : > { %8602 = vrot.lane.b32.xlu1 %v9506_v13, %s10049_s7 }
0x2c01   : > { %5846 = vrot.lane.b32.xlu0 %v9510_v14, %s10049_s7  ;;  %s10073_s7 = sld [smem:[#allocation25_spill]] }
0x2c11   : > { %v5695_v21 = vpop.f32.mrb[58].mxu1 }
0x2c12   : > { %v5701_v23 = vadd.f32 %v5695_v21, %v9664_v40  ;;  %v8128_v24 = vpop.f32.mrb[59].mxu1 }
0x2c70   : > { %v5829_v30 = vpop.xlane.xlu0 %5828 }
0x2c71   : > { %8700 = vrcp.f32 %v5829_v30 }
0x2c74   : > { %v5832_v6 = vpop.xlane.xlu1 %5831 }
0x2c75   : > { %8702 = vrcp.f32 %v5832_v6 }
0x2c78   : > { %v8603_v26 = vpop.permute.xlu1 %8602  ;;  %v5835_v27 = vpop.xlane.xlu0 %5834 }
0x2c79   : > { %v8605_v28 = vunpack.i.h.bf16 %v8603_v26  ;;  %v8604_v29 = vunpack.i.l.bf16 %v8603_v26  ;;  %8704 = vrcp.f32 %v5835_v27 }
0x2c7b   : > { %v8415_v13 = vpack.c.bf16 %v8605_v28, %v8604_v29  ;;  %v8701_v31 = vpop.eup %8700 }
0x2c7c   : > { %v5839_v14 = vmul.f32 %v8701_v31, %v8695_v12  ;;  %v5847_v32 = vpop.permute.xlu0 %5846  ;;  %v8421_v12 = vpack.c.bf16 %v4538_v22, %v4537_v5  ;;  %v4552_v5 = vld [vmem:[%s10072_s2 + $0x60] sm:$0xff]  ;;  %v4553_v22 = vld [vmem:[%s10072_s2 + $0x68] sm:$0xff] }
0x2c7d   : > { %8416 = vmatpush3.bf16.msra.mxu1 %v8415_v13 }
0x2c7e   : > { %8148 = vmatprep.subr.mxu1 %v8805_v8 }
0x2c7f   : > { %v8703_v34 = vpop.eup %8702 }
0x2c80   : > { %v5840_v40 = vmul.f32 %v8703_v34, %v8697_v11 }
0x2c81   : > { %8149 = vmatpush3.msk.msra.mxu1 %vm1649_vm4, %v5847_v32 }
0x2c82   : > { %8151 = vmatmul.mubr.msk.f32.vlgmr.msra.gmra.mrb[60].mxu1 %vm4820_vm3, %v5839_v14  ;;  %8417 = vmatprep.subr.bf16.mxu1 %v8803_v7 }
0x2c83   : > { %8153 = vmatprep.mubr.msk.f32.mxu1 %vm8804_vm1, %v8805_v8  ;;  %v8705_v33 = vpop.eup %8704 }
0x2c84   : > { %v5841_v20 = vmul.f32 %v8705_v33, %v8699_v18 }
0x2c86   : > { %8154 = vmatmul.mubr.msk.f32.gmra.mrb[62].mxu1 %vm4820_vm3, %v5840_v40 }
0x2c87   : > { %8156 = vmatprep.mubr.msk.f32.mxu1 %vm8804_vm1, %v8805_v8 }
0x2c8a   : > { %8157 = vmatmul.mubr.msk.f32.gmra.mrb[64].mxu1 %vm4820_vm3, %v5841_v20 }
0x2c8b   : > { %8178 = vmatprep.mubr.msk.f32.mxu1 %vm8804_vm1, %v8805_v8 }
0x2d55   : > { %v5927_v35 = vpop.f32.mrb[60].mxu1 }
0x2d56   : > { %v8152_v19 = vpop.f32.mrb[61].mxu1  ;;  %8162 = vmatmul.mubr.msk.f32.vlgmr.msra.gmra.mrb[74].mxu0 %vm1801_vm7, %v5927_v35 }
0x2d57   : > { %8164 = vmatprep.mubr.msk.f32.mxu0 %vm8804_vm1, %v8805_v8  ;;  %v7417_v19 = vld [vmem:[%s10073_s7] ss:$0 sm:$0xff]  ;;  %s10078_s7 = sld [smem:[#allocation35_spill]] }
0x2d59   : > { %v5932_v37 = vpop.f32.mrb[62].mxu1 }
0x2d5a   : > { %v8155_v25 = vpop.f32.mrb[63].mxu1  ;;  %8165 = vmatmul.mubr.msk.f32.gmra.mrb[76].mxu0 %vm1801_vm7, %v5932_v37 }
0x2d5b   : > { %8167 = vmatprep.mubr.msk.f32.mxu0 %vm8804_vm1, %v8805_v8  ;;  %v7418_v25 = vld [vmem:[%s10074_s10] ss:$0 sm:$0xff]  ;;  %s10079_s10 = sld [smem:[#allocation31_spill]] }
0x2d5d   : > { %v5937_v39 = vpop.f32.mrb[64].mxu1 }
0x2d5e   : > { %v8158_v41 = vpop.f32.mrb[65].mxu1  ;;  %8168 = vmatmul.mubr.msk.f32.gmra.mrb[78].mxu0 %vm1801_vm7, %v5937_v39 }
0x2d5f   : > { %8219 = vmatprep.mubr.msk.f32.mxu0 %vm8804_vm1, %v8805_v8 }
0x2e29   : > { %v6016_v42 = vpop.f32.mrb[74].mxu0 }
0x2e2a   : > { %v6030_v43 = vadd.f32 %v6016_v42, %v9727_v4  ;;  %v8163_v44 = vpop.f32.mrb[75].mxu0  ;;  %v8418_v4 = vpack.c.bf16 %v4536_v3, %v4535_v2  ;;  %v4550_v2 = vld [vmem:[%s10072_s2 + $0x50] sm:$0xff]  ;;  %v4551_v3 = vld [vmem:[%s10072_s2 + $0x58] sm:$0xff] }
0x2e2c   : > { %v6033_v46 = vadd.f32 %v6030_v43, %v9457_v9  ;;  %8419 = vmatpush3.bf16.msra.mxu1 %v8418_v4  ;;  %v8439_v4 = vpack.c.bf16 %v4551_v3, %v4550_v2 }
0x2e2d   : > { %v6021_v47 = vpop.f32.mrb[76].mxu0  ;;  %8420 = vmatprep.subr.bf16.mxu1 %v8803_v7 }
0x2e2e   : > { %v9766_v48 = vadd.f32 %v7416_v45, %v6033_v46  ;;  %v6031_v49 = vadd.f32 %v6021_v47, %v9730_v55  ;;  %v8166_v50 = vpop.f32.mrb[77].mxu0  ;;  %v4540_v55 = vld [vmem:[%s10072_s2] sm:$0xff] }
0x2e2f   : > { %v8424_v16 = vpack.c.bf16 %v4541_v60, %v4540_v55  ;;  %v4554_v55 = vld [vmem:[%s10072_s2 + $0x70] sm:$0xff]  ;;  %v4555_v60 = vld [vmem:[%s10072_s2 + $0x78] sm:$0xff] }
0x2e30   : > { %v6034_v51 = vadd.f32 %v6031_v49, %v9459_v10  ;;  %v6045_v52 = vsel %vm1724_vm6, %v9766_v48, 0.0  ;;  %v6057_v53 = vmul.f32 %v9766_v48, %v9766_v48  ;;  %8422 = vmatpush3.bf16.msra.mxu1 %v8421_v12  ;;  %v8442_v12 = vpack.c.bf16 %v4553_v22, %v4552_v5 }
0x2e31   : > { %6046 = vadd.xlane.f32.xlu1 %v6045_v52  ;;  %v6026_v54 = vpop.f32.mrb[78].mxu0  ;;  %8425 = vmatpush3.bf16.msra.mxu0 %v8424_v16  ;;  %v8445_v16 = vpack.c.bf16 %v4555_v60, %v4554_v55  ;;  %v6385_v55 = vld [vmem:[%s10077_s28 + $0x8] sm:$0xff]  ;;  %v7440_v60 = vld [vmem:[%s10078_s7 + $0x40] sm:$0xff] }
0x2e32   : > { %v9774_v56 = vadd.f32 %v7416_v45, %v6034_v51  ;;  %v6032_v57 = vadd.f32 %v6026_v54, %v5701_v23  ;;  %v8169_v9 = vpop.f32.mrb[79].mxu0  ;;  %v6060_v58 = vsel %vm1724_vm6, %v6057_v53, 0.0  ;;  %8426 = vmatprep.subr.bf16.mxu0 %v8803_v7  ;;  %v4542_v53 = vld [vmem:[%s10072_s2 + $0x10] sm:$0xff]  ;;  %v4543_v54 = vld [vmem:[%s10072_s2 + $0x18] sm:$0xff] }
0x2e33   : > { %6061 = vadd.xlane.f32.xlu0 %v6060_v58  ;;  %v4544_v9 = vld [vmem:[%s10072_s2 + $0x20] sm:$0xff]  ;;  %v4545_v58 = vld [vmem:[%s10072_s2 + $0x28] sm:$0xff] }
0x2e34   : > { %v6035_v59 = vadd.f32 %v6032_v57, %v9471_v15  ;;  %v6048_v10 = vsel %vm1724_vm6, %v9774_v56, 0.0  ;;  %v6058_v61 = vmul.f32 %v9774_v56, %v9774_v56  ;;  %v8427_v57 = vpack.c.bf16 %v4543_v54, %v4542_v53 }
0x2e35   : > { %6049 = vadd.xlane.f32.xlu1 %v6048_v10  ;;  %v4546_v10 = vld [vmem:[%s10072_s2 + $0x30] sm:$0xff] }
0x2e36   : > { %v9782_v62 = vadd.f32 %v7416_v45, %v6035_v59  ;;  %v6063_v63 = vsel %vm1724_vm6, %v6058_v61, 0.0  ;;  %8428 = vmatpush3.bf16.msra.mxu0 %v8427_v57  ;;  %v8430_v59 = vpack.c.bf16 %v4545_v58, %v4544_v9  ;;  %v4547_v61 = vld [vmem:[%s10072_s2 + $0x38] sm:$0xff] }
0x2e37   : > { %6064 = vadd.xlane.f32.xlu0 %v6063_v63  ;;  %8429 = vmatprep.subr.bf16.mxu0 %v8803_v7  ;;  %v8433_v63 = vpack.c.bf16 %v4547_v61, %v4546_v10 }
0x2e38   : > { %v6051_v0 = vsel %vm4563_vm14, %v9782_v62, 0.0  ;;  %v6059_v15 = vmul.f32 %v9782_v62, %v9782_v62 }
0x2e39   : > { %6052 = vadd.xlane.f32.xlu1 %v6051_v0  ;;  %v4548_v0 = vld [vmem:[%s10072_s2 + $0x40] sm:$0xff] }
0x2e3a   : > { %v6066_v1 = vsel %vm4563_vm14, %v6059_v15, 0.0  ;;  %8431 = vmatpush3.bf16.msra.mxu0 %v8430_v59  ;;  %v4549_v15 = vld [vmem:[%s10072_s2 + $0x48] sm:$0xff] }
0x2e3b   : > { %6067 = vadd.xlane.f32.xlu0 %v6066_v1  ;;  %8432 = vmatprep.subr.bf16.mxu0 %v8803_v7  ;;  %v8436_v1 = vpack.c.bf16 %v4549_v15, %v4548_v0 }
0x2e3e   : > { %8434 = vmatpush3.bf16.msra.mxu0 %v8433_v63 }
0x2e3f   : > { %8435 = vmatprep.subr.bf16.mxu0 %v8803_v7 }
0x2e42   : > { %8437 = vmatpush3.bf16.msra.mxu0 %v8436_v1 }
0x2e43   : > { %8438 = vmatprep.subr.bf16.mxu0 %v8803_v7 }
0x2e46   : > { %8440 = vmatpush3.bf16.msra.mxu0 %v8439_v4 }
0x2e47   : > { %8441 = vmatprep.subr.bf16.mxu0 %v8803_v7 }
0x2e4a   : > { %8443 = vmatpush3.bf16.msra.mxu0 %v8442_v12  ;;  %v6384_v12 = vld [vmem:[%s10077_s28] sm:$0xff] }
0x2e4b   : > { %8444 = vmatprep.subr.bf16.mxu0 %v8803_v7 }
0x2e4e   : > { %8446 = vmatpush3.bf16.msra.mxu0 %v8445_v16  ;;  %v8447_v16 = vpack.c.bf16 %v6385_v55, %v6384_v12 }
0x2e50   : > { %8448 = vmatprep.subr.bf16.mxu1 %v8447_v16 }
0x2ebe   : > { %v6047_v11 = vpop.xlane.xlu1 %6046 }
0x2ebf   : > { %v6054_v17 = vmul.f32 0.03125, %v6047_v11  ;;  %v7419_v11 = vld [vmem:[%s10075_s6] ss:$0 sm:$0xff]  ;;  %s10080_s6 = sld [smem:[#allocation32_spill]] }
0x2ec0   : > { %v6062_v18 = vpop.xlane.xlu0 %6061 }
0x2ec1   : > { %v6072_v36 = vmul.f32 %v6054_v17, %v6054_v17  ;;  %v6069_v38 = vmul.f32 0.03125, %v6062_v18  ;;  %v6078_v20 = vsub.f32 %v9766_v48, %v6054_v17 }
0x2ec2   : > { %v6050_v21 = vpop.xlane.xlu1 %6049 }
0x2ec3   : > { %v6075_v23 = vsub.f32 %v6069_v38, %v6072_v36  ;;  %v6055_v24 = vmul.f32 0.03125, %v6050_v21 }
0x2ec4   : > { %v6065_v30 = vpop.xlane.xlu0 %6064 }
0x2ec5   : > { %v6081_v6 = vadd.f32 1e-05, %v6075_v23  ;;  %v6073_v26 = vmul.f32 %v6055_v24, %v6055_v24  ;;  %v6070_v27 = vmul.f32 0.03125, %v6065_v30  ;;  %v6079_v41 = vsub.f32 %v9774_v56, %v6055_v24 }
0x2ec6   : > { %v6053_v28 = vpop.xlane.xlu1 %6052 }
0x2ec7   : > { %8706 = vrsqrt.f32 %v6081_v6  ;;  %v6076_v29 = vsub.f32 %v6070_v27, %v6073_v26  ;;  %v6056_v13 = vmul.f32 0.03125, %v6053_v28 }
0x2ec8   : > { %v6068_v31 = vpop.xlane.xlu0 %6067 }
0x2ec9   : > { %v6082_v14 = vadd.f32 1e-05, %v6076_v29  ;;  %v6074_v32 = vmul.f32 %v6056_v13, %v6056_v13  ;;  %v6071_v34 = vmul.f32 0.03125, %v6068_v31  ;;  %v6080_v45 = vsub.f32 %v9782_v62, %v6056_v13 }
0x2ecb   : > { %8708 = vrsqrt.f32 %v6082_v14  ;;  %v6077_v40 = vsub.f32 %v6071_v34, %v6074_v32 }
0x2ecd   : > { %v6083_v33 = vadd.f32 1e-05, %v6077_v40 }
0x2ecf   : > { %8710 = vrsqrt.f32 %v6083_v33 }
0x2ed1   : > { %v8707_v35 = vpop.eup %8706 }
0x2ed2   : > { %v6087_v37 = vmul.f32 %v8707_v35, %v6078_v20 }
0x2ed4   : > { %v6096_v39 = vmul.f32 %v7417_v19, %v6087_v37 }
0x2ed5   : > { %v8709_v42 = vpop.eup %8708 }
0x2ed6   : > { %v6105_v43 = vadd.f32 %v7418_v25, %v6096_v39  ;;  %v6088_v44 = vmul.f32 %v8709_v42, %v6079_v41 }
0x2ed8   : > { %8179 = vmatmul.mubr.msk.f32.vlgmr.msra.gmra.mrb[66].mxu1 %vm1724_vm6, %v6105_v43  ;;  %v6097_v46 = vmul.f32 %v7417_v19, %v6088_v44 }
0x2ed9   : > { %v8711_v47 = vpop.eup %8710  ;;  %8181 = vmatprep.mubr.msk.f32.mxu1 %vm8804_vm1, %v8805_v8  ;;  %8450 = vmatpush3.bf16.msra.mxu1 %v8447_v16 }
0x2eda   : > { %v6106_v49 = vadd.f32 %v7418_v25, %v6097_v46  ;;  %v6089_v50 = vmul.f32 %v8711_v47, %v6080_v45 }
0x2edc   : > { %8182 = vmatmul.mubr.msk.f32.gmra.mrb[68].mxu1 %vm1724_vm6, %v6106_v49  ;;  %v6098_v51 = vmul.f32 %v7417_v19, %v6089_v50 }
0x2edd   : > { %8184 = vmatprep.mubr.msk.f32.mxu1 %vm8804_vm1, %v8805_v8 }
0x2ede   : > { %v6107_v52 = vadd.f32 %v7418_v25, %v6098_v51  ;;  %v7423_v51 = vld [vmem:[%s10076_s3] ss:$0 sm:$0xff]  ;;  %s10081_s3 = sld [smem:[#allocation34_spill]] }
0x2ee0   : > { %8185 = vmatmul.mubr.msk.f32.gmra.mrb[70].mxu1 %vm1724_vm6, %v6107_v52 }
0x2fab   : > { %v6189_v17 = vpop.f32.mrb[66].mxu1 }
0x2fac   : > { %v6190_v18 = vadd.f32 %v7419_v11, %v6189_v17  ;;  %v8180_v36 = vpop.f32.mrb[67].mxu1  ;;  %v6386_v17 = vld [vmem:[%s10077_s28 + $0x10] sm:$0xff] }
0x2fae   : > { %v6206_v38 = vmul.f32 0.044715, %v6190_v18  ;;  %v6203_v25 = vmul.f32 0.5, %v6190_v18 }
0x2faf   : > { %v6194_v21 = vpop.f32.mrb[68].mxu1 }
0x2fb0   : > { %v6209_v23 = vmul.f32 %v6206_v38, %v6190_v18  ;;  %v6195_v24 = vadd.f32 %v7419_v11, %v6194_v21  ;;  %v8183_v30 = vpop.f32.mrb[69].mxu1  ;;  %v7442_v21 = vld [vmem:[%s10078_s7 + $0x50] sm:$0xff] }
0x2fb1   : > { %v6486_v30 = vld [vmem:[%s10078_s7] sm:$0xff] }
0x2fb2   : > { %v6212_v6 = vmul.f32 %v6209_v23, %v6190_v18  ;;  %v6207_v26 = vmul.f32 0.044715, %v6195_v24  ;;  %v6204_v43 = vmul.f32 0.5, %v6195_v24  ;;  %v7443_v23 = vld [vmem:[%s10078_s7 + $0x58] sm:$0xff] }
0x2fb3   : > { %v6199_v27 = vpop.f32.mrb[70].mxu1 }
0x2fb4   : > { %v6215_v28 = vadd.f32 %v6212_v6, %v6190_v18  ;;  %v6210_v29 = vmul.f32 %v6207_v26, %v6195_v24  ;;  %v6200_v13 = vadd.f32 %v7419_v11, %v6199_v27  ;;  %v8186_v31 = vpop.f32.mrb[71].mxu1  ;;  %v7441_v11 = vld [vmem:[%s10078_s7 + $0x48] sm:$0xff]  ;;  %v6387_v18 = vld [vmem:[%s10077_s28 + $0x18] sm:$0xff]  ;;  %v7456_v26 = vld [vmem:[%s10078_s7 + $0x80] sm:$0xff] }
0x2fb5   : > { %v8471_v36 = vpack.c.bf16 %v7441_v11, %v7440_v60  ;;  %v8451_v38 = vpack.c.bf16 %v6387_v18, %v6386_v17  ;;  %v6487_v6 = vld [vmem:[%s10078_s7 + $0x8] sm:$0xff]  ;;  %v7432_v11 = vld [vmem:[%s10078_s7 + $0x20] sm:$0xff] }
0x2fb6   : > { %v6218_v14 = vmul.f32 0.7978846, %v6215_v28  ;;  %v6208_v32 = vmul.f32 0.044715, %v6200_v13  ;;  %v6213_v7 = vmul.f32 %v6210_v29, %v6195_v24  ;;  %v6205_v47 = vmul.f32 0.5, %v6200_v13  ;;  %v7457_v28 = vld [vmem:[%s10078_s7 + $0x88] sm:$0xff] }
0x2fb7   : > { %8472 = vmatprep.subr.bf16.mxu0 %v8471_v36  ;;  %8452 = vmatprep.subr.bf16.mxu1 %v8451_v38  ;;  %v9871_v27 = vpack.c.bf16 %v6487_v6, %v6486_v30  ;;  %v8487_v29 = vpack.c.bf16 %v7457_v28, %v7456_v26  ;;  %v7433_v17 = vld [vmem:[%s10078_s7 + $0x28] sm:$0xff]  ;;  %v7450_v6 = vld [vmem:[%s10078_s7 + $0x70] sm:$0xff]  ;;  %v7451_v26 = vld [vmem:[%s10078_s7 + $0x78] sm:$0xff] }
0x2fb8   : > { %8712 = vtanh.f32 %v6218_v14  ;;  %v6211_v34 = vmul.f32 %v6208_v32, %v6200_v13  ;;  %v6216_v40 = vadd.f32 %v6213_v7, %v6195_v24  ;;  %v8475_v24 = vpack.c.bf16 %v7443_v23, %v7442_v21  ;;  %8454 = vmatpush3.bf16.msra.mxu1 %v8451_v38  ;;  %v7435_v38 = vld [vmem:[%s10078_s7 + $0x38] sm:$0xff]  ;;  %v7448_v23 = vld [vmem:[%s10078_s7 + $0x60] sm:$0xff] }
0x2fb9   : > { %8456 = vmatprep.subr.bf16.mxu1 %v9871_v27  ;;  %v8463_v18 = vpack.c.bf16 %v7433_v17, %v7432_v11  ;;  %v7426_v28 = vld [vmem:[%s10081_s3] ss:$0 sm:$0xff] }
0x2fba   : > { %v6219_v33 = vmul.f32 0.7978846, %v6216_v40  ;;  %v6214_v20 = vmul.f32 %v6211_v34, %v6200_v13 }
0x2fbc   : > { %8714 = vtanh.f32 %v6219_v33  ;;  %v6217_v35 = vadd.f32 %v6214_v20, %v6200_v13 }
0x2fbe   : > { %v6220_v19 = vmul.f32 0.7978846, %v6217_v35 }
0x2fc0   : > { %8716 = vtanh.f32 %v6220_v19 }
0x2fc2   : > { %v8713_v37 = vpop.eup %8712 }
0x2fc3   : > { %v6224_v39 = vadd.f32 1.0, %v8713_v37 }
0x2fc5   : > { %v6227_v41 = vmul.f32 %v6224_v39, %v6203_v25 }
0x2fc6   : > { %v8715_v42 = vpop.eup %8714 }
0x2fc7   : > { %8220 = vmatmul.mubr.f32.vlgmr.msra.gmra.mrb[80].mxu0 %v6227_v41  ;;  %v6225_v44 = vadd.f32 1.0, %v8715_v42 }
0x2fc8   : > { %8222 = vmatprep.mubr.msk.f32.mxu0 %vm8804_vm1, %v8805_v8  ;;  %8474 = vmatpush3.bf16.msra.mxu0 %v8471_v36  ;;  %v7434_v36 = vld [vmem:[%s10078_s7 + $0x30] sm:$0xff] }
0x2fc9   : > { %v6228_v45 = vmul.f32 %v6225_v44, %v6204_v43  ;;  %8476 = vmatprep.subr.bf16.mxu0 %v8475_v24  ;;  %v8467_v21 = vpack.c.bf16 %v7435_v38, %v7434_v36 }
0x2fca   : > { %v8717_v46 = vpop.eup %8716 }
0x2fcb   : > { %8223 = vmatmul.mubr.f32.gmra.mrb[82].mxu0 %v6228_v45  ;;  %v6226_v49 = vadd.f32 1.0, %v8717_v46 }
0x2fcc   : > { %8225 = vmatprep.mubr.msk.f32.mxu0 %vm8804_vm1, %v8805_v8  ;;  %8478 = vmatpush3.bf16.msra.mxu0 %v8475_v24  ;;  %v7449_v24 = vld [vmem:[%s10078_s7 + $0x68] sm:$0xff] }
0x2fcd   : > { %v6229_v50 = vmul.f32 %v6226_v49, %v6205_v47  ;;  %8488 = vmatprep.subr.bf16.mxu0 %v8487_v29  ;;  %v8479_v30 = vpack.c.bf16 %v7449_v24, %v7448_v23 }
0x2fcf   : > { %8226 = vmatmul.mubr.f32.gmra.mrb[84].mxu0 %v6229_v50 }
0x309a   : > { %v6302_v52 = vpop.f32.mrb[80].mxu0 }
0x309b   : > { %v6303_v53 = vadd.f32 %v7423_v51, %v6302_v52  ;;  %v8221_v54 = vpop.f32.mrb[81].mxu0  ;;  %v7424_v52 = vld [vmem:[%s10079_s10] ss:$0 sm:$0xff]  ;;  %s10082_s10 = sld [smem:[#allocation5_spill]] }
0x309d   : > { %v9837_v57 = vadd.f32 %v6303_v53, %v9766_v48 }
0x309e   : > { %v6307_v9 = vpop.f32.mrb[82].mxu0 }
0x309f   : > { %v6308_v58 = vadd.f32 %v7423_v51, %v6307_v9  ;;  %v8224_v59 = vpop.f32.mrb[83].mxu0  ;;  %v6321_v10 = vsel %vm1724_vm6, %v9837_v57, 0.0  ;;  %v6333_v61 = vmul.f32 %v9837_v57, %v9837_v57 }
0x30a0   : > { %6322 = vadd.xlane.f32.xlu1 %v6321_v10 }
0x30a1   : > { %v9844_v63 = vadd.f32 %v6308_v58, %v9774_v56  ;;  %v6336_v0 = vsel %vm1724_vm6, %v6333_v61, 0.0  ;;  %v7425_v61 = vld [vmem:[%s10080_s6] ss:$0 sm:$0xff]  ;;  %s1446_s6 = scalar_lea.vmem %s9045_s20, %s9070_s0  ;;  %s1441_s1 = scalar_lea.vmem %s10082_s10, %s9070_s0 }
0x30a2   : > { %6337 = vadd.xlane.f32.xlu0 %v6336_v0  ;;  %v6312_v48 = vpop.f32.mrb[84].mxu0  ;;  %s1449_s0 = scalar_lea.vmem %s9050_s4, %s10084_s16 }
0x30a3   : > { %v6313_v15 = vadd.f32 %v7423_v51, %v6312_v48  ;;  %v8227_v1 = vpop.f32.mrb[85].mxu0  ;;  %v6324_v3 = vsel %vm1724_vm6, %v9844_v63, 0.0  ;;  %v6334_v5 = vmul.f32 %v9844_v63, %v9844_v63 }
0x30a5   : > { %v9848_v2 = vadd.f32 %v6313_v15, %v9782_v62  ;;  %v6339_v22 = vsel %vm1724_vm6, %v6334_v5, 0.0 }
0x30a6   : > { %6325 = vadd.xlane.f32.xlu0 %v6324_v3 }
0x30a7   : > { %v6327_v56 = vsel %vm4563_vm14, %v9848_v2, 0.0  ;;  %v6335_v4 = vmul.f32 %v9848_v2, %v9848_v2 }
0x30a8   : > { %6328 = vadd.xlane.f32.xlu1 %v6327_v56  ;;  %v6488_v56 = vld [vmem:[%s10078_s7 + $0x10] sm:$0xff] }
0x30a9   : > { %v6342_v62 = vsel %vm4563_vm14, %v6335_v4, 0.0 }
0x30aa   : > { %6343 = vadd.xlane.f32.xlu0 %v6342_v62  ;;  %v6489_v62 = vld [vmem:[%s10078_s7 + $0x18] sm:$0xff] }
0x30ab   : > { %v8459_v60 = vpack.c.bf16 %v6489_v62, %v6488_v56 }
0x30ac   : > { %6340 = vadd.xlane.f32.xlu1 %v6339_v22  ;;  %v7459_v22 = vld [vmem:[%s10078_s7 + $0x98] sm:$0xff] }
0x312d   : > { %v6323_v13 = vpop.xlane.xlu1 %6322 }
0x312e   : > { %v6330_v31 = vmul.f32 0.03125, %v6323_v13 }
0x312f   : > { %v6338_v14 = vpop.xlane.xlu0 %6337 }
0x3130   : > { %v6348_v32 = vmul.f32 %v6330_v31, %v6330_v31  ;;  %v6345_v7 = vmul.f32 0.03125, %v6338_v14  ;;  %v6354_v50 = vsub.f32 %v9837_v57, %v6330_v31 }
0x3132   : > { %v6351_v34 = vsub.f32 %v6345_v7, %v6348_v32 }
0x3133   : > { %v6326_v40 = vpop.xlane.xlu0 %6325 }
0x3134   : > { %v6357_v33 = vadd.f32 1e-05, %v6351_v34  ;;  %v6331_v35 = vmul.f32 0.03125, %v6326_v40 }
0x3135   : > { %v6329_v20 = vpop.xlane.xlu1 %6328 }
0x3136   : > { %v6332_v19 = vmul.f32 0.03125, %v6329_v20  ;;  %8718 = vrsqrt.f32 %v6357_v33  ;;  %v6349_v42 = vmul.f32 %v6331_v35, %v6331_v35  ;;  %v6355_v9 = vsub.f32 %v9844_v63, %v6331_v35  ;;  %v7458_v63 = vld [vmem:[%s10078_s7 + $0x90] sm:$0xff]  ;;  %v7429_v35 = vld [vmem:[%s9040_s13] ss:$0 sm:$0xff] }
0x3137   : > { %v6344_v37 = vpop.xlane.xlu0 %6343  ;;  %v8491_v16 = vpack.c.bf16 %v7459_v22, %v7458_v63 }
0x3138   : > { %v6350_v25 = vmul.f32 %v6332_v19, %v6332_v19  ;;  %v6347_v39 = vmul.f32 0.03125, %v6344_v37  ;;  %v6356_v53 = vsub.f32 %v9848_v2, %v6332_v19  ;;  %v7445_v19 = vld [vmem:[%s9040_s13 + $0x2] ss:$0 sm:$0xff]  ;;  %v7437_v37 = vld [vmem:[%s9040_s13 + $0x1] ss:$0 sm:$0xff] }
0x3139   : > { %v6341_v41 = vpop.xlane.xlu1 %6340 }
0x313a   : > { %v6353_v43 = vsub.f32 %v6347_v39, %v6350_v25  ;;  %v6346_v44 = vmul.f32 0.03125, %v6341_v41  ;;  %v9915_v25 = vld [vmem:[%s1441_s1 + $0x8] sm:$0xff]  ;;  %v9917_v41 = vld [vmem:[%s1441_s1] sm:$0xff]  ;;  %s1452_s1 = scalar_lea.vmem %s9055_s12, %s10084_s16 }
0x313b   : > { %vm6941_vm1 = vcmp.eq.s32.totalorder %v9915_v25, 0  ;;  %vm6940_vm4 = vcmp.eq.s32.totalorder %v9917_v41, 0  ;;  %vm6969_vm7 = vcmp.eq.s32.totalorder %v9915_v25, 2  ;;  %vm6968_vm8 = vcmp.eq.s32.totalorder %v9917_v41, 2 }
0x313c   : > { %v6359_v45 = vadd.f32 1e-05, %v6353_v43  ;;  %v6352_v46 = vsub.f32 %v6346_v44, %v6349_v42  ;;  %vm6983_vm9 = vcmp.eq.s32.totalorder %v9915_v25, 3  ;;  %vm6982_vm10 = vcmp.eq.s32.totalorder %v9917_v41, 3 }
0x313d   : > { %vm6997_vm11 = vcmp.eq.s32.totalorder %v9915_v25, 4  ;;  %vm6996_vm12 = vcmp.eq.s32.totalorder %v9917_v41, 4  ;;  %vm7009_vm13 = vcmp.ge.s32.totalorder %v9915_v25, 0  ;;  %vm7008_vm14 = vcmp.ge.s32.totalorder %v9917_v41, 0 }
0x313e   : > { %8720 = vrsqrt.f32 %v6359_v45  ;;  %v6358_v47 = vadd.f32 1e-05, %v6352_v46 }
0x3140   : > { %8722 = vrsqrt.f32 %v6358_v47  ;;  %v8719_v49 = vpop.eup %8718 }
0x3141   : > { %v6363_v51 = vmul.f32 %v8719_v49, %v6354_v50 }
0x3143   : > { %v6372_v59 = vmul.f32 %v7424_v52, %v6363_v51 }
0x3145   : > { %v6381_v1 = vadd.f32 %v7425_v61, %v6372_v59 }
0x3147   : > { %v6398_v2 = vrot.slane %v6381_v1, 1 }
0x3148   : > { %v8721_v54 = vpop.eup %8720 }
0x3149   : > { %v6365_v58 = vmul.f32 %v8721_v54, %v6356_v53 }
0x314a   : > { %v8723_v10 = vpop.eup %8722 }
0x314b   : > { %v6364_v0 = vmul.f32 %v8723_v10, %v6355_v9  ;;  %v6374_v48 = vmul.f32 %v7424_v52, %v6365_v58 }
0x314d   : > { %v6373_v15 = vmul.f32 %v7424_v52, %v6364_v0  ;;  %v6383_v57 = vadd.f32 %v7425_v61, %v6374_v48  ;;  %v7461_v48 = vld [vmem:[%s9040_s13 + $0x4] ss:$0 sm:$0xff] }
0x314f   : > { %v6382_v3 = vadd.f32 %v7425_v61, %v6373_v15  ;;  %v6401_v5 = vrot.slane %v6383_v57, 1  ;;  %v7453_v15 = vld [vmem:[%s9040_s13 + $0x3] ss:$0 sm:$0xff] }
0x3151   : > { %v6399_v4 = vrot.slane %v6382_v3, 1 }
0x3153   : > { %v6400_v12 = vsel %vm1552_vm2, %v6398_v2, %v6399_v4  ;;  %v6402_v55 = vsel %vm1552_vm2, %v6399_v4, %v6401_v5  ;;  %vm6955_vm2 = vcmp.eq.s32.totalorder %v9915_v25, 1 }
0x3154   : > { %8236 = vmatprep.mubr.msk.f32.mxu1 %vm1724_vm6, %v6400_v12  ;;  %8269 = vmatprep.mubr.msk.f32.mxu0 %vm1724_vm6, %v6400_v12 }
0x3155   : > { %8237 = vmatmul.mubr.msk.f32.vlgmr.msra.gmra.mrb[72].mxu1 %vm1724_vm6, %v6402_v55  ;;  %8270 = vmatmul.mubr.msk.f32.vlgmr.msra.gmra.mrb[86].mxu0 %vm1724_vm6, %v6402_v55 }
0x3156   : > { %8458 = vmatpush3.bf16.msra.mxu1 %v9871_v27  ;;  %8490 = vmatpush3.bf16.msra.mxu0 %v8487_v29  ;;  %v8483_v27 = vpack.c.bf16 %v7451_v26, %v7450_v6 }
0x3157   : > { %8247 = vmatprep.mubr.msk.f32.mxu1 %vm1724_vm6, %v6400_v12  ;;  %8291 = vmatprep.mubr.msk.f32.mxu0 %vm1724_vm6, %v6400_v12 }
0x3158   : > { %8460 = vmatprep.subr.bf16.mxu1 %v8459_v60  ;;  %8492 = vmatprep.subr.bf16.mxu0 %v8491_v16 }
0x315a   : > { %8462 = vmatpush3.bf16.msra.mxu1 %v8459_v60  ;;  %8494 = vmatpush3.bf16.msra.mxu0 %v8491_v16 }
0x315b   : > { %8464 = vmatprep.subr.bf16.mxu1 %v8463_v18 }
0x315d   : > { %8248 = vmatmul.mubr.msk.f32.vlgmr.msra.gmra.mrb[74].mxu1 %vm1724_vm6, %v6402_v55  ;;  %8292 = vmatmul.mubr.msk.f32.vlgmr.msra.gmra.mrb[88].mxu0 %vm1724_vm6, %v6402_v55 }
0x315e   : > { %8466 = vmatpush3.bf16.msra.mxu1 %v8463_v18  ;;  %8258 = vmatprep.mubr.msk.f32.mxu1 %vm1724_vm6, %v6400_v12 }
0x315f   : > { %8468 = vmatprep.subr.bf16.mxu1 %v8467_v21 }
0x3162   : > { %8470 = vmatpush3.bf16.msra.mxu1 %v8467_v21 }
0x3163   : > { %8480 = vmatprep.subr.bf16.mxu1 %v8479_v30 }
0x3165   : > { %8259 = vmatmul.mubr.msk.f32.vlgmr.msra.gmra.mrb[76].mxu1 %vm1724_vm6, %v6402_v55 }
0x3166   : > { %8482 = vmatpush3.bf16.msra.mxu1 %v8479_v30  ;;  %8280 = vmatprep.mubr.msk.f32.mxu1 %vm1724_vm6, %v6400_v12 }
0x3167   : > { %8484 = vmatprep.subr.bf16.mxu1 %v8483_v27 }
0x316a   : > { %8486 = vmatpush3.bf16.msra.mxu1 %v8483_v27 }
0x316d   : > { %8281 = vmatmul.mubr.msk.f32.vlgmr.msra.gmra.mrb[78].mxu1 %vm1724_vm6, %v6402_v55  ;;  %vm6954_vm6 = vcmp.eq.s32.totalorder %v9917_v41, 1 }
0x3228   : > { %v8238_v29 = vpop.f32.mrb[72].mxu1  ;;  %v8271_v13 = vpop.f32.mrb[86].mxu0 }
0x3229   : > { %v6479_v31 = vadd.f32 %v8238_v29, %v7426_v28  ;;  %v6473_v14 = vpop.f32.mrb[73].mxu1  ;;  %v6739_v32 = vpop.f32.mrb[87].mxu0  ;;  %v6745_v44 = vadd.f32 %v8271_v13, %v7445_v19 }
0x322a   : > { %v6474_v7 = vadd.f32 %v7426_v28, %v6473_v14  ;;  %v6740_v47 = vadd.f32 %v7445_v19, %v6739_v32 }
0x322b   : > { %6483 = vst [vmem:[%s1446_s6 + $0x8] sm:$0xff] %v6479_v31  ;;  %v6971_v59 = vsel %vm6969_vm7, %v6745_v44, 0.0 }
0x322c   : > { %6482 = vst [vmem:[%s1446_s6] sm:$0xff] %v6474_v7  ;;  %v6970_v0 = vsel %vm6968_vm8, %v6740_v47, 0.0 }
0x3230   : > { %v8249_v34 = vpop.f32.mrb[74].mxu1  ;;  %v8293_v40 = vpop.f32.mrb[88].mxu0 }
0x3231   : > { %v6563_v33 = vpop.f32.mrb[75].mxu1  ;;  %v6915_v20 = vpop.f32.mrb[89].mxu0  ;;  %v6569_v39 = vadd.f32 %v8249_v34, %v7429_v35  ;;  %v6921_v2 = vadd.f32 %v8293_v40, %v7461_v48 }
0x3232   : > { %v9920_v42 = vadd.f32 %v7429_v35, %v6563_v33  ;;  %v6916_v12 = vadd.f32 %v7461_v48, %v6915_v20 }
0x3233   : > { %v6943_v50 = vsel %vm6941_vm1, %v6569_v39, 0.0  ;;  %v6999_v11 = vsel %vm6997_vm11, %v6921_v2, 0.0 }
0x3234   : > { %v6942_v53 = vsel %vm6940_vm4, %v9920_v42, 0.0  ;;  %v6998_v34 = vsel %vm6996_vm12, %v6916_v12, 0.0 }
0x3238   : > { %v8260_v43 = vpop.f32.mrb[76].mxu1 }
0x3239   : > { %v6657_v45 = vadd.f32 %v8260_v43, %v7437_v37  ;;  %v6651_v46 = vpop.f32.mrb[77].mxu1 }
0x323a   : > { %v6652_v49 = vadd.f32 %v7437_v37, %v6651_v46 }
0x323b   : > { %v6925_v51 = vmax.f32 %v6569_v39, %v6657_v45  ;;  %v6957_v52 = vsel %vm6955_vm2, %v6657_v45, 0.0 }
0x323c   : > { %v6959_v54 = vadd.f32 %v6957_v52, %v6943_v50  ;;  %v6924_v9 = vmax.f32 %v9920_v42, %v6652_v49  ;;  %v6956_v58 = vsel %vm6954_vm6, %v6652_v49, 0.0 }
0x323d   : > { %v6958_v10 = vadd.f32 %v6956_v58, %v6942_v53  ;;  %v6927_v61 = vmax.f32 %v6925_v51, %v6745_v44 }
0x323e   : > { %v6973_v1 = vadd.f32 %v6971_v59, %v6959_v54  ;;  %v6926_v57 = vmax.f32 %v6924_v9, %v6740_v47 }
0x323f   : > { %v6972_v3 = vadd.f32 %v6970_v0, %v6958_v10 }
0x3240   : > { %v8282_v56 = vpop.f32.mrb[78].mxu1 }
0x3241   : > { %v6833_v4 = vadd.f32 %v8282_v56, %v7453_v15  ;;  %v6827_v5 = vpop.f32.mrb[79].mxu1 }
0x3242   : > { %v6828_v62 = vadd.f32 %v7453_v15, %v6827_v5 }
0x3243   : > { %v6929_v63 = vmax.f32 %v6927_v61, %v6833_v4  ;;  %v6985_v22 = vsel %vm6983_vm9, %v6833_v4, 0.0 }
0x3244   : > { %v6987_v55 = vadd.f32 %v6985_v22, %v6973_v1  ;;  %v6928_v60 = vmax.f32 %v6926_v57, %v6828_v62  ;;  %v6984_v16 = vsel %vm6982_vm10, %v6828_v62, 0.0 }
0x3245   : > { %v6931_v17 = vmax.f32 %v6929_v63, %v6921_v2  ;;  %v6986_v18 = vadd.f32 %v6984_v16, %v6972_v3  ;;  %v7465_v3 = vsel %vm7009_vm13, 1.0, %v8805_v8 }
0x3246   : > { %v9935_v36 = vmax.f32 %v6928_v60, %v6916_v12  ;;  %v9937_v38 = vadd.f32 %v6999_v11, %v6987_v55  ;;  %v7034_v25 = vsel %vm1467_vm0, %v7465_v3, 0.0 }
0x3247   : > { %v6933_v21 = vsub.f32 %v6569_v39, %v6931_v17  ;;  %v6947_v23 = vsub.f32 %v6657_v45, %v6931_v17  ;;  %v6961_v24 = vsub.f32 %v6745_v44, %v6931_v17  ;;  %v6975_v30 = vsub.f32 %v6833_v4, %v6931_v17 }
0x3248   : > { %v6932_v6 = vsub.f32 %v9920_v42, %v9935_v36  ;;  %v6946_v26 = vsub.f32 %v6652_v49, %v9935_v36  ;;  %v6960_v27 = vsub.f32 %v6740_v47, %v9935_v36  ;;  %v6974_v28 = vsub.f32 %v6828_v62, %v9935_v36 }
0x3249   : > { %v6936_v29 = vmul.f32 1.442695, %v6933_v21  ;;  %v6950_v13 = vmul.f32 1.442695, %v6947_v23  ;;  %v6964_v31 = vmul.f32 1.442695, %v6961_v24  ;;  %v6989_v14 = vsub.f32 %v6921_v2, %v6931_v17 }
0x324a   : > { %v6978_v32 = vmul.f32 1.442695, %v6975_v30  ;;  %v6988_v7 = vsub.f32 %v6916_v12, %v9935_v36  ;;  %v6934_v40 = vmul.f32 1.442695, %v6932_v6  ;;  %v6948_v33 = vmul.f32 1.442695, %v6946_v26 }
0x324b   : > { %8724 = vpow2.f32 %v6936_v29  ;;  %v7000_v20 = vadd.f32 %v6998_v34, %v6986_v18  ;;  %v6962_v35 = vmul.f32 1.442695, %v6960_v27  ;;  %v6992_v19 = vmul.f32 1.442695, %v6989_v14 }
0x324c   : > { %8726 = vpow2.f32 %v6950_v13  ;;  %v6976_v37 = vmul.f32 1.442695, %v6974_v28  ;;  %v6990_v39 = vmul.f32 1.442695, %v6988_v7  ;;  %v7464_v62 = vsel %vm7008_vm14, 1.0, %v8805_v8 }
0x324d   : > { %8728 = vpow2.f32 %v6964_v31  ;;  %v7031_v41 = vsel %vm1467_vm0, %v7464_v62, 0.0 }
0x324e   : > { %8730 = vpow2.f32 %v6978_v32 }
0x324f   : > { %8732 = vpow2.f32 %v6934_v40 }
0x3250   : > { %8734 = vpow2.f32 %v6948_v33 }
0x3251   : > { %8736 = vpow2.f32 %v6962_v35 }
0x3252   : > { %8738 = vpow2.f32 %v6992_v19 }
0x3253   : > { %8740 = vpow2.f32 %v6976_v37 }
0x3254   : > { %8742 = vpow2.f32 %v6990_v39 }
0x3255   : > { %v8725_v42 = vpop.eup %8724 }
0x3256   : > { %v8727_v43 = vpop.eup %8726 }
0x3257   : > { %v8729_v44 = vpop.eup %8728  ;;  %v6953_v45 = vadd.f32 %v8727_v43, %v8725_v42 }
0x3258   : > { %v8731_v46 = vpop.eup %8730 }
0x3259   : > { %v8733_v47 = vpop.eup %8732  ;;  %v6967_v49 = vadd.f32 %v8729_v44, %v6953_v45 }
0x325a   : > { %v8735_v50 = vpop.eup %8734 }
0x325b   : > { %v6981_v51 = vadd.f32 %v8731_v46, %v6967_v49  ;;  %v6952_v52 = vadd.f32 %v8735_v50, %v8733_v47  ;;  %v8737_v53 = vpop.eup %8736 }
0x325c   : > { %v8739_v54 = vpop.eup %8738 }
0x325d   : > { %v6966_v9 = vadd.f32 %v8737_v53, %v6952_v52  ;;  %v8741_v58 = vpop.eup %8740  ;;  %v6995_v59 = vadd.f32 %v8739_v54, %v6981_v51 }
0x325e   : > { %v8743_v61 = vpop.eup %8742 }
0x325f   : > { %v6980_v10 = vadd.f32 %v8741_v58, %v6966_v9  ;;  %8744 = vlog2.f32 %v6995_v59 }
0x3261   : > { %v6994_v0 = vadd.f32 %v8743_v61, %v6980_v10 }
0x3263   : > { %8746 = vlog2.f32 %v6994_v0 }
0x3269   : > { %v8745_v48 = vpop.eup %8744 }
0x326a   : > { %v7005_v15 = vmul.f32 0.6931472, %v8745_v48 }
0x326c   : > { %v7007_v57 = vadd.f32 %v7005_v15, %v6931_v17 }
0x326d   : > { %v8747_v1 = vpop.eup %8746 }
0x326e   : > { %v7003_v56 = vmul.f32 0.6931472, %v8747_v1  ;;  %v7015_v2 = vsub.f32 %v7007_v57, %v9937_v38 }
0x3270   : > { %v7006_v4 = vadd.f32 %v7003_v56, %v9935_v36  ;;  %v7017_v5 = vmul.f32 %v7465_v3, %v7015_v2 }
0x3272   : > { %v7014_v63 = vsub.f32 %v7006_v4, %v7000_v20  ;;  %v7021_v22 = vsel %vm1467_vm0, %v7017_v5, 0.0 }
0x3273   : > { %7022 = vadd.xlane.f32.xlu0 %v7021_v22 }
0x3274   : > { %v7016_v12 = vmul.f32 %v7464_v62, %v7014_v63 }
0x3276   : > { %v7018_v55 = vsel %vm1467_vm0, %v7016_v12, 0.0  ;;  %vm7044_vm0 = vcmask 0  }
0x3277   : > { %7019 = vadd.xlane.f32.xlu1 %v7018_v55  ;;  %7035 = vadd.xlane.f32.xlu0 %v7034_v25 }
0x327b   : > { %7032 = vadd.xlane.f32.xlu1 %v7031_v41 }
0x3300   : > { %v7023_v60 = vpop.xlane.xlu0 %7022 }
0x3304   : > { %v7020_v16 = vpop.xlane.xlu1 %7019  ;;  %v7036_v8 = vpop.xlane.xlu0 %7035 }
0x3305   : > { %v7024_v11 = vadd.f32 %v7023_v60, %v7020_v16 }
0x3307   : > { %v7025_v17 = vrot.slane %v7024_v11, 4 }
0x3308   : > { %v7033_v18 = vpop.xlane.xlu1 %7032 }
0x3309   : > { %v7026_v36 = vadd.f32 %v7025_v17, %v7024_v11  ;;  %v7037_v38 = vadd.f32 %v7036_v8, %v7033_v18 }
0x330b   : > { %v7027_v21 = vrot.slane %v7026_v36, 2  ;;  %v7038_v23 = vrot.slane %v7037_v38, 4 }
0x330d   : > { %v7028_v24 = vadd.f32 %v7027_v21, %v7026_v36  ;;  %v7039_v30 = vadd.f32 %v7038_v23, %v7037_v38 }
0x330f   : > { %v7029_v6 = vrot.slane %v7028_v24, 1  ;;  %v7040_v26 = vrot.slane %v7039_v30, 2 }
0x3311   : > { %v7030_v27 = vadd.f32 %v7029_v6, %v7028_v24  ;;  %v7041_v28 = vadd.f32 %v7040_v26, %v7039_v30 }
0x3313   : > { %7045 = vst.msk [vmem:[%s1449_s0] sm:$0x1] %vm7044_vm0, %v7030_v27  ;;  %v7042_v29 = vrot.slane %v7041_v28, 1 }
0x3315   : > { %v7043_v13 = vadd.f32 %v7042_v29, %v7041_v28 }
0x3317   : > { %7046 = vst.msk [vmem:[%s1452_s1] sm:$0x1] %vm7044_vm0, %v7043_v13 }
0x3318 PF: > { %s104_s15 = sadd.s32 1, %s8754_s15  }
0x3319   : > { %p101_p4 = scmp.ge.s32.totalorder %s104_s15, 4  }
0x331b   :  { %103 = sbr.rel (!%p101_p4) target bundleno = 87 (0x57), region = 325 }

</bundles_post_ra>
